<compile_context>
chip_gen: v5e
topology: v5e:2x2
jax: 0.10.0
libtpu: 0.0.40
codegen_flags: <defaults>
</compile_context>

<pallas_src>
import jax
import jax.numpy as jnp
from jax import lax
from jax.experimental import pallas as pl
from jax.experimental.pallas import tpu as pltpu

# --- small synthetic CLIP text config ---
VOCAB = 256
MAXLEN = 8            # max_length (reduced from 77 for the small example)
HIDDEN = 128          # multiple of 128 -> lane-dense activations & output stores
HEADS = 4
HEAD_DIM = HIDDEN // HEADS
INTER = 512           # 4 * HIDDEN, like CLIP
LAYERS = 2
EPS = 1e-5


def _layernorm(x, g, b):
    mu = jnp.mean(x, axis=-1, keepdims=True)
    xc = x - mu
    var = jnp.mean(xc * xc, axis=-1, keepdims=True)
    return xc * lax.rsqrt(var + EPS) * g + b


# ------------------------- fused per-sequence kernel -------------------------

def clip_encoder_kernel(ids_ref, tok_ref, pos_ref,
                        ln1g_ref, ln1b_ref, wqkv_ref, bqkv_ref,
                        wo_ref, bo_ref, ln2g_ref, ln2b_ref,
                        w1_ref, b1_ref, w2_ref, b2_ref,
                        lnfg_ref, lnfb_ref, out_ref):
    # One grid step == one batch element (sequence).
    # ids_ref : (S, 1) int32        tok_ref : (V, D) bf16      pos_ref : (S, D) f32
    # per-layer stacks have a leading LAYERS axis; matmul weights bf16, biases/LN f32.
    # out_ref : (S, D) f32
    ids = ids_ref[...]                                   # (S, 1)
    S = ids.shape[0]
    V = tok_ref.shape[0]
    L = wqkv_ref.shape[0]
    D = HIDDEN

    # ---- token embedding: one-hot matmul (vocab tiny & VMEM-resident here) ----
    # TODO(synk): real CLIP vocab (49408) cannot live in VMEM -> row-gather DMA instead.
    col = lax.broadcasted_iota(jnp.int32, (S, V), 1)
    one_hot = (col == ids).astype(jnp.bfloat16)          # (S, V)
    x = jnp.dot(one_hot, tok_ref[...],
                preferred_element_type=jnp.float32)      # (S, D) f32 (exact: 1-hot rows)
    x = x + pos_ref[...]

    # ---- causal mask generated in-kernel (batch is a grid axis -> no cross-batch) ----
    r = lax.broadcasted_iota(jnp.int32, (S, S), 0)
    c = lax.broadcasted_iota(jnp.int32, (S, S), 1)
    causal = jnp.where(c <= r, 0.0, -1e9).astype(jnp.float32)

    scale = HEAD_DIM ** -0.5

    # TODO(synk): at real sizes replace this unrolled Python loop with a LAYERS grid
    #             axis ("arbitrary") + per-layer weight BlockSpecs + residual scratch.
    for l in range(L):
        # ---- pre-LN causal MHA, fused QKV projection (bf16 MXU, f32 accumulate) ----
        h = _layernorm(x, ln1g_ref[l], ln1b_ref[l]).astype(jnp.bfloat16)
        qkv = jnp.dot(h, wqkv_ref[l],
                      preferred_element_type=jnp.float32) + bqkv_ref[l]   # (S, 3D) f32
        q = qkv[:, 0:D] * scale                # 128-lane-boundary slices (whole vregs)
        k = qkv[:, D:2 * D]
        v = qkv[:, 2 * D:3 * D]

        ctx_heads = []
        for hd in range(HEADS):
            hs = slice(hd * HEAD_DIM, (hd + 1) * HEAD_DIM)
            qh = q[:, hs].astype(jnp.bfloat16)                            # (S, Hd)
            kh = k[:, hs].astype(jnp.bfloat16)
            vh = v[:, hs].astype(jnp.bfloat16)
            s = lax.dot_general(qh, kh, (((1,), (1,)), ((), ())),
                                preferred_element_type=jnp.float32)       # (S, S)
            s = s + causal
            s = s - jnp.max(s, axis=-1, keepdims=True)
            p = jnp.exp(s)                                                # f32 softmax
            p = p * pl.reciprocal(jnp.sum(p, axis=-1, keepdims=True), approx=True)
            ctx_heads.append(jnp.dot(p.astype(jnp.bfloat16), vh,
                                     preferred_element_type=jnp.float32)) # (S, Hd)

        # lane-dense (S, D) context -> ONE output projection (replaces folded-Wo accum)
        ctx = jnp.concatenate(ctx_heads, axis=-1).astype(jnp.bfloat16)    # (S, D)
        x = x + jnp.dot(ctx, wo_ref[l],
                        preferred_element_type=jnp.float32) + bo_ref[l]

        # ---- MLP (pre-LN, quick_gelu: m * sigmoid(1.702 m), CLIP default), f32 math ----
        h2 = _layernorm(x, ln2g_ref[l], ln2b_ref[l]).astype(jnp.bfloat16)
        m = jnp.dot(h2, w1_ref[l], preferred_element_type=jnp.float32) + b1_ref[l]
        m = m * jax.nn.sigmoid(1.702 * m)
        x = x + jnp.dot(m.astype(jnp.bfloat16), w2_ref[l],
                        preferred_element_type=jnp.float32) + b2_ref[l]

    # ---- final LayerNorm fused into the same kernel; (S,128) lane-dense store ----
    out_ref[...] = _layernorm(x, lnfg_ref[...], lnfb_ref[...])


# ------------------------- wrapper -------------------------

def clip_text_encode(token_ids, params):
    """FrozenCLIPEmbedder.forward equivalent on pre-tokenized ids -> last_hidden_state."""
    # TODO(synk): CLIPTokenizer (string -> token ids) has no Pallas equivalent; ids are inputs.
    B, S = token_ids.shape
    layers = params["layers"]

    ids3 = token_ids.reshape(B, S, 1).astype(jnp.int32)

    # Stack per-layer weights with a leading LAYERS axis; fuse Wq/Wk/Wv -> (L, D, 3D) bf16.
    ln1_g = jnp.stack([lp["ln1_g"] for lp in layers])
    ln1_b = jnp.stack([lp["ln1_b"] for lp in layers])
    wqkv = jnp.stack([jnp.concatenate([lp["wq"], lp["wk"], lp["wv"]], axis=1)
                      for lp in layers])                                   # bf16
    bqkv = jnp.stack([jnp.concatenate([lp["bq"], lp["bk"], lp["bv"]], axis=1)
                      for lp in layers])                                   # f32
    wo = jnp.stack([lp["wo"] for lp in layers])                            # bf16
    bo = jnp.stack([lp["bo"] for lp in layers])
    ln2_g = jnp.stack([lp["ln2_g"] for lp in layers])
    ln2_b = jnp.stack([lp["ln2_b"] for lp in layers])
    w1 = jnp.stack([lp["w1"] for lp in layers])                            # bf16
    b1 = jnp.stack([lp["b1"] for lp in layers])
    w2 = jnp.stack([lp["w2"] for lp in layers])                            # bf16
    b2 = jnp.stack([lp["b2"] for lp in layers])

    inputs = (ids3, params["tok_emb"], params["pos_emb"],
              ln1_g, ln1_b, wqkv, bqkv, wo, bo, ln2_g, ln2_b,
              w1, b1, w2, b2, params["final_ln_g"], params["final_ln_b"])

    def _const_spec(a):
        zeros = (0,) * a.ndim
        return pl.BlockSpec(a.shape, lambda b, _z=zeros: _z)

    in_specs = ([pl.BlockSpec((None, S, 1), lambda b: (b, 0, 0))]
                + [_const_spec(a) for a in inputs[1:]])

    out = pl.pallas_call(
        clip_encoder_kernel,
        out_shape=jax.ShapeDtypeStruct((B, S, HIDDEN), jnp.float32),
        grid=(B,),
        in_specs=in_specs,
        out_specs=pl.BlockSpec((None, S, HIDDEN), lambda b: (b, 0, 0)),
        # batch axis is independent -> "parallel" (shards across v7x's 2 TensorCores).
        # TODO(synk): set vmem_limit_bytes here once real-size per-layer tiles are used.
        compiler_params=pltpu.CompilerParams(dimension_semantics=("parallel",)),
    )(*inputs)
    return out


# ------------------------- params & reference -------------------------

def init_params(key):
    def nrm(k, shape, scale=0.02, dtype=jnp.bfloat16):
        return (scale * jax.random.normal(k, shape)).astype(dtype)

    keys = jax.random.split(key, 4 + LAYERS)
    params = {
        "tok_emb": nrm(keys[0], (VOCAB, HIDDEN)),                          # bf16
        "pos_emb": nrm(keys[1], (MAXLEN, HIDDEN), dtype=jnp.float32),      # f32 (additive)
        "final_ln_g": jnp.ones((1, HIDDEN), jnp.float32),
        "final_ln_b": jnp.zeros((1, HIDDEN), jnp.float32),
        "layers": [],
    }
    for li in range(LAYERS):
        ks = jax.random.split(keys[4 + li], 8)
        params["layers"].append({
            "ln1_g": jnp.ones((1, HIDDEN), jnp.float32),
            "ln1_b": jnp.zeros((1, HIDDEN), jnp.float32),
            "wq": nrm(ks[0], (HIDDEN, HIDDEN)), "bq": jnp.zeros((1, HIDDEN), jnp.float32),
            "wk": nrm(ks[1], (HIDDEN, HIDDEN)), "bk": jnp.zeros((1, HIDDEN), jnp.float32),
            "wv": nrm(ks[2], (HIDDEN, HIDDEN)), "bv": jnp.zeros((1, HIDDEN), jnp.float32),
            "wo": nrm(ks[3], (HIDDEN, HIDDEN)), "bo": jnp.zeros((1, HIDDEN), jnp.float32),
            "ln2_g": jnp.ones((1, HIDDEN), jnp.float32),
            "ln2_b": jnp.zeros((1, HIDDEN), jnp.float32),
            "w1": nrm(ks[4], (HIDDEN, INTER)), "b1": jnp.zeros((1, INTER), jnp.float32),
            "w2": nrm(ks[5], (INTER, HIDDEN)), "b2": jnp.zeros((1, HIDDEN), jnp.float32),
        })
    return params


def clip_text_encode_ref(token_ids, params):
    """Pure-JAX f32 reference for the same forward pass (bf16-stored weights upcast)."""
    f32 = lambda a: a.astype(jnp.float32)
    x = f32(params["tok_emb"])[token_ids] + params["pos_emb"][None]
    S = token_ids.shape[1]
    row = jnp.arange(S)[:, None]
    col = jnp.arange(S)[None, :]
    causal = jnp.where(col <= row, 0.0, -1e9).astype(jnp.float32)
    for lp in params["layers"]:
        h = _layernorm(x, lp["ln1_g"], lp["ln1_b"])
        q = h @ f32(lp["wq"]) + lp["bq"]
        k = h @ f32(lp["wk"]) + lp["bk"]
        v = h @ f32(lp["wv"]) + lp["bv"]
        B = x.shape[0]
        q = q.reshape(B, S, HEADS, HEAD_DIM).transpose(0, 2, 1, 3) * (HEAD_DIM ** -0.5)
        k = k.reshape(B, S, HEADS, HEAD_DIM).transpose(0, 2, 1, 3)
        v = v.reshape(B, S, HEADS, HEAD_DIM).transpose(0, 2, 1, 3)
        s = jnp.einsum("bhqd,bhkd->bhqk", q, k) + causal
        p = jax.nn.softmax(s, axis=-1)
        a = jnp.einsum("bhqk,bhkd->bhqd", p, v).transpose(0, 2, 1, 3).reshape(B, S, HIDDEN)
        x = x + (a @ f32(lp["wo"]) + lp["bo"])
        h2 = _layernorm(x, lp["ln2_g"], lp["ln2_b"])
        m = h2 @ f32(lp["w1"]) + lp["b1"]
        m = m * jax.nn.sigmoid(1.702 * m)
        x = x + (m @ f32(lp["w2"]) + lp["b2"])
    return _layernorm(x, params["final_ln_g"], params["final_ln_b"])


if __name__ == "__main__":
    key = jax.random.PRNGKey(0)
    k_par, k_tok = jax.random.split(key)
    params = init_params(k_par)
    # batch=2, seq(max_length)=8 pre-tokenized token ids
    token_ids = jax.random.randint(k_tok, (2, MAXLEN), 0, VOCAB, dtype=jnp.int32)

    z = clip_text_encode(token_ids, params)            # (2, 8, 128) last_hidden_state
    z = jax.block_until_ready(z)

    z_ref = clip_text_encode_ref(token_ids, params)
    assert z.shape == (2, MAXLEN, HIDDEN)
    assert jnp.allclose(z, z_ref, atol=5e-2, rtol=5e-2), float(jnp.max(jnp.abs(z - z_ref)))
    print("KERNEL_OK")
</pallas_src>

<mosaic_0001>
module attributes {stable_mosaic.version = 11 : i64} {
  func.func @clip_encoder_kernel(%arg0: i32, %arg1: memref<1x8x1xi32, #tpu.memory_space<vmem>>, %arg2: memref<256x128xbf16, #tpu.memory_space<vmem>>, %arg3: memref<8x128xf32, #tpu.memory_space<vmem>>, %arg4: memref<2x1x128xf32, #tpu.memory_space<vmem>>, %arg5: memref<2x1x128xf32, #tpu.memory_space<vmem>>, %arg6: memref<2x128x384xbf16, #tpu.memory_space<vmem>>, %arg7: memref<2x1x384xf32, #tpu.memory_space<vmem>>, %arg8: memref<2x128x128xbf16, #tpu.memory_space<vmem>>, %arg9: memref<2x1x128xf32, #tpu.memory_space<vmem>>, %arg10: memref<2x1x128xf32, #tpu.memory_space<vmem>>, %arg11: memref<2x1x128xf32, #tpu.memory_space<vmem>>, %arg12: memref<2x128x512xbf16, #tpu.memory_space<vmem>>, %arg13: memref<2x1x512xf32, #tpu.memory_space<vmem>>, %arg14: memref<2x512x128xbf16, #tpu.memory_space<vmem>>, %arg15: memref<2x1x128xf32, #tpu.memory_space<vmem>>, %arg16: memref<1x128xf32, #tpu.memory_space<vmem>>, %arg17: memref<1x128xf32, #tpu.memory_space<vmem>>, %arg18: memref<1x8x128xf32, #tpu.memory_space<vmem>>) attributes {dimension_semantics = [#tpu.dimension_semantics<parallel>], iteration_bounds = array<i64: 2>, scalar_prefetch = 0 : i64, scratch_operands = 0 : i64, tpu.core_type = #tpu.core_type<tc>, window_params = [{transform_indices = @transform_0, window_bounds = array<i64: 1, 8, 1>}, {pipeline_mode = #tpu.pipeline_mode<synchronous>, transform_indices = @transform_1, window_bounds = array<i64: 256, 128>}, {pipeline_mode = #tpu.pipeline_mode<synchronous>, transform_indices = @transform_2, window_bounds = array<i64: 8, 128>}, {pipeline_mode = #tpu.pipeline_mode<synchronous>, transform_indices = @transform_3, window_bounds = array<i64: 2, 1, 128>}, {pipeline_mode = #tpu.pipeline_mode<synchronous>, transform_indices = @transform_4, window_bounds = array<i64: 2, 1, 128>}, {pipeline_mode = #tpu.pipeline_mode<synchronous>, transform_indices = @transform_5, window_bounds = array<i64: 2, 128, 384>}, {pipeline_mode = #tpu.pipeline_mode<synchronous>, transform_indices = @transform_6, window_bounds = array<i64: 2, 1, 384>}, {pipeline_mode = #tpu.pipeline_mode<synchronous>, transform_indices = @transform_7, window_bounds = array<i64: 2, 128, 128>}, {pipeline_mode = #tpu.pipeline_mode<synchronous>, transform_indices = @transform_8, window_bounds = array<i64: 2, 1, 128>}, {pipeline_mode = #tpu.pipeline_mode<synchronous>, transform_indices = @transform_9, window_bounds = array<i64: 2, 1, 128>}, {pipeline_mode = #tpu.pipeline_mode<synchronous>, transform_indices = @transform_10, window_bounds = array<i64: 2, 1, 128>}, {pipeline_mode = #tpu.pipeline_mode<synchronous>, transform_indices = @transform_11, window_bounds = array<i64: 2, 128, 512>}, {pipeline_mode = #tpu.pipeline_mode<synchronous>, transform_indices = @transform_12, window_bounds = array<i64: 2, 1, 512>}, {pipeline_mode = #tpu.pipeline_mode<synchronous>, transform_indices = @transform_13, window_bounds = array<i64: 2, 512, 128>}, {pipeline_mode = #tpu.pipeline_mode<synchronous>, transform_indices = @transform_14, window_bounds = array<i64: 2, 1, 128>}, {pipeline_mode = #tpu.pipeline_mode<synchronous>, transform_indices = @transform_15, window_bounds = array<i64: 1, 128>}, {pipeline_mode = #tpu.pipeline_mode<synchronous>, transform_indices = @transform_16, window_bounds = array<i64: 1, 128>}, {transform_indices = @transform_17, window_bounds = array<i64: 1, 8, 128>}]} {
    %c0 = arith.constant 0 : index
    %c0_0 = arith.constant 0 : index
    %c0_1 = arith.constant 0 : index
    %0 = vector.load %arg1[%c0, %c0_0, %c0_1] : memref<1x8x1xi32, #tpu.memory_space<vmem>>, vector<1x8x1xi32>
    %1 = vector.shape_cast %0 : vector<1x8x1xi32> to vector<8x1xi32>
    %2 = tpu.iota {dimensions = array<i32: 1>} : vector<8x256xi32>
    %3 = vector.broadcast %1 : vector<8x1xi32> to vector<8x256xi32>
    %4 = arith.cmpi eq, %2, %3 : vector<8x256xi32>
    %5 = arith.extui %4 : vector<8x256xi1> to vector<8x256xi32>
    %6 = arith.sitofp %5 : vector<8x256xi32> to vector<8x256xf32>
    %7 = arith.truncf %6 : vector<8x256xf32> to vector<8x256xbf16>
    %c0_2 = arith.constant 0 : index
    %c0_3 = arith.constant 0 : index
    %8 = vector.load %arg2[%c0_2, %c0_3] : memref<256x128xbf16, #tpu.memory_space<vmem>>, vector<256x128xbf16>
    %cst = arith.constant dense<0.000000e+00> : vector<8x128xf32>
    %9 = tpu.matmul %7, %8, %cst {dimension_numbers = #tpu.dot_dimension_numbers<[1], [0], [0], [1], [0, 0, 1, 1], [], []>} : vector<8x256xbf16>, vector<256x128xbf16>, vector<8x128xf32> -> vector<8x128xf32>
    %c0_4 = arith.constant 0 : index
    %c0_5 = arith.constant 0 : index
    %10 = vector.load %arg3[%c0_4, %c0_5] : memref<8x128xf32, #tpu.memory_space<vmem>>, vector<8x128xf32>
    %11 = arith.addf %9, %10 : vector<8x128xf32>
    %12 = tpu.iota {dimensions = array<i32: 0>} : vector<8x8xi32>
    %13 = tpu.iota {dimensions = array<i32: 1>} : vector<8x8xi32>
    %14 = arith.cmpi sle, %13, %12 : vector<8x8xi32>
    %cst_6 = arith.constant 0.000000e+00 : f32
    %cst_7 = arith.constant -1.000000e+09 : f32
    %15 = vector.broadcast %cst_6 : f32 to vector<8x8xf32>
    %16 = vector.broadcast %cst_7 : f32 to vector<8x8xf32>
    %17 = arith.select %14, %15, %16 : vector<8x8xi1>, vector<8x8xf32>
    %c0_8 = arith.constant 0 : index
    %c0_9 = arith.constant 0 : index
    %c0_10 = arith.constant 0 : index
    %18 = vector.load %arg4[%c0_8, %c0_9, %c0_10] : memref<2x1x128xf32, #tpu.memory_space<vmem>>, vector<1x1x128xf32>
    %19 = vector.shape_cast %18 : vector<1x1x128xf32> to vector<1x128xf32>
    %c0_11 = arith.constant 0 : index
    %c0_12 = arith.constant 0 : index
    %c0_13 = arith.constant 0 : index
    %20 = vector.load %arg5[%c0_11, %c0_12, %c0_13] : memref<2x1x128xf32, #tpu.memory_space<vmem>>, vector<1x1x128xf32>
    %21 = vector.shape_cast %20 : vector<1x1x128xf32> to vector<1x128xf32>
    %cst_14 = arith.constant dense<0.000000e+00> : vector<8xf32>
    %22 = vector.multi_reduction <add>, %11, %cst_14 [1] : vector<8x128xf32> to vector<8xf32>
    %23 = vector.shape_cast %22 : vector<8xf32> to vector<8x1xf32>
    %cst_15 = arith.constant 1.280000e+02 : f32
    %24 = vector.broadcast %cst_15 : f32 to vector<8x1xf32>
    %25 = arith.divf %23, %24 : vector<8x1xf32>
    %26 = vector.broadcast %25 : vector<8x1xf32> to vector<8x128xf32>
    %27 = arith.subf %11, %26 : vector<8x128xf32>
    %28 = arith.mulf %27, %27 : vector<8x128xf32>
    %cst_16 = arith.constant dense<0.000000e+00> : vector<8xf32>
    %29 = vector.multi_reduction <add>, %28, %cst_16 [1] : vector<8x128xf32> to vector<8xf32>
    %30 = vector.shape_cast %29 : vector<8xf32> to vector<8x1xf32>
    %cst_17 = arith.constant 1.280000e+02 : f32
    %31 = vector.broadcast %cst_17 : f32 to vector<8x1xf32>
    %32 = arith.divf %30, %31 : vector<8x1xf32>
    %cst_18 = arith.constant 9.99999974E-6 : f32
    %33 = vector.broadcast %cst_18 : f32 to vector<8x1xf32>
    %34 = arith.addf %32, %33 : vector<8x1xf32>
    %35 = math.rsqrt %34 : vector<8x1xf32>
    %36 = vector.broadcast %35 : vector<8x1xf32> to vector<8x128xf32>
    %37 = arith.mulf %27, %36 : vector<8x128xf32>
    %38 = vector.broadcast %19 : vector<1x128xf32> to vector<8x128xf32>
    %39 = arith.mulf %37, %38 : vector<8x128xf32>
    %40 = vector.broadcast %21 : vector<1x128xf32> to vector<8x128xf32>
    %41 = arith.addf %39, %40 : vector<8x128xf32>
    %42 = arith.truncf %41 : vector<8x128xf32> to vector<8x128xbf16>
    %c0_19 = arith.constant 0 : index
    %c0_20 = arith.constant 0 : index
    %c0_21 = arith.constant 0 : index
    %43 = vector.load %arg6[%c0_19, %c0_20, %c0_21] : memref<2x128x384xbf16, #tpu.memory_space<vmem>>, vector<1x128x384xbf16>
    %44 = vector.shape_cast %43 : vector<1x128x384xbf16> to vector<128x384xbf16>
    %cst_22 = arith.constant dense<0.000000e+00> : vector<8x384xf32>
    %45 = tpu.matmul %42, %44, %cst_22 {dimension_numbers = #tpu.dot_dimension_numbers<[1], [0], [0], [1], [0, 0, 1, 1], [], []>} : vector<8x128xbf16>, vector<128x384xbf16>, vector<8x384xf32> -> vector<8x384xf32>
    %c0_23 = arith.constant 0 : index
    %c0_24 = arith.constant 0 : index
    %c0_25 = arith.constant 0 : index
    %46 = vector.load %arg7[%c0_23, %c0_24, %c0_25] : memref<2x1x384xf32, #tpu.memory_space<vmem>>, vector<1x1x384xf32>
    %47 = vector.shape_cast %46 : vector<1x1x384xf32> to vector<1x384xf32>
    %48 = vector.broadcast %47 : vector<1x384xf32> to vector<8x384xf32>
    %49 = arith.addf %45, %48 : vector<8x384xf32>
    %50 = vector.extract_strided_slice %49 {offsets = [0, 0], sizes = [8, 128], strides = [1, 1]} : vector<8x384xf32> to vector<8x128xf32>
    %cst_26 = arith.constant 0.176776692 : f32
    %51 = vector.broadcast %cst_26 : f32 to vector<8x128xf32>
    %52 = arith.mulf %50, %51 : vector<8x128xf32>
    %53 = vector.extract_strided_slice %49 {offsets = [0, 128], sizes = [8, 128], strides = [1, 1]} : vector<8x384xf32> to vector<8x128xf32>
    %54 = vector.extract_strided_slice %49 {offsets = [0, 256], sizes = [8, 128], strides = [1, 1]} : vector<8x384xf32> to vector<8x128xf32>
    %55 = vector.extract_strided_slice %52 {offsets = [0, 0], sizes = [8, 32], strides = [1, 1]} : vector<8x128xf32> to vector<8x32xf32>
    %56 = arith.truncf %55 : vector<8x32xf32> to vector<8x32xbf16>
    %57 = vector.extract_strided_slice %53 {offsets = [0, 0], sizes = [8, 32], strides = [1, 1]} : vector<8x128xf32> to vector<8x32xf32>
    %58 = arith.truncf %57 : vector<8x32xf32> to vector<8x32xbf16>
    %59 = vector.extract_strided_slice %54 {offsets = [0, 0], sizes = [8, 32], strides = [1, 1]} : vector<8x128xf32> to vector<8x32xf32>
    %60 = arith.truncf %59 : vector<8x32xf32> to vector<8x32xbf16>
    %cst_27 = arith.constant dense<0.000000e+00> : vector<8x8xf32>
    %61 = tpu.matmul %56, %58, %cst_27 {dimension_numbers = #tpu.dot_dimension_numbers<[1], [1], [0], [0], [0, 0, 1, 0], [], []>} : vector<8x32xbf16>, vector<8x32xbf16>, vector<8x8xf32> -> vector<8x8xf32>
    %62 = arith.addf %61, %17 : vector<8x8xf32>
    %cst_28 = arith.constant dense<0xFF800000> : vector<8xf32>
    %63 = vector.multi_reduction <maximumf>, %62, %cst_28 [1] : vector<8x8xf32> to vector<8xf32>
    %64 = vector.shape_cast %63 : vector<8xf32> to vector<8x1xf32>
    %65 = vector.broadcast %64 : vector<8x1xf32> to vector<8x8xf32>
    %66 = arith.subf %62, %65 : vector<8x8xf32>
    %67 = math.exp %66 : vector<8x8xf32>
    %cst_29 = arith.constant dense<0.000000e+00> : vector<8xf32>
    %68 = vector.multi_reduction <add>, %67, %cst_29 [1] : vector<8x8xf32> to vector<8xf32>
    %69 = vector.shape_cast %68 : vector<8xf32> to vector<8x1xf32>
    %70 = tpu.reciprocal %69 {approx = true} : vector<8x1xf32> -> vector<8x1xf32>
    %71 = vector.broadcast %70 : vector<8x1xf32> to vector<8x8xf32>
    %72 = arith.mulf %67, %71 : vector<8x8xf32>
    %73 = arith.truncf %72 : vector<8x8xf32> to vector<8x8xbf16>
    %cst_30 = arith.constant dense<0.000000e+00> : vector<8x32xf32>
    %74 = tpu.matmul %73, %60, %cst_30 {dimension_numbers = #tpu.dot_dimension_numbers<[1], [0], [0], [1], [0, 0, 1, 1], [], []>} : vector<8x8xbf16>, vector<8x32xbf16>, vector<8x32xf32> -> vector<8x32xf32>
    %75 = vector.extract_strided_slice %52 {offsets = [0, 32], sizes = [8, 32], strides = [1, 1]} : vector<8x128xf32> to vector<8x32xf32>
    %76 = arith.truncf %75 : vector<8x32xf32> to vector<8x32xbf16>
    %77 = vector.extract_strided_slice %53 {offsets = [0, 32], sizes = [8, 32], strides = [1, 1]} : vector<8x128xf32> to vector<8x32xf32>
    %78 = arith.truncf %77 : vector<8x32xf32> to vector<8x32xbf16>
    %79 = vector.extract_strided_slice %54 {offsets = [0, 32], sizes = [8, 32], strides = [1, 1]} : vector<8x128xf32> to vector<8x32xf32>
    %80 = arith.truncf %79 : vector<8x32xf32> to vector<8x32xbf16>
    %cst_31 = arith.constant dense<0.000000e+00> : vector<8x8xf32>
    %81 = tpu.matmul %76, %78, %cst_31 {dimension_numbers = #tpu.dot_dimension_numbers<[1], [1], [0], [0], [0, 0, 1, 0], [], []>} : vector<8x32xbf16>, vector<8x32xbf16>, vector<8x8xf32> -> vector<8x8xf32>
    %82 = arith.addf %81, %17 : vector<8x8xf32>
    %cst_32 = arith.constant dense<0xFF800000> : vector<8xf32>
    %83 = vector.multi_reduction <maximumf>, %82, %cst_32 [1] : vector<8x8xf32> to vector<8xf32>
    %84 = vector.shape_cast %83 : vector<8xf32> to vector<8x1xf32>
    %85 = vector.broadcast %84 : vector<8x1xf32> to vector<8x8xf32>
    %86 = arith.subf %82, %85 : vector<8x8xf32>
    %87 = math.exp %86 : vector<8x8xf32>
    %cst_33 = arith.constant dense<0.000000e+00> : vector<8xf32>
    %88 = vector.multi_reduction <add>, %87, %cst_33 [1] : vector<8x8xf32> to vector<8xf32>
    %89 = vector.shape_cast %88 : vector<8xf32> to vector<8x1xf32>
    %90 = tpu.reciprocal %89 {approx = true} : vector<8x1xf32> -> vector<8x1xf32>
    %91 = vector.broadcast %90 : vector<8x1xf32> to vector<8x8xf32>
    %92 = arith.mulf %87, %91 : vector<8x8xf32>
    %93 = arith.truncf %92 : vector<8x8xf32> to vector<8x8xbf16>
    %cst_34 = arith.constant dense<0.000000e+00> : vector<8x32xf32>
    %94 = tpu.matmul %93, %80, %cst_34 {dimension_numbers = #tpu.dot_dimension_numbers<[1], [0], [0], [1], [0, 0, 1, 1], [], []>} : vector<8x8xbf16>, vector<8x32xbf16>, vector<8x32xf32> -> vector<8x32xf32>
    %95 = vector.extract_strided_slice %52 {offsets = [0, 64], sizes = [8, 32], strides = [1, 1]} : vector<8x128xf32> to vector<8x32xf32>
    %96 = arith.truncf %95 : vector<8x32xf32> to vector<8x32xbf16>
    %97 = vector.extract_strided_slice %53 {offsets = [0, 64], sizes = [8, 32], strides = [1, 1]} : vector<8x128xf32> to vector<8x32xf32>
    %98 = arith.truncf %97 : vector<8x32xf32> to vector<8x32xbf16>
    %99 = vector.extract_strided_slice %54 {offsets = [0, 64], sizes = [8, 32], strides = [1, 1]} : vector<8x128xf32> to vector<8x32xf32>
    %100 = arith.truncf %99 : vector<8x32xf32> to vector<8x32xbf16>
    %cst_35 = arith.constant dense<0.000000e+00> : vector<8x8xf32>
    %101 = tpu.matmul %96, %98, %cst_35 {dimension_numbers = #tpu.dot_dimension_numbers<[1], [1], [0], [0], [0, 0, 1, 0], [], []>} : vector<8x32xbf16>, vector<8x32xbf16>, vector<8x8xf32> -> vector<8x8xf32>
    %102 = arith.addf %101, %17 : vector<8x8xf32>
    %cst_36 = arith.constant dense<0xFF800000> : vector<8xf32>
    %103 = vector.multi_reduction <maximumf>, %102, %cst_36 [1] : vector<8x8xf32> to vector<8xf32>
    %104 = vector.shape_cast %103 : vector<8xf32> to vector<8x1xf32>
    %105 = vector.broadcast %104 : vector<8x1xf32> to vector<8x8xf32>
    %106 = arith.subf %102, %105 : vector<8x8xf32>
    %107 = math.exp %106 : vector<8x8xf32>
    %cst_37 = arith.constant dense<0.000000e+00> : vector<8xf32>
    %108 = vector.multi_reduction <add>, %107, %cst_37 [1] : vector<8x8xf32> to vector<8xf32>
    %109 = vector.shape_cast %108 : vector<8xf32> to vector<8x1xf32>
    %110 = tpu.reciprocal %109 {approx = true} : vector<8x1xf32> -> vector<8x1xf32>
    %111 = vector.broadcast %110 : vector<8x1xf32> to vector<8x8xf32>
    %112 = arith.mulf %107, %111 : vector<8x8xf32>
    %113 = arith.truncf %112 : vector<8x8xf32> to vector<8x8xbf16>
    %cst_38 = arith.constant dense<0.000000e+00> : vector<8x32xf32>
    %114 = tpu.matmul %113, %100, %cst_38 {dimension_numbers = #tpu.dot_dimension_numbers<[1], [0], [0], [1], [0, 0, 1, 1], [], []>} : vector<8x8xbf16>, vector<8x32xbf16>, vector<8x32xf32> -> vector<8x32xf32>
    %115 = vector.extract_strided_slice %52 {offsets = [0, 96], sizes = [8, 32], strides = [1, 1]} : vector<8x128xf32> to vector<8x32xf32>
    %116 = arith.truncf %115 : vector<8x32xf32> to vector<8x32xbf16>
    %117 = vector.extract_strided_slice %53 {offsets = [0, 96], sizes = [8, 32], strides = [1, 1]} : vector<8x128xf32> to vector<8x32xf32>
    %118 = arith.truncf %117 : vector<8x32xf32> to vector<8x32xbf16>
    %119 = vector.extract_strided_slice %54 {offsets = [0, 96], sizes = [8, 32], strides = [1, 1]} : vector<8x128xf32> to vector<8x32xf32>
    %120 = arith.truncf %119 : vector<8x32xf32> to vector<8x32xbf16>
    %cst_39 = arith.constant dense<0.000000e+00> : vector<8x8xf32>
    %121 = tpu.matmul %116, %118, %cst_39 {dimension_numbers = #tpu.dot_dimension_numbers<[1], [1], [0], [0], [0, 0, 1, 0], [], []>} : vector<8x32xbf16>, vector<8x32xbf16>, vector<8x8xf32> -> vector<8x8xf32>
    %122 = arith.addf %121, %17 : vector<8x8xf32>
    %cst_40 = arith.constant dense<0xFF800000> : vector<8xf32>
    %123 = vector.multi_reduction <maximumf>, %122, %cst_40 [1] : vector<8x8xf32> to vector<8xf32>
    %124 = vector.shape_cast %123 : vector<8xf32> to vector<8x1xf32>
    %125 = vector.broadcast %124 : vector<8x1xf32> to vector<8x8xf32>
    %126 = arith.subf %122, %125 : vector<8x8xf32>
    %127 = math.exp %126 : vector<8x8xf32>
    %cst_41 = arith.constant dense<0.000000e+00> : vector<8xf32>
    %128 = vector.multi_reduction <add>, %127, %cst_41 [1] : vector<8x8xf32> to vector<8xf32>
    %129 = vector.shape_cast %128 : vector<8xf32> to vector<8x1xf32>
    %130 = tpu.reciprocal %129 {approx = true} : vector<8x1xf32> -> vector<8x1xf32>
    %131 = vector.broadcast %130 : vector<8x1xf32> to vector<8x8xf32>
    %132 = arith.mulf %127, %131 : vector<8x8xf32>
    %133 = arith.truncf %132 : vector<8x8xf32> to vector<8x8xbf16>
    %cst_42 = arith.constant dense<0.000000e+00> : vector<8x32xf32>
    %134 = tpu.matmul %133, %120, %cst_42 {dimension_numbers = #tpu.dot_dimension_numbers<[1], [0], [0], [1], [0, 0, 1, 1], [], []>} : vector<8x8xbf16>, vector<8x32xbf16>, vector<8x32xf32> -> vector<8x32xf32>
    %135 = tpu.concatenate %74, %94, %114, %134 in 1 : vector<8x32xf32>, vector<8x32xf32>, vector<8x32xf32>, vector<8x32xf32> -> vector<8x128xf32>
    %136 = arith.truncf %135 : vector<8x128xf32> to vector<8x128xbf16>
    %c0_43 = arith.constant 0 : index
    %c0_44 = arith.constant 0 : index
    %c0_45 = arith.constant 0 : index
    %137 = vector.load %arg8[%c0_43, %c0_44, %c0_45] : memref<2x128x128xbf16, #tpu.memory_space<vmem>>, vector<1x128x128xbf16>
    %138 = vector.shape_cast %137 : vector<1x128x128xbf16> to vector<128x128xbf16>
    %cst_46 = arith.constant dense<0.000000e+00> : vector<8x128xf32>
    %139 = tpu.matmul %136, %138, %cst_46 {dimension_numbers = #tpu.dot_dimension_numbers<[1], [0], [0], [1], [0, 0, 1, 1], [], []>} : vector<8x128xbf16>, vector<128x128xbf16>, vector<8x128xf32> -> vector<8x128xf32>
    %140 = arith.addf %11, %139 : vector<8x128xf32>
    %c0_47 = arith.constant 0 : index
    %c0_48 = arith.constant 0 : index
    %c0_49 = arith.constant 0 : index
    %141 = vector.load %arg9[%c0_47, %c0_48, %c0_49] : memref<2x1x128xf32, #tpu.memory_space<vmem>>, vector<1x1x128xf32>
    %142 = vector.shape_cast %141 : vector<1x1x128xf32> to vector<1x128xf32>
    %143 = vector.broadcast %142 : vector<1x128xf32> to vector<8x128xf32>
    %144 = arith.addf %140, %143 : vector<8x128xf32>
    %c0_50 = arith.constant 0 : index
    %c0_51 = arith.constant 0 : index
    %c0_52 = arith.constant 0 : index
    %145 = vector.load %arg10[%c0_50, %c0_51, %c0_52] : memref<2x1x128xf32, #tpu.memory_space<vmem>>, vector<1x1x128xf32>
    %146 = vector.shape_cast %145 : vector<1x1x128xf32> to vector<1x128xf32>
    %c0_53 = arith.constant 0 : index
    %c0_54 = arith.constant 0 : index
    %c0_55 = arith.constant 0 : index
    %147 = vector.load %arg11[%c0_53, %c0_54, %c0_55] : memref<2x1x128xf32, #tpu.memory_space<vmem>>, vector<1x1x128xf32>
    %148 = vector.shape_cast %147 : vector<1x1x128xf32> to vector<1x128xf32>
    %cst_56 = arith.constant dense<0.000000e+00> : vector<8xf32>
    %149 = vector.multi_reduction <add>, %144, %cst_56 [1] : vector<8x128xf32> to vector<8xf32>
    %150 = vector.shape_cast %149 : vector<8xf32> to vector<8x1xf32>
    %cst_57 = arith.constant 1.280000e+02 : f32
    %151 = vector.broadcast %cst_57 : f32 to vector<8x1xf32>
    %152 = arith.divf %150, %151 : vector<8x1xf32>
    %153 = vector.broadcast %152 : vector<8x1xf32> to vector<8x128xf32>
    %154 = arith.subf %144, %153 : vector<8x128xf32>
    %155 = arith.mulf %154, %154 : vector<8x128xf32>
    %cst_58 = arith.constant dense<0.000000e+00> : vector<8xf32>
    %156 = vector.multi_reduction <add>, %155, %cst_58 [1] : vector<8x128xf32> to vector<8xf32>
    %157 = vector.shape_cast %156 : vector<8xf32> to vector<8x1xf32>
    %cst_59 = arith.constant 1.280000e+02 : f32
    %158 = vector.broadcast %cst_59 : f32 to vector<8x1xf32>
    %159 = arith.divf %157, %158 : vector<8x1xf32>
    %cst_60 = arith.constant 9.99999974E-6 : f32
    %160 = vector.broadcast %cst_60 : f32 to vector<8x1xf32>
    %161 = arith.addf %159, %160 : vector<8x1xf32>
    %162 = math.rsqrt %161 : vector<8x1xf32>
    %163 = vector.broadcast %162 : vector<8x1xf32> to vector<8x128xf32>
    %164 = arith.mulf %154, %163 : vector<8x128xf32>
    %165 = vector.broadcast %146 : vector<1x128xf32> to vector<8x128xf32>
    %166 = arith.mulf %164, %165 : vector<8x128xf32>
    %167 = vector.broadcast %148 : vector<1x128xf32> to vector<8x128xf32>
    %168 = arith.addf %166, %167 : vector<8x128xf32>
    %169 = arith.truncf %168 : vector<8x128xf32> to vector<8x128xbf16>
    %c0_61 = arith.constant 0 : index
    %c0_62 = arith.constant 0 : index
    %c0_63 = arith.constant 0 : index
    %170 = vector.load %arg12[%c0_61, %c0_62, %c0_63] : memref<2x128x512xbf16, #tpu.memory_space<vmem>>, vector<1x128x512xbf16>
    %171 = vector.shape_cast %170 : vector<1x128x512xbf16> to vector<128x512xbf16>
    %cst_64 = arith.constant dense<0.000000e+00> : vector<8x512xf32>
    %172 = tpu.matmul %169, %171, %cst_64 {dimension_numbers = #tpu.dot_dimension_numbers<[1], [0], [0], [1], [0, 0, 1, 1], [], []>} : vector<8x128xbf16>, vector<128x512xbf16>, vector<8x512xf32> -> vector<8x512xf32>
    %c0_65 = arith.constant 0 : index
    %c0_66 = arith.constant 0 : index
    %c0_67 = arith.constant 0 : index
    %173 = vector.load %arg13[%c0_65, %c0_66, %c0_67] : memref<2x1x512xf32, #tpu.memory_space<vmem>>, vector<1x1x512xf32>
    %174 = vector.shape_cast %173 : vector<1x1x512xf32> to vector<1x512xf32>
    %175 = vector.broadcast %174 : vector<1x512xf32> to vector<8x512xf32>
    %176 = arith.addf %172, %175 : vector<8x512xf32>
    %cst_68 = arith.constant 1.702000e+00 : f32
    %177 = vector.broadcast %cst_68 : f32 to vector<8x512xf32>
    %178 = arith.mulf %177, %176 : vector<8x512xf32>
    %179 = arith.negf %178 : vector<8x512xf32>
    %180 = math.exp %179 : vector<8x512xf32>
    %cst_69 = arith.constant 1.000000e+00 : f32
    %181 = vector.broadcast %cst_69 : f32 to vector<8x512xf32>
    %182 = arith.addf %181, %180 : vector<8x512xf32>
    %183 = arith.divf %181, %182 : vector<8x512xf32>
    %184 = arith.mulf %176, %183 : vector<8x512xf32>
    %185 = arith.truncf %184 : vector<8x512xf32> to vector<8x512xbf16>
    %c0_70 = arith.constant 0 : index
    %c0_71 = arith.constant 0 : index
    %c0_72 = arith.constant 0 : index
    %186 = vector.load %arg14[%c0_70, %c0_71, %c0_72] : memref<2x512x128xbf16, #tpu.memory_space<vmem>>, vector<1x512x128xbf16>
    %187 = vector.shape_cast %186 : vector<1x512x128xbf16> to vector<512x128xbf16>
    %cst_73 = arith.constant dense<0.000000e+00> : vector<8x128xf32>
    %188 = tpu.matmul %185, %187, %cst_73 {dimension_numbers = #tpu.dot_dimension_numbers<[1], [0], [0], [1], [0, 0, 1, 1], [], []>} : vector<8x512xbf16>, vector<512x128xbf16>, vector<8x128xf32> -> vector<8x128xf32>
    %189 = arith.addf %144, %188 : vector<8x128xf32>
    %c0_74 = arith.constant 0 : index
    %c0_75 = arith.constant 0 : index
    %c0_76 = arith.constant 0 : index
    %190 = vector.load %arg15[%c0_74, %c0_75, %c0_76] : memref<2x1x128xf32, #tpu.memory_space<vmem>>, vector<1x1x128xf32>
    %191 = vector.shape_cast %190 : vector<1x1x128xf32> to vector<1x128xf32>
    %192 = vector.broadcast %191 : vector<1x128xf32> to vector<8x128xf32>
    %193 = arith.addf %189, %192 : vector<8x128xf32>
    %c1 = arith.constant 1 : index
    %c0_77 = arith.constant 0 : index
    %c0_78 = arith.constant 0 : index
    %194 = vector.load %arg4[%c1, %c0_77, %c0_78] : memref<2x1x128xf32, #tpu.memory_space<vmem>>, vector<1x1x128xf32>
    %195 = vector.shape_cast %194 : vector<1x1x128xf32> to vector<1x128xf32>
    %c1_79 = arith.constant 1 : index
    %c0_80 = arith.constant 0 : index
    %c0_81 = arith.constant 0 : index
    %196 = vector.load %arg5[%c1_79, %c0_80, %c0_81] : memref<2x1x128xf32, #tpu.memory_space<vmem>>, vector<1x1x128xf32>
    %197 = vector.shape_cast %196 : vector<1x1x128xf32> to vector<1x128xf32>
    %cst_82 = arith.constant dense<0.000000e+00> : vector<8xf32>
    %198 = vector.multi_reduction <add>, %193, %cst_82 [1] : vector<8x128xf32> to vector<8xf32>
    %199 = vector.shape_cast %198 : vector<8xf32> to vector<8x1xf32>
    %cst_83 = arith.constant 1.280000e+02 : f32
    %200 = vector.broadcast %cst_83 : f32 to vector<8x1xf32>
    %201 = arith.divf %199, %200 : vector<8x1xf32>
    %202 = vector.broadcast %201 : vector<8x1xf32> to vector<8x128xf32>
    %203 = arith.subf %193, %202 : vector<8x128xf32>
    %204 = arith.mulf %203, %203 : vector<8x128xf32>
    %cst_84 = arith.constant dense<0.000000e+00> : vector<8xf32>
    %205 = vector.multi_reduction <add>, %204, %cst_84 [1] : vector<8x128xf32> to vector<8xf32>
    %206 = vector.shape_cast %205 : vector<8xf32> to vector<8x1xf32>
    %cst_85 = arith.constant 1.280000e+02 : f32
    %207 = vector.broadcast %cst_85 : f32 to vector<8x1xf32>
    %208 = arith.divf %206, %207 : vector<8x1xf32>
    %cst_86 = arith.constant 9.99999974E-6 : f32
    %209 = vector.broadcast %cst_86 : f32 to vector<8x1xf32>
    %210 = arith.addf %208, %209 : vector<8x1xf32>
    %211 = math.rsqrt %210 : vector<8x1xf32>
    %212 = vector.broadcast %211 : vector<8x1xf32> to vector<8x128xf32>
    %213 = arith.mulf %203, %212 : vector<8x128xf32>
    %214 = vector.broadcast %195 : vector<1x128xf32> to vector<8x128xf32>
    %215 = arith.mulf %213, %214 : vector<8x128xf32>
    %216 = vector.broadcast %197 : vector<1x128xf32> to vector<8x128xf32>
    %217 = arith.addf %215, %216 : vector<8x128xf32>
    %218 = arith.truncf %217 : vector<8x128xf32> to vector<8x128xbf16>
    %c1_87 = arith.constant 1 : index
    %c0_88 = arith.constant 0 : index
    %c0_89 = arith.constant 0 : index
    %219 = vector.load %arg6[%c1_87, %c0_88, %c0_89] : memref<2x128x384xbf16, #tpu.memory_space<vmem>>, vector<1x128x384xbf16>
    %220 = vector.shape_cast %219 : vector<1x128x384xbf16> to vector<128x384xbf16>
    %cst_90 = arith.constant dense<0.000000e+00> : vector<8x384xf32>
    %221 = tpu.matmul %218, %220, %cst_90 {dimension_numbers = #tpu.dot_dimension_numbers<[1], [0], [0], [1], [0, 0, 1, 1], [], []>} : vector<8x128xbf16>, vector<128x384xbf16>, vector<8x384xf32> -> vector<8x384xf32>
    %c1_91 = arith.constant 1 : index
    %c0_92 = arith.constant 0 : index
    %c0_93 = arith.constant 0 : index
    %222 = vector.load %arg7[%c1_91, %c0_92, %c0_93] : memref<2x1x384xf32, #tpu.memory_space<vmem>>, vector<1x1x384xf32>
    %223 = vector.shape_cast %222 : vector<1x1x384xf32> to vector<1x384xf32>
    %224 = vector.broadcast %223 : vector<1x384xf32> to vector<8x384xf32>
    %225 = arith.addf %221, %224 : vector<8x384xf32>
    %226 = vector.extract_strided_slice %225 {offsets = [0, 0], sizes = [8, 128], strides = [1, 1]} : vector<8x384xf32> to vector<8x128xf32>
    %cst_94 = arith.constant 0.176776692 : f32
    %227 = vector.broadcast %cst_94 : f32 to vector<8x128xf32>
    %228 = arith.mulf %226, %227 : vector<8x128xf32>
    %229 = vector.extract_strided_slice %225 {offsets = [0, 128], sizes = [8, 128], strides = [1, 1]} : vector<8x384xf32> to vector<8x128xf32>
    %230 = vector.extract_strided_slice %225 {offsets = [0, 256], sizes = [8, 128], strides = [1, 1]} : vector<8x384xf32> to vector<8x128xf32>
    %231 = vector.extract_strided_slice %228 {offsets = [0, 0], sizes = [8, 32], strides = [1, 1]} : vector<8x128xf32> to vector<8x32xf32>
    %232 = arith.truncf %231 : vector<8x32xf32> to vector<8x32xbf16>
    %233 = vector.extract_strided_slice %229 {offsets = [0, 0], sizes = [8, 32], strides = [1, 1]} : vector<8x128xf32> to vector<8x32xf32>
    %234 = arith.truncf %233 : vector<8x32xf32> to vector<8x32xbf16>
    %235 = vector.extract_strided_slice %230 {offsets = [0, 0], sizes = [8, 32], strides = [1, 1]} : vector<8x128xf32> to vector<8x32xf32>
    %236 = arith.truncf %235 : vector<8x32xf32> to vector<8x32xbf16>
    %cst_95 = arith.constant dense<0.000000e+00> : vector<8x8xf32>
    %237 = tpu.matmul %232, %234, %cst_95 {dimension_numbers = #tpu.dot_dimension_numbers<[1], [1], [0], [0], [0, 0, 1, 0], [], []>} : vector<8x32xbf16>, vector<8x32xbf16>, vector<8x8xf32> -> vector<8x8xf32>
    %238 = arith.addf %237, %17 : vector<8x8xf32>
    %cst_96 = arith.constant dense<0xFF800000> : vector<8xf32>
    %239 = vector.multi_reduction <maximumf>, %238, %cst_96 [1] : vector<8x8xf32> to vector<8xf32>
    %240 = vector.shape_cast %239 : vector<8xf32> to vector<8x1xf32>
    %241 = vector.broadcast %240 : vector<8x1xf32> to vector<8x8xf32>
    %242 = arith.subf %238, %241 : vector<8x8xf32>
    %243 = math.exp %242 : vector<8x8xf32>
    %cst_97 = arith.constant dense<0.000000e+00> : vector<8xf32>
    %244 = vector.multi_reduction <add>, %243, %cst_97 [1] : vector<8x8xf32> to vector<8xf32>
    %245 = vector.shape_cast %244 : vector<8xf32> to vector<8x1xf32>
    %246 = tpu.reciprocal %245 {approx = true} : vector<8x1xf32> -> vector<8x1xf32>
    %247 = vector.broadcast %246 : vector<8x1xf32> to vector<8x8xf32>
    %248 = arith.mulf %243, %247 : vector<8x8xf32>
    %249 = arith.truncf %248 : vector<8x8xf32> to vector<8x8xbf16>
    %cst_98 = arith.constant dense<0.000000e+00> : vector<8x32xf32>
    %250 = tpu.matmul %249, %236, %cst_98 {dimension_numbers = #tpu.dot_dimension_numbers<[1], [0], [0], [1], [0, 0, 1, 1], [], []>} : vector<8x8xbf16>, vector<8x32xbf16>, vector<8x32xf32> -> vector<8x32xf32>
    %251 = vector.extract_strided_slice %228 {offsets = [0, 32], sizes = [8, 32], strides = [1, 1]} : vector<8x128xf32> to vector<8x32xf32>
    %252 = arith.truncf %251 : vector<8x32xf32> to vector<8x32xbf16>
    %253 = vector.extract_strided_slice %229 {offsets = [0, 32], sizes = [8, 32], strides = [1, 1]} : vector<8x128xf32> to vector<8x32xf32>
    %254 = arith.truncf %253 : vector<8x32xf32> to vector<8x32xbf16>
    %255 = vector.extract_strided_slice %230 {offsets = [0, 32], sizes = [8, 32], strides = [1, 1]} : vector<8x128xf32> to vector<8x32xf32>
    %256 = arith.truncf %255 : vector<8x32xf32> to vector<8x32xbf16>
    %cst_99 = arith.constant dense<0.000000e+00> : vector<8x8xf32>
    %257 = tpu.matmul %252, %254, %cst_99 {dimension_numbers = #tpu.dot_dimension_numbers<[1], [1], [0], [0], [0, 0, 1, 0], [], []>} : vector<8x32xbf16>, vector<8x32xbf16>, vector<8x8xf32> -> vector<8x8xf32>
    %258 = arith.addf %257, %17 : vector<8x8xf32>
    %cst_100 = arith.constant dense<0xFF800000> : vector<8xf32>
    %259 = vector.multi_reduction <maximumf>, %258, %cst_100 [1] : vector<8x8xf32> to vector<8xf32>
    %260 = vector.shape_cast %259 : vector<8xf32> to vector<8x1xf32>
    %261 = vector.broadcast %260 : vector<8x1xf32> to vector<8x8xf32>
    %262 = arith.subf %258, %261 : vector<8x8xf32>
    %263 = math.exp %262 : vector<8x8xf32>
    %cst_101 = arith.constant dense<0.000000e+00> : vector<8xf32>
    %264 = vector.multi_reduction <add>, %263, %cst_101 [1] : vector<8x8xf32> to vector<8xf32>
    %265 = vector.shape_cast %264 : vector<8xf32> to vector<8x1xf32>
    %266 = tpu.reciprocal %265 {approx = true} : vector<8x1xf32> -> vector<8x1xf32>
    %267 = vector.broadcast %266 : vector<8x1xf32> to vector<8x8xf32>
    %268 = arith.mulf %263, %267 : vector<8x8xf32>
    %269 = arith.truncf %268 : vector<8x8xf32> to vector<8x8xbf16>
    %cst_102 = arith.constant dense<0.000000e+00> : vector<8x32xf32>
    %270 = tpu.matmul %269, %256, %cst_102 {dimension_numbers = #tpu.dot_dimension_numbers<[1], [0], [0], [1], [0, 0, 1, 1], [], []>} : vector<8x8xbf16>, vector<8x32xbf16>, vector<8x32xf32> -> vector<8x32xf32>
    %271 = vector.extract_strided_slice %228 {offsets = [0, 64], sizes = [8, 32], strides = [1, 1]} : vector<8x128xf32> to vector<8x32xf32>
    %272 = arith.truncf %271 : vector<8x32xf32> to vector<8x32xbf16>
    %273 = vector.extract_strided_slice %229 {offsets = [0, 64], sizes = [8, 32], strides = [1, 1]} : vector<8x128xf32> to vector<8x32xf32>
    %274 = arith.truncf %273 : vector<8x32xf32> to vector<8x32xbf16>
    %275 = vector.extract_strided_slice %230 {offsets = [0, 64], sizes = [8, 32], strides = [1, 1]} : vector<8x128xf32> to vector<8x32xf32>
    %276 = arith.truncf %275 : vector<8x32xf32> to vector<8x32xbf16>
    %cst_103 = arith.constant dense<0.000000e+00> : vector<8x8xf32>
    %277 = tpu.matmul %272, %274, %cst_103 {dimension_numbers = #tpu.dot_dimension_numbers<[1], [1], [0], [0], [0, 0, 1, 0], [], []>} : vector<8x32xbf16>, vector<8x32xbf16>, vector<8x8xf32> -> vector<8x8xf32>
    %278 = arith.addf %277, %17 : vector<8x8xf32>
    %cst_104 = arith.constant dense<0xFF800000> : vector<8xf32>
    %279 = vector.multi_reduction <maximumf>, %278, %cst_104 [1] : vector<8x8xf32> to vector<8xf32>
    %280 = vector.shape_cast %279 : vector<8xf32> to vector<8x1xf32>
    %281 = vector.broadcast %280 : vector<8x1xf32> to vector<8x8xf32>
    %282 = arith.subf %278, %281 : vector<8x8xf32>
    %283 = math.exp %282 : vector<8x8xf32>
    %cst_105 = arith.constant dense<0.000000e+00> : vector<8xf32>
    %284 = vector.multi_reduction <add>, %283, %cst_105 [1] : vector<8x8xf32> to vector<8xf32>
    %285 = vector.shape_cast %284 : vector<8xf32> to vector<8x1xf32>
    %286 = tpu.reciprocal %285 {approx = true} : vector<8x1xf32> -> vector<8x1xf32>
    %287 = vector.broadcast %286 : vector<8x1xf32> to vector<8x8xf32>
    %288 = arith.mulf %283, %287 : vector<8x8xf32>
    %289 = arith.truncf %288 : vector<8x8xf32> to vector<8x8xbf16>
    %cst_106 = arith.constant dense<0.000000e+00> : vector<8x32xf32>
    %290 = tpu.matmul %289, %276, %cst_106 {dimension_numbers = #tpu.dot_dimension_numbers<[1], [0], [0], [1], [0, 0, 1, 1], [], []>} : vector<8x8xbf16>, vector<8x32xbf16>, vector<8x32xf32> -> vector<8x32xf32>
    %291 = vector.extract_strided_slice %228 {offsets = [0, 96], sizes = [8, 32], strides = [1, 1]} : vector<8x128xf32> to vector<8x32xf32>
    %292 = arith.truncf %291 : vector<8x32xf32> to vector<8x32xbf16>
    %293 = vector.extract_strided_slice %229 {offsets = [0, 96], sizes = [8, 32], strides = [1, 1]} : vector<8x128xf32> to vector<8x32xf32>
    %294 = arith.truncf %293 : vector<8x32xf32> to vector<8x32xbf16>
    %295 = vector.extract_strided_slice %230 {offsets = [0, 96], sizes = [8, 32], strides = [1, 1]} : vector<8x128xf32> to vector<8x32xf32>
    %296 = arith.truncf %295 : vector<8x32xf32> to vector<8x32xbf16>
    %cst_107 = arith.constant dense<0.000000e+00> : vector<8x8xf32>
    %297 = tpu.matmul %292, %294, %cst_107 {dimension_numbers = #tpu.dot_dimension_numbers<[1], [1], [0], [0], [0, 0, 1, 0], [], []>} : vector<8x32xbf16>, vector<8x32xbf16>, vector<8x8xf32> -> vector<8x8xf32>
    %298 = arith.addf %297, %17 : vector<8x8xf32>
    %cst_108 = arith.constant dense<0xFF800000> : vector<8xf32>
    %299 = vector.multi_reduction <maximumf>, %298, %cst_108 [1] : vector<8x8xf32> to vector<8xf32>
    %300 = vector.shape_cast %299 : vector<8xf32> to vector<8x1xf32>
    %301 = vector.broadcast %300 : vector<8x1xf32> to vector<8x8xf32>
    %302 = arith.subf %298, %301 : vector<8x8xf32>
    %303 = math.exp %302 : vector<8x8xf32>
    %cst_109 = arith.constant dense<0.000000e+00> : vector<8xf32>
    %304 = vector.multi_reduction <add>, %303, %cst_109 [1] : vector<8x8xf32> to vector<8xf32>
    %305 = vector.shape_cast %304 : vector<8xf32> to vector<8x1xf32>
    %306 = tpu.reciprocal %305 {approx = true} : vector<8x1xf32> -> vector<8x1xf32>
    %307 = vector.broadcast %306 : vector<8x1xf32> to vector<8x8xf32>
    %308 = arith.mulf %303, %307 : vector<8x8xf32>
    %309 = arith.truncf %308 : vector<8x8xf32> to vector<8x8xbf16>
    %cst_110 = arith.constant dense<0.000000e+00> : vector<8x32xf32>
    %310 = tpu.matmul %309, %296, %cst_110 {dimension_numbers = #tpu.dot_dimension_numbers<[1], [0], [0], [1], [0, 0, 1, 1], [], []>} : vector<8x8xbf16>, vector<8x32xbf16>, vector<8x32xf32> -> vector<8x32xf32>
    %311 = tpu.concatenate %250, %270, %290, %310 in 1 : vector<8x32xf32>, vector<8x32xf32>, vector<8x32xf32>, vector<8x32xf32> -> vector<8x128xf32>
    %312 = arith.truncf %311 : vector<8x128xf32> to vector<8x128xbf16>
    %c1_111 = arith.constant 1 : index
    %c0_112 = arith.constant 0 : index
    %c0_113 = arith.constant 0 : index
    %313 = vector.load %arg8[%c1_111, %c0_112, %c0_113] : memref<2x128x128xbf16, #tpu.memory_space<vmem>>, vector<1x128x128xbf16>
    %314 = vector.shape_cast %313 : vector<1x128x128xbf16> to vector<128x128xbf16>
    %cst_114 = arith.constant dense<0.000000e+00> : vector<8x128xf32>
    %315 = tpu.matmul %312, %314, %cst_114 {dimension_numbers = #tpu.dot_dimension_numbers<[1], [0], [0], [1], [0, 0, 1, 1], [], []>} : vector<8x128xbf16>, vector<128x128xbf16>, vector<8x128xf32> -> vector<8x128xf32>
    %316 = arith.addf %193, %315 : vector<8x128xf32>
    %c1_115 = arith.constant 1 : index
    %c0_116 = arith.constant 0 : index
    %c0_117 = arith.constant 0 : index
    %317 = vector.load %arg9[%c1_115, %c0_116, %c0_117] : memref<2x1x128xf32, #tpu.memory_space<vmem>>, vector<1x1x128xf32>
    %318 = vector.shape_cast %317 : vector<1x1x128xf32> to vector<1x128xf32>
    %319 = vector.broadcast %318 : vector<1x128xf32> to vector<8x128xf32>
    %320 = arith.addf %316, %319 : vector<8x128xf32>
    %c1_118 = arith.constant 1 : index
    %c0_119 = arith.constant 0 : index
    %c0_120 = arith.constant 0 : index
    %321 = vector.load %arg10[%c1_118, %c0_119, %c0_120] : memref<2x1x128xf32, #tpu.memory_space<vmem>>, vector<1x1x128xf32>
    %322 = vector.shape_cast %321 : vector<1x1x128xf32> to vector<1x128xf32>
    %c1_121 = arith.constant 1 : index
    %c0_122 = arith.constant 0 : index
    %c0_123 = arith.constant 0 : index
    %323 = vector.load %arg11[%c1_121, %c0_122, %c0_123] : memref<2x1x128xf32, #tpu.memory_space<vmem>>, vector<1x1x128xf32>
    %324 = vector.shape_cast %323 : vector<1x1x128xf32> to vector<1x128xf32>
    %cst_124 = arith.constant dense<0.000000e+00> : vector<8xf32>
    %325 = vector.multi_reduction <add>, %320, %cst_124 [1] : vector<8x128xf32> to vector<8xf32>
    %326 = vector.shape_cast %325 : vector<8xf32> to vector<8x1xf32>
    %cst_125 = arith.constant 1.280000e+02 : f32
    %327 = vector.broadcast %cst_125 : f32 to vector<8x1xf32>
    %328 = arith.divf %326, %327 : vector<8x1xf32>
    %329 = vector.broadcast %328 : vector<8x1xf32> to vector<8x128xf32>
    %330 = arith.subf %320, %329 : vector<8x128xf32>
    %331 = arith.mulf %330, %330 : vector<8x128xf32>
    %cst_126 = arith.constant dense<0.000000e+00> : vector<8xf32>
    %332 = vector.multi_reduction <add>, %331, %cst_126 [1] : vector<8x128xf32> to vector<8xf32>
    %333 = vector.shape_cast %332 : vector<8xf32> to vector<8x1xf32>
    %cst_127 = arith.constant 1.280000e+02 : f32
    %334 = vector.broadcast %cst_127 : f32 to vector<8x1xf32>
    %335 = arith.divf %333, %334 : vector<8x1xf32>
    %cst_128 = arith.constant 9.99999974E-6 : f32
    %336 = vector.broadcast %cst_128 : f32 to vector<8x1xf32>
    %337 = arith.addf %335, %336 : vector<8x1xf32>
    %338 = math.rsqrt %337 : vector<8x1xf32>
    %339 = vector.broadcast %338 : vector<8x1xf32> to vector<8x128xf32>
    %340 = arith.mulf %330, %339 : vector<8x128xf32>
    %341 = vector.broadcast %322 : vector<1x128xf32> to vector<8x128xf32>
    %342 = arith.mulf %340, %341 : vector<8x128xf32>
    %343 = vector.broadcast %324 : vector<1x128xf32> to vector<8x128xf32>
    %344 = arith.addf %342, %343 : vector<8x128xf32>
    %345 = arith.truncf %344 : vector<8x128xf32> to vector<8x128xbf16>
    %c1_129 = arith.constant 1 : index
    %c0_130 = arith.constant 0 : index
    %c0_131 = arith.constant 0 : index
    %346 = vector.load %arg12[%c1_129, %c0_130, %c0_131] : memref<2x128x512xbf16, #tpu.memory_space<vmem>>, vector<1x128x512xbf16>
    %347 = vector.shape_cast %346 : vector<1x128x512xbf16> to vector<128x512xbf16>
    %cst_132 = arith.constant dense<0.000000e+00> : vector<8x512xf32>
    %348 = tpu.matmul %345, %347, %cst_132 {dimension_numbers = #tpu.dot_dimension_numbers<[1], [0], [0], [1], [0, 0, 1, 1], [], []>} : vector<8x128xbf16>, vector<128x512xbf16>, vector<8x512xf32> -> vector<8x512xf32>
    %c1_133 = arith.constant 1 : index
    %c0_134 = arith.constant 0 : index
    %c0_135 = arith.constant 0 : index
    %349 = vector.load %arg13[%c1_133, %c0_134, %c0_135] : memref<2x1x512xf32, #tpu.memory_space<vmem>>, vector<1x1x512xf32>
    %350 = vector.shape_cast %349 : vector<1x1x512xf32> to vector<1x512xf32>
    %351 = vector.broadcast %350 : vector<1x512xf32> to vector<8x512xf32>
    %352 = arith.addf %348, %351 : vector<8x512xf32>
    %cst_136 = arith.constant 1.702000e+00 : f32
    %353 = vector.broadcast %cst_136 : f32 to vector<8x512xf32>
    %354 = arith.mulf %353, %352 : vector<8x512xf32>
    %355 = arith.negf %354 : vector<8x512xf32>
    %356 = math.exp %355 : vector<8x512xf32>
    %cst_137 = arith.constant 1.000000e+00 : f32
    %357 = vector.broadcast %cst_137 : f32 to vector<8x512xf32>
    %358 = arith.addf %357, %356 : vector<8x512xf32>
    %359 = arith.divf %357, %358 : vector<8x512xf32>
    %360 = arith.mulf %352, %359 : vector<8x512xf32>
    %361 = arith.truncf %360 : vector<8x512xf32> to vector<8x512xbf16>
    %c1_138 = arith.constant 1 : index
    %c0_139 = arith.constant 0 : index
    %c0_140 = arith.constant 0 : index
    %362 = vector.load %arg14[%c1_138, %c0_139, %c0_140] : memref<2x512x128xbf16, #tpu.memory_space<vmem>>, vector<1x512x128xbf16>
    %363 = vector.shape_cast %362 : vector<1x512x128xbf16> to vector<512x128xbf16>
    %cst_141 = arith.constant dense<0.000000e+00> : vector<8x128xf32>
    %364 = tpu.matmul %361, %363, %cst_141 {dimension_numbers = #tpu.dot_dimension_numbers<[1], [0], [0], [1], [0, 0, 1, 1], [], []>} : vector<8x512xbf16>, vector<512x128xbf16>, vector<8x128xf32> -> vector<8x128xf32>
    %365 = arith.addf %320, %364 : vector<8x128xf32>
    %c1_142 = arith.constant 1 : index
    %c0_143 = arith.constant 0 : index
    %c0_144 = arith.constant 0 : index
    %366 = vector.load %arg15[%c1_142, %c0_143, %c0_144] : memref<2x1x128xf32, #tpu.memory_space<vmem>>, vector<1x1x128xf32>
    %367 = vector.shape_cast %366 : vector<1x1x128xf32> to vector<1x128xf32>
    %368 = vector.broadcast %367 : vector<1x128xf32> to vector<8x128xf32>
    %369 = arith.addf %365, %368 : vector<8x128xf32>
    %c0_145 = arith.constant 0 : index
    %c0_146 = arith.constant 0 : index
    %370 = vector.load %arg16[%c0_145, %c0_146] : memref<1x128xf32, #tpu.memory_space<vmem>>, vector<1x128xf32>
    %c0_147 = arith.constant 0 : index
    %c0_148 = arith.constant 0 : index
    %371 = vector.load %arg17[%c0_147, %c0_148] : memref<1x128xf32, #tpu.memory_space<vmem>>, vector<1x128xf32>
    %cst_149 = arith.constant dense<0.000000e+00> : vector<8xf32>
    %372 = vector.multi_reduction <add>, %369, %cst_149 [1] : vector<8x128xf32> to vector<8xf32>
    %373 = vector.shape_cast %372 : vector<8xf32> to vector<8x1xf32>
    %cst_150 = arith.constant 1.280000e+02 : f32
    %374 = vector.broadcast %cst_150 : f32 to vector<8x1xf32>
    %375 = arith.divf %373, %374 : vector<8x1xf32>
    %376 = vector.broadcast %375 : vector<8x1xf32> to vector<8x128xf32>
    %377 = arith.subf %369, %376 : vector<8x128xf32>
    %378 = arith.mulf %377, %377 : vector<8x128xf32>
    %cst_151 = arith.constant dense<0.000000e+00> : vector<8xf32>
    %379 = vector.multi_reduction <add>, %378, %cst_151 [1] : vector<8x128xf32> to vector<8xf32>
    %380 = vector.shape_cast %379 : vector<8xf32> to vector<8x1xf32>
    %cst_152 = arith.constant 1.280000e+02 : f32
    %381 = vector.broadcast %cst_152 : f32 to vector<8x1xf32>
    %382 = arith.divf %380, %381 : vector<8x1xf32>
    %cst_153 = arith.constant 9.99999974E-6 : f32
    %383 = vector.broadcast %cst_153 : f32 to vector<8x1xf32>
    %384 = arith.addf %382, %383 : vector<8x1xf32>
    %385 = math.rsqrt %384 : vector<8x1xf32>
    %386 = vector.broadcast %385 : vector<8x1xf32> to vector<8x128xf32>
    %387 = arith.mulf %377, %386 : vector<8x128xf32>
    %388 = vector.broadcast %370 : vector<1x128xf32> to vector<8x128xf32>
    %389 = arith.mulf %387, %388 : vector<8x128xf32>
    %390 = vector.broadcast %371 : vector<1x128xf32> to vector<8x128xf32>
    %391 = arith.addf %389, %390 : vector<8x128xf32>
    %c0_154 = arith.constant 0 : index
    %c0_155 = arith.constant 0 : index
    %c0_156 = arith.constant 0 : index
    %392 = vector.load %arg18[%c0_154, %c0_155, %c0_156] : memref<1x8x128xf32, #tpu.memory_space<vmem>>, vector<1x8x128xf32>
    %393 = vector.shape_cast %392 : vector<1x8x128xf32> to vector<8x128xf32>
    %394 = vector.shape_cast %391 : vector<8x128xf32> to vector<1x8x128xf32>
    tpu.vector_store %arg18[%c0_154, %c0_155, %c0_156], %394 {strides = array<i32>} : memref<1x8x128xf32, #tpu.memory_space<vmem>>, vector<1x8x128xf32>,
    return
  }
  func.func @transform_0(%arg0: i32) -> (i32, i32, i32) {
    %c0_i32 = arith.constant 0 : i32
    %c0_i32_0 = arith.constant 0 : i32
    %c0_i32_1 = arith.constant 0 : i32
    return %arg0, %c0_i32, %c0_i32_0 : i32, i32, i32
  }
  func.func @transform_1(%arg0: i32) -> (i32, i32) {
    %c0_i32 = arith.constant 0 : i32
    %c0_i32_0 = arith.constant 0 : i32
    %c0_i32_1 = arith.constant 0 : i32
    return %c0_i32, %c0_i32_0 : i32, i32
  }
  func.func @transform_2(%arg0: i32) -> (i32, i32) {
    %c0_i32 = arith.constant 0 : i32
    %c0_i32_0 = arith.constant 0 : i32
    %c0_i32_1 = arith.constant 0 : i32
    return %c0_i32, %c0_i32_0 : i32, i32
  }
  func.func @transform_3(%arg0: i32) -> (i32, i32, i32) {
    %c0_i32 = arith.constant 0 : i32
    %c0_i32_0 = arith.constant 0 : i32
    %c0_i32_1 = arith.constant 0 : i32
    %c0_i32_2 = arith.constant 0 : i32
    return %c0_i32, %c0_i32_0, %c0_i32_1 : i32, i32, i32
  }
  func.func @transform_4(%arg0: i32) -> (i32, i32, i32) {
    %c0_i32 = arith.constant 0 : i32
    %c0_i32_0 = arith.constant 0 : i32
    %c0_i32_1 = arith.constant 0 : i32
    %c0_i32_2 = arith.constant 0 : i32
    return %c0_i32, %c0_i32_0, %c0_i32_1 : i32, i32, i32
  }
  func.func @transform_5(%arg0: i32) -> (i32, i32, i32) {
    %c0_i32 = arith.constant 0 : i32
    %c0_i32_0 = arith.constant 0 : i32
    %c0_i32_1 = arith.constant 0 : i32
    %c0_i32_2 = arith.constant 0 : i32
    return %c0_i32, %c0_i32_0, %c0_i32_1 : i32, i32, i32
  }
  func.func @transform_6(%arg0: i32) -> (i32, i32, i32) {
    %c0_i32 = arith.constant 0 : i32
    %c0_i32_0 = arith.constant 0 : i32
    %c0_i32_1 = arith.constant 0 : i32
    %c0_i32_2 = arith.constant 0 : i32
    return %c0_i32, %c0_i32_0, %c0_i32_1 : i32, i32, i32
  }
  func.func @transform_7(%arg0: i32) -> (i32, i32, i32) {
    %c0_i32 = arith.constant 0 : i32
    %c0_i32_0 = arith.constant 0 : i32
    %c0_i32_1 = arith.constant 0 : i32
    %c0_i32_2 = arith.constant 0 : i32
    return %c0_i32, %c0_i32_0, %c0_i32_1 : i32, i32, i32
  }
  func.func @transform_8(%arg0: i32) -> (i32, i32, i32) {
    %c0_i32 = arith.constant 0 : i32
    %c0_i32_0 = arith.constant 0 : i32
    %c0_i32_1 = arith.constant 0 : i32
    %c0_i32_2 = arith.constant 0 : i32
    return %c0_i32, %c0_i32_0, %c0_i32_1 : i32, i32, i32
  }
  func.func @transform_9(%arg0: i32) -> (i32, i32, i32) {
    %c0_i32 = arith.constant 0 : i32
    %c0_i32_0 = arith.constant 0 : i32
    %c0_i32_1 = arith.constant 0 : i32
    %c0_i32_2 = arith.constant 0 : i32
    return %c0_i32, %c0_i32_0, %c0_i32_1 : i32, i32, i32
  }
  func.func @transform_10(%arg0: i32) -> (i32, i32, i32) {
    %c0_i32 = arith.constant 0 : i32
    %c0_i32_0 = arith.constant 0 : i32
    %c0_i32_1 = arith.constant 0 : i32
    %c0_i32_2 = arith.constant 0 : i32
    return %c0_i32, %c0_i32_0, %c0_i32_1 : i32, i32, i32
  }
  func.func @transform_11(%arg0: i32) -> (i32, i32, i32) {
    %c0_i32 = arith.constant 0 : i32
    %c0_i32_0 = arith.constant 0 : i32
    %c0_i32_1 = arith.constant 0 : i32
    %c0_i32_2 = arith.constant 0 : i32
    return %c0_i32, %c0_i32_0, %c0_i32_1 : i32, i32, i32
  }
  func.func @transform_12(%arg0: i32) -> (i32, i32, i32) {
    %c0_i32 = arith.constant 0 : i32
    %c0_i32_0 = arith.constant 0 : i32
    %c0_i32_1 = arith.constant 0 : i32
    %c0_i32_2 = arith.constant 0 : i32
    return %c0_i32, %c0_i32_0, %c0_i32_1 : i32, i32, i32
  }
  func.func @transform_13(%arg0: i32) -> (i32, i32, i32) {
    %c0_i32 = arith.constant 0 : i32
    %c0_i32_0 = arith.constant 0 : i32
    %c0_i32_1 = arith.constant 0 : i32
    %c0_i32_2 = arith.constant 0 : i32
    return %c0_i32, %c0_i32_0, %c0_i32_1 : i32, i32, i32
  }
  func.func @transform_14(%arg0: i32) -> (i32, i32, i32) {
    %c0_i32 = arith.constant 0 : i32
    %c0_i32_0 = arith.constant 0 : i32
    %c0_i32_1 = arith.constant 0 : i32
    %c0_i32_2 = arith.constant 0 : i32
    return %c0_i32, %c0_i32_0, %c0_i32_1 : i32, i32, i32
  }
  func.func @transform_15(%arg0: i32) -> (i32, i32) {
    %c0_i32 = arith.constant 0 : i32
    %c0_i32_0 = arith.constant 0 : i32
    %c0_i32_1 = arith.constant 0 : i32
    return %c0_i32, %c0_i32_0 : i32, i32
  }
  func.func @transform_16(%arg0: i32) -> (i32, i32) {
    %c0_i32 = arith.constant 0 : i32
    %c0_i32_0 = arith.constant 0 : i32
    %c0_i32_1 = arith.constant 0 : i32
    return %c0_i32, %c0_i32_0 : i32, i32
  }
  func.func @transform_17(%arg0: i32) -> (i32, i32, i32) {
    %c0_i32 = arith.constant 0 : i32
    %c0_i32_0 = arith.constant 0 : i32
    %c0_i32_1 = arith.constant 0 : i32
    return %arg0, %c0_i32, %c0_i32_0 : i32, i32, i32
  }
}

</mosaic_0001>

<bundles_post_ra>
// kernel: tpu_custom_call.1
= control target key start
LH: loop header
LB: loop body
LE: loop exit
PB: predicated region body
PF: predicated region fallthrough
CT: control target
= control target key end

     0   :  { %s5747_s0 = inlined_call_operand.vmem [shape: s32[2,8,1], index: 0, kind: input, shape index: {}]   ;;  %s5748_s1 = inlined_call_operand.hbm [shape: bf16[256,128], index: 1, kind: input, shape index: {}]   ;;  %s5749_s2 = inlined_call_operand.vmem [shape: f32[8,128], index: 2, kind: input, shape index: {}]   ;;  %s5750_s3 = inlined_call_operand.hbm [shape: f32[2,1,128], index: 3, kind: input, shape index: {}]   ;;  %s5751_s4 = inlined_call_operand.hbm [shape: f32[2,1,128], index: 4, kind: input, shape index: {}]   ;;  %s5752_s5 = inlined_call_operand.hbm [shape: bf16[2,128,384], index: 5, kind: input, shape index: {}]   ;;  %s5753_s6 = inlined_call_operand.vmem [shape: f32[2,1,384], index: 6, kind: input, shape index: {}]   ;;  %s5754_s7 = inlined_call_operand.hbm [shape: bf16[2,128,128], index: 7, kind: input, shape index: {}]   ;;  %s5755_s8 = inlined_call_operand.vmem [shape: f32[2,1,128], index: 8, kind: input, shape index: {}]   ;;  %s5756_s9 = inlined_call_operand.vmem [shape: f32[2,1,128], index: 9, kind: input, shape index: {}]   ;;  %s5757_s10 = inlined_call_operand.hbm [shape: f32[2,1,128], index: 10, kind: input, shape index: {}]   ;;  %s5758_s11 = inlined_call_operand.hbm [shape: bf16[2,128,512], index: 11, kind: input, shape index: {}]   ;;  %s5759_s12 = inlined_call_operand.vmem [shape: f32[2,1,512], index: 12, kind: input, shape index: {}]   ;;  %s5760_s13 = inlined_call_operand.hbm [shape: bf16[2,512,128], index: 13, kind: input, shape index: {}]   ;;  %s5761_s14 = inlined_call_operand.vmem [shape: f32[2,1,128], index: 14, kind: input, shape index: {}]   ;;  %s5762_s15 = inlined_call_operand.vmem [shape: f32[1,128], index: 15, kind: input, shape index: {}]   ;;  %s5763_s16 = inlined_call_operand.vmem [shape: f32[1,128], index: 16, kind: input, shape index: {}]   ;;  %s5764_s17 = inlined_call_operand.hbm [shape: f32[2,8,128], index: 17, kind: output, shape index: {}]  }
   0x1   :  { %5775 = sst [smem:[#allocation31_spill]] %s5747_s0 }
   0x2   :  { %5776 = sst [smem:[#allocation32_spill]] %s5748_s1 }
   0x3   :  { %5777 = sst [smem:[#allocation33_spill]] %s5750_s3 }
   0x4   :  { %5778 = sst [smem:[#allocation34_spill]] %s5752_s5 }
   0x5   :  { %5779 = sst [smem:[#allocation35_spill]] %s5762_s15 }
   0x6   :  { %5780 = sst [smem:[#allocation36_spill]] %s5763_s16 }
   0x7   :  { %5781 = sst [smem:[#allocation37_spill]] %s5764_s17 }
   0x8   :  { %22 = vsyncpa [#allocation3], 0 }
   0x9   :  { %23 = vsyncpa [#allocation6], 0 }
   0xa   :  { %24 = vsyncpa [#allocation9], 0 }
   0xb   :  { %25 = vsyncpa [#allocation12], 0 }
   0xc   :  { %26 = vsyncpa [#allocation15], 0 }
   0xd   :  { %27 = vsyncpa [#allocation4], 0 }
   0xe   :  { %29 = vsyncpa [#allocation4 + $0x1], 0  ;;  %s5321_s24 = smov 0   ;;  %s5323_s25 = smov 0  }
   0xf   :  { %s5325_s26 = smov 0   ;;  %s5327_s27 = smov 0  }
  0x10 LB: > { %5782 = sst [smem:[#allocation23_spill]] %s5195_s24  ;;  %s5342_s28 = sadd.s32 4294967295, %s5207_s27   ;;  %s5207_s27 = sphi %s5327_s27, %s5806_s27   ;;  %s5203_s26 = sphi %s5325_s26, %s5809_s26   ;;  %s5199_s25 = sphi %s5323_s25, %s5808_s25   ;;  %s5195_s24 = sphi %s5321_s24, %s5807_s24  }
  0x11   : > { %5783 = sst [smem:[#allocation24_spill]] %s5199_s25  ;;  %s3559_s29 = sadd.s32 4294967294, %s5207_s27  }
  0x12   : > { %5784 = sst [smem:[#allocation25_spill]] %s5203_s26  ;;  %s5346_s0 = sadd.s32 1, %s5207_s27  }
  0x13   : > { %5785 = sst [smem:[#allocation26_spill]] %s5207_s27  ;;  %s404_s30 = sadd.s32 1, %s5203_s26 }
  0x14   : > { %5786 = sst [smem:[#allocation27_spill]] %s5346_s0  ;;  %s401_s18 = ssub.s32 %s5207_s27, %s5346_s0 }
  0x15   : > { %p414_p0 = scmp.ne.s32.totalorder %s5203_s26, %s5199_s25  ;;  %p402_p1 = scmp.eq.s32.totalorder %s401_s18, 0 }
  0x16   : > { %p415_p2 = scmp.eq.s32.totalorder %s5342_s28, 1  ;;  %p420_p3 = scmp.ne.s32.totalorder %s5199_s25, %s5195_s24 }
  0x17   : > { %p421_p4 = scmp.eq.s32.totalorder %s3559_s29, 1  ;;  %p3560_p7 = scmp.ge.s32.totalorder %s5207_s27, 1 }
  0x18   : > { %s5357_s19 = scalar_select %p402_p1, %s5203_s26, %s404_s30  }
  0x19   : > { %p5359_p5 = por %p415_p2, %p414_p0  ;;  %p5363_p6 = por %p421_p4, %p420_p3 }
  0x1a   : > { %5787 = sst [smem:[#allocation28_spill]] %s5357_s19  ;;  %p428_p8 = scmp.lt.s32.totalorder %s5207_s27, 3 }
  0x1b   : > { %s5788_s1 = scalar_select %p5359_p5, 1, 0 }
  0x1c   : > { %s5790_s20 = scalar_select %p5363_p6, 1, 0 }
  0x1d   : > { %5789 = sst [smem:[#allocation29_spill]] %s5788_s1  ;;  %p4723_p9 = scmp.eq.s32.totalorder %s5342_s28, 0 }
  0x1e   : > { %5791 = sst [smem:[#allocation30_spill]] %s5790_s20  ;;  %p5370_p10 = pnand %p3560_p7, %p428_p8 }
  0x1f   : > { %s5793_s3 = sld [smem:[#allocation33_spill]]  ;;  %s5209_s30 = smov [#allocation5]  }
  0x20   : > { %p4694_p11 = pneg %p5370_p10  ;;  %s458_s18 = sshll.u32 %s5209_s30, 4  ;;  %s459_s18 = int_to_ptr.vmem [resolvable:$true] %s458_s18 }
  0x21   : > { %s5795_s5 = sld [smem:[#allocation34_spill]]  ;;  %s5210_s22 = smov 16  }
  0x22   : > { %p5381_p12 = pnand %p4723_p9, %p4694_p11  ;;  %s5211_s23 = smov 1  }
  0x23   : > { %s5212_s30 = smov [#allocation8]   ;;  %s5213_s24 = smov 192  }
  0x24   : > { %s5214_s27 = smov 12   ;;  %s5215_s16 = smov [#allocation11]  }
  0x25   : > { %s456_s29 = sshll.u32 %s5793_s3, 4  ;;  %s486_s3 = sshll.u32 %s5212_s30, 4  ;;  %s457_s29 = int_to_ptr.hbm [resolvable:$true] %s456_s29  ;;  %s487_s3 = int_to_ptr.vmem [resolvable:$true] %s486_s3 }
  0x26   : > { %4700 = dma.hbm_to_vmem [thread:$0]  (!%p5381_p12), %s457_s29, 32, %s459_s18, [#allocation6], %s5210_s22, %s5210_s22, %s5211_s23  }
  0x27   : > { %s484_s20 = sshll.u32 %s5795_s5, 4  ;;  %s521_s5 = sshll.u32 %s5757_s10, 4  ;;  %s485_s20 = int_to_ptr.hbm [resolvable:$true] %s484_s20  ;;  %s522_s5 = int_to_ptr.hbm [resolvable:$true] %s521_s5 }
  0x28   : > { %4706 = dma.hbm_to_vmem [thread:$0]  (!%p5381_p12), %s485_s20, 6144, %s487_s3, [#allocation9], %s5213_s24, %s5213_s24, %s5214_s27  }
  0x29   : > { %s523_s1 = sshll.u32 %s5215_s16, 4  ;;  %s5796_s25 = sld [smem:[#allocation32_spill]]  ;;  %s524_s1 = int_to_ptr.vmem [resolvable:$true] %s523_s1 }
  0x2a   : > { %4712 = dma.hbm_to_vmem [thread:$0]  (!%p5381_p12), %s522_s5, 32, %s524_s1, [#allocation12], %s5210_s22, %s5210_s22, %s5211_s23  }
  0x2b   : > { %s5216_s3 = smov [#allocation2]   ;;  %s5217_s27 = smov 64  }
  0x2c   : > { %s441_s24 = sshll.u32 %s5216_s3, 4  ;;  %s5218_s20 = smov 4   ;;  %s442_s24 = int_to_ptr.vmem [resolvable:$true] %s441_s24 }
  0x2d   : > { %s470_s17 = sshll.u32 %s5751_s4, 4  ;;  %s501_s30 = sshll.u32 %s5754_s7, 4  ;;  %s471_s17 = int_to_ptr.hbm [resolvable:$true] %s470_s17  ;;  %s502_s30 = int_to_ptr.hbm [resolvable:$true] %s501_s30 }
  0x2e   : > { %s5220_s26 = smov [#allocation10]   ;;  %s5221_s15 = smov [#allocation13]  }
  0x2f   : > { %s439_s29 = sshll.u32 %s5796_s25, 4  ;;  %s5219_s25 = smov [#allocation7]   ;;  %s440_s29 = int_to_ptr.hbm [resolvable:$true] %s439_s29 }
  0x30   : > { %4697 = dma.hbm_to_vmem [thread:$0]  (!%p5381_p12), %s440_s29, 2048, %s442_s24, [#allocation3], %s5217_s27, %s5217_s27, %s5218_s20  }
  0x31   : > { %s472_s18 = sshll.u32 %s5219_s25, 4  ;;  %s503_s0 = sshll.u32 %s5220_s26, 4  ;;  %s473_s18 = int_to_ptr.vmem [resolvable:$true] %s472_s18  ;;  %s504_s0 = int_to_ptr.vmem [resolvable:$true] %s503_s0 }
  0x32   : > { %4703 = dma.hbm_to_vmem [thread:$0]  (!%p5381_p12), %s471_s17, 32, %s473_s18, [#allocation6], %s5210_s22, %s5210_s22, %s5211_s23  }
  0x33   : > { %s535_s24 = sshll.u32 %s5758_s11, 4  ;;  %s537_s16 = sshll.u32 %s5221_s15, 4  ;;  %s536_s24 = int_to_ptr.hbm [resolvable:$true] %s535_s24  ;;  %s538_s16 = int_to_ptr.vmem [resolvable:$true] %s537_s16 }
  0x34   : > { %4709 = dma.hbm_to_vmem [thread:$0]  (!%p5381_p12), %s502_s30, 2048, %s504_s0, [#allocation9], %s5217_s27, %s5217_s27, %s5218_s20  }
  0x35   : > { %s552_s23 = sshll.u32 %s5760_s13, 4  ;;  %s5222_s17 = smov 256   ;;  %s553_s23 = int_to_ptr.hbm [resolvable:$true] %s552_s23 }
  0x36   : > { %4715 = dma.hbm_to_vmem [thread:$0]  (!%p5381_p12), %s536_s24, 8192, %s538_s16, [#allocation12], %s5222_s17, %s5222_s17, %s5210_s22  }
  0x37   : > { %s5223_s18 = smov [#allocation14]   ;;  %586 = sbr.rel (%p5370_p10) target bundleno = 4710 (0x1266), region = 88 }
  0x38   : > { %s554_s1 = sshll.u32 %s5223_s18, 4  ;;  %s555_s1 = int_to_ptr.vmem [resolvable:$true] %s554_s1 }
  0x39   : > { %4718 = dma.hbm_to_vmem [thread:$0]  (!%p5381_p12), %s553_s23, 8192, %s555_s1, [#allocation15], %s5217_s27, %s5217_s27, %s5218_s20  }
  0x3c   : > { %5170 = dma.done.wait (%p4723_p9), [#allocation3], 2048  }
  0x3d   : > { %5172 = vsyncadd (%p4723_p9), [#allocation3], 4294965248 }
  0x3e   : > { %5174 = dma.done.wait (%p4723_p9), [#allocation6], 64  }
  0x3f   : > { %5176 = vsyncadd (%p4723_p9), [#allocation6], 4294967232 }
  0x40   : > { %5178 = dma.done.wait (%p4723_p9), [#allocation9], 8192  }
  0x41   : > { %5180 = vsyncadd (%p4723_p9), [#allocation9], 4294959104 }
  0x42   : > { %5182 = dma.done.wait (%p4723_p9), [#allocation12], 8224  }
  0x43   : > { %5184 = vsyncadd (%p4723_p9), [#allocation12], 4294959072 }
  0x44   : > { %5186 = dma.done.wait (%p4723_p9), [#allocation15], 8192  }
  0x45   : > { %5188 = vsyncadd (%p4723_p9), [#allocation15], 4294959104  ;;  %p673_p13 = scmp.lt.s32.totalorder %s5342_s28, 1  ;;  %v5224_v0 = vmov 0   ;;  %s5797_s20 = sld [smem:[#allocation31_spill]]  ;;  %v4459_v2 = vld [vmem:[#allocation2 + $0x38] sm:$0xff]  ;;  %v679_v18 = vlaneseq }
  0x46   : > { %4794 = vset.pattern.permute.xlu0 %v5224_v0  ;;  %v4467_v3 = vld [vmem:[#allocation2 + $0x78] sm:$0xff]  ;;  %822 = vmatpush.bf16.msra.mxu0 %v4459_v2  ;;  %v4458_v4 = vld [vmem:[#allocation2 + $0x30] sm:$0xff]  ;;  %v4457_v6 = vld [vmem:[#allocation2 + $0x28] sm:$0xff]  ;;  %v5225_v22 = vmov 1.0|1.0   ;;  %v5226_v30 = vmov 128.0  }
  0x47   : > { %s674_s19 = scalar_select %p673_p13, %s5342_s28, 1  ;;  %835 = vmatpush.bf16.msra.mxu1 %v4467_v3  ;;  %v4466_v5 = vld [vmem:[#allocation2 + $0x70] sm:$0xff]  ;;  %v4465_v7 = vld [vmem:[#allocation2 + $0x68] sm:$0xff]  ;;  %v4456_v8 = vld [vmem:[#allocation2 + $0x20] sm:$0xff]  ;;  %v5469_v19 = vand.u32 127, %v679_v18  ;;  %4809 = vrcp.f32 %v5226_v30  ;;  %vm1137_vm8 = vcmask 1043456  }
  0x48   : > { %v4464_v9 = vld [vmem:[#allocation2 + $0x60] sm:$0xff]  ;;  %v4455_v10 = vld [vmem:[#allocation2 + $0x18] sm:$0xff]  ;;  %v4454_v12 = vld [vmem:[#allocation2 + $0x10] sm:$0xff]  ;;  %vm1101_vm9 = vcmask 261120   ;;  %s5227_s24 = smov 96   ;;  %s5228_s15 = smov 64  }
  0x49   : > { %s3580_s21 = sshll.u32 %s674_s19, 3  ;;  %v4463_v11 = vld [vmem:[#allocation2 + $0x58] sm:$0xff]  ;;  %v4462_v13 = vld [vmem:[#allocation2 + $0x50] sm:$0xff]  ;;  %v4453_v14 = vld [vmem:[#allocation2 + $0x8] sm:$0xff]  ;;  %v681_v20 = vadd.s32 128, %v5469_v19  ;;  %vm1121_vm11 = vcmask 64512  }
  0x4a   : > { %823 = vmatpush.bf16.msra.mxu0 %v4458_v4  ;;  %v4461_v15 = vld [vmem:[#allocation2 + $0x48] sm:$0xff]  ;;  %v4452_v16 = vld [vmem:[#allocation2] sm:$0xff]  ;;  %v4490_v32 = vld [vmem:[#allocation8 + $0xb0] sm:$0xf0]  ;;  %s5230_s16 = smov 32   ;;  %vm1338_vm12 = vcmask 523264  }
  0x4b   : > { %s676_s30 = scalar_lea.vmem %s5797_s20, %s3580_s21  ;;  %836 = vmatpush.bf16.msra.mxu1 %v4466_v5  ;;  %v4460_v17 = vld [vmem:[#allocation2 + $0x40] sm:$0xff]  ;;  %v3737_v31 = vld [vmem:[#allocation8 + $0xa8] sm:$0xf]  ;;  %v4489_v33 = vld [vmem:[#allocation8 + $0xac] sm:$0xf]  ;;  %vm1340_vm13 = vcmask 785408  }
  0x4c   : > { %v678_v1 = vld [vmem:[%s676_s30] sm:$0xff]  ;;  %v3738_v34 = vor.u32 %v4490_v32, %v3737_v31  ;;  %v3739_v35 = vld [vmem:[#allocation8 + $0xb4] sm:$0xf0]  ;;  %v3745_v36 = vld [vmem:[#allocation8 + $0xb0] sm:$0xf]  ;;  %s4449_s23 = sshll.u32 %s5342_s28, 3 }
  0x4d   : > { %683 = vperm.xlu0 %4794, %v678_v1   ;;  %v725_v23 = vld [vmem:[%s5749_s2] sm:$0xff]  ;;  %v3742_v38 = vor.u32 %v4489_v33, %v3739_v35  ;;  %v4810_v40 = vpop.eup %4809  ;;  %v3725_v50 = vld [vmem:[#allocation8 + $0x90] sm:$0xf]  ;;  %v4486_v52 = vld [vmem:[#allocation8 + $0x94] sm:$0xf]  ;;  %s5799_s1 = sld [smem:[#allocation35_spill]] }
  0x4e   : > { %824 = vmatpush.bf16.msra.mxu0 %v4457_v6  ;;  %v4491_v37 = vld [vmem:[#allocation8 + $0xb8] sm:$0xf0]  ;;  %1058 = vmatpush.bf16.msra.mxu2 %v3738_v34  ;;  %v857_v41 = vmul.f32 128.0, %v4810_v40  ;;  %vm861_vm4 = vweird.f32 %v4810_v40  ;;  %v3727_v54 = vld [vmem:[#allocation8 + $0x9c] sm:$0xf0]  ;;  %s5800_s22 = sld [smem:[#allocation37_spill]] }
  0x4f   : > { %837 = vmatpush.bf16.msra.mxu1 %v4465_v7  ;;  %v3746_v39 = vor.u32 %v4491_v37, %v3745_v36  ;;  %1071 = vmatpush.bf16.msra.mxu3 %v3742_v38  ;;  %v4487_v51 = vld [vmem:[#allocation8 + $0x98] sm:$0xf0]  ;;  %v3733_v55 = vld [vmem:[#allocation8 + $0x98] sm:$0xf]  ;;  %v4488_v56 = vld [vmem:[#allocation8 + $0xa0] sm:$0xf0]  ;;  %v3730_v57 = vor.u32 %v4486_v52, %v3727_v54 }
  0x50   : > { %v858_v42 = vsub.f32 1.0, %v857_v41  ;;  %v3726_v53 = vor.u32 %v4487_v51, %v3725_v50  ;;  %v3734_v58 = vor.u32 %v4488_v56, %v3733_v55  ;;  %v3713_v59 = vld [vmem:[#allocation8 + $0x78] sm:$0xf]  ;;  %v4484_v60 = vld [vmem:[#allocation8 + $0x80] sm:$0xf0]  ;;  %s5802_s0 = sld [smem:[#allocation36_spill]] }
  0x51   : > { %v4483_v61 = vld [vmem:[#allocation8 + $0x7c] sm:$0xf]  ;;  %v3714_v62 = vor.u32 %v4484_v60, %v3713_v59  ;;  %v3715_v63 = vld [vmem:[#allocation8 + $0x84] sm:$0xf0]  ;;  %v3721_v0 = vld [vmem:[#allocation8 + $0x80] sm:$0xf] }
  0x52   : > { %825 = vmatpush.bf16.msra.mxu0 %v4456_v8  ;;  %v859_v43 = vmul.f32 %v4810_v40, %v858_v42  ;;  %1059 = vmatpush.bf16.msra.mxu2 %v3726_v53  ;;  %v4485_v1 = vld [vmem:[#allocation8 + $0x88] sm:$0xf0]  ;;  %v3718_v2 = vor.u32 %v4483_v61, %v3715_v63  ;;  %v3701_v4 = vld [vmem:[#allocation8 + $0x60] sm:$0xf]  ;;  %v4480_v6 = vld [vmem:[#allocation8 + $0x64] sm:$0xf] }
  0x53   : > { %838 = vmatpush.bf16.msra.mxu1 %v4464_v9  ;;  %1072 = vmatpush.bf16.msra.mxu3 %v3730_v57  ;;  %v3722_v3 = vor.u32 %v4485_v1, %v3721_v0  ;;  %v4481_v5 = vld [vmem:[#allocation8 + $0x68] sm:$0xf0]  ;;  %v3703_v8 = vld [vmem:[#allocation8 + $0x6c] sm:$0xf0]  ;;  %v3709_v9 = vld [vmem:[#allocation8 + $0x68] sm:$0xf] }
  0x54   : > { %v860_v44 = vadd.f32 %v4810_v40, %v859_v43  ;;  %v3702_v7 = vor.u32 %v4481_v5, %v3701_v4  ;;  %v3685_v30 = vld [vmem:[#allocation8 + $0x38] sm:$0xf]  ;;  %v4476_v31 = vld [vmem:[#allocation8 + $0x40] sm:$0xf0]  ;;  %v4471_v36 = vld [vmem:[#allocation8 + $0x1c] sm:$0xf]  ;;  %s3416_s27 = scalar_lea.hbm %s5800_s22, %s4449_s23 }
  0x55   : > { %v3686_v33 = vor.u32 %v4476_v31, %v3685_v30  ;;  %v3665_v34 = vld [vmem:[#allocation8 + $0x18] sm:$0xf]  ;;  %v4472_v35 = vld [vmem:[#allocation8 + $0x20] sm:$0xf0]  ;;  %v3667_v38 = vld [vmem:[#allocation8 + $0x24] sm:$0xf0] }
  0x56   : > { %826 = vmatpush.bf16.msra.mxu0 %v4455_v10  ;;  %v5479_v45 = vsel %vm861_vm4, %v4810_v40, %v860_v44  ;;  %1060 = vmatpush.bf16.msra.mxu2 %v3714_v62  ;;  %v4482_v10 = vld [vmem:[#allocation8 + $0x70] sm:$0xf0]  ;;  %v3666_v37 = vor.u32 %v4472_v35, %v3665_v34  ;;  %v4473_v40 = vld [vmem:[#allocation8 + $0x28] sm:$0xf0]  ;;  %v3670_v41 = vor.u32 %v4471_v36, %v3667_v38  ;;  %v3653_v43 = vld [vmem:[#allocation8] sm:$0xf] }
  0x57   : > { %839 = vmatpush.bf16.msra.mxu1 %v4463_v11  ;;  %1073 = vmatpush.bf16.msra.mxu3 %v3718_v2  ;;  %v3706_v11 = vor.u32 %v4480_v6, %v3703_v8  ;;  %v4469_v44 = vld [vmem:[#allocation8 + $0x8] sm:$0xf0]  ;;  %v3661_v50 = vld [vmem:[#allocation8 + $0x8] sm:$0xf]  ;;  %v4470_v51 = vld [vmem:[#allocation8 + $0x10] sm:$0xf0] }
  0x58   : > { %v3662_v53 = vor.u32 %v4470_v51, %v3661_v50  ;;  %v4795_v63 = vld [vmem:[#allocation5] ss:$0 sm:$0xff]  ;;  %v4796_v2 = vld [vmem:[#allocation7] ss:$0 sm:$0xff]  ;;  %v849_v31 = vshrl.u32 %v679_v18, 7  ;;  %s3420_s3 = sshll.u32 %s3416_s27, 4  ;;  %s3421_s3 = int_to_ptr.hbm [resolvable:$true] %s3420_s3 }
  0x59   : > { %v922_v6 = vld [vmem:[%s5753_s6] sm:$0x7]  ;;  %s5145_s18 = scalar_lea.hbm %s5800_s22, 16 }
  0x5a   : > { %827 = vmatpush.bf16.msra.mxu0 %v4454_v12  ;;  %v3710_v12 = vor.u32 %v4482_v10, %v3709_v9  ;;  %1061 = vmatpush.bf16.msra.mxu2 %v3702_v7  ;;  %v926_v7 = vperm.slane %v922_v6, 2  ;;  %v925_v10 = vperm.slane %v922_v6, 1  ;;  %vm850_vm10 = vcmp.le.s32.totalorder %v5469_v19, %v849_v31 }
  0x5b   : > { %840 = vmatpush.bf16.msra.mxu1 %v4462_v13  ;;  %1074 = vmatpush.bf16.msra.mxu3 %v3706_v11  ;;  %v3689_v13 = vld [vmem:[#allocation8 + $0x48] sm:$0xf] }
  0x5e   : > { %828 = vmatpush.bf16.msra.mxu0 %v4453_v14  ;;  %v4478_v14 = vld [vmem:[#allocation8 + $0x50] sm:$0xf0] }
  0x5f   : > { %841 = vmatpush.bf16.msra.mxu1 %v4461_v15  ;;  %v4477_v15 = vld [vmem:[#allocation8 + $0x4c] sm:$0xf] }
  0x62   : > { %829 = vmatpush.bf16.msra.mxu0 %v4452_v16  ;;  %v3690_v16 = vor.u32 %v4478_v14, %v3689_v13 }
  0x63   : > { %842 = vmatpush.bf16.msra.mxu1 %v4460_v17  ;;  %v3691_v17 = vld [vmem:[#allocation8 + $0x54] sm:$0xf0] }
  0x64   : > { %1062 = vmatpush.bf16.msra.mxu2 %v3690_v16 }
  0x66   : > { %1084 = vmatpush.bf16.msrb.mxu0 %v3746_v39  ;;  %v3673_v39 = vld [vmem:[#allocation8 + $0x20] sm:$0xf] }
  0x67   : > { %v3674_v42 = vor.u32 %v4473_v40, %v3673_v39 }
  0x6a   : > { %1085 = vmatpush.bf16.msrb.mxu0 %v3734_v58 }
  0x6e   : > { %1086 = vmatpush.bf16.msrb.mxu0 %v3722_v3 }
  0x72   : > { %1087 = vmatpush.bf16.msrb.mxu0 %v3710_v12  ;;  %v924_v12 = vperm.slane %v922_v6, 0 }
  0xbf   : > { %v684_v21 = vpop.permute.xlu0 %683 }
  0xc0   : > { %vm685_vm0 = vcmp.eq.s32.totalorder %v5469_v19, %v684_v21  ;;  %vm686_vm1 = vcmp.eq.s32.totalorder %v681_v20, %v684_v21  ;;  %v3697_v20 = vld [vmem:[#allocation8 + $0x50] sm:$0xf]  ;;  %v4479_v21 = vld [vmem:[#allocation8 + $0x58] sm:$0xf0] }
  0xc1   : > { %vm3647_vm2 = vmpackc.low %vm685_vm0, %vm685_vm0 }
  0xc2   : > { %3648 = vmatmul.msk.bf16.vlgmr.msra.gmra.mxu0 %vm3647_vm2, %v5225_v22  ;;  %vm3649_vm3 = vmpackc.low %vm686_vm1, %vm686_vm1 }
  0xc3   : > { %3650 = vmatmul.msk.bf16.vlgmr.msra.gmra.mxu1 %vm3649_vm3, %v5225_v22  ;;  %v3694_v22 = vor.u32 %v4477_v15, %v3691_v17 }
  0xc5   : > { %1075 = vmatpush.bf16.msra.mxu3 %v3694_v22 }
 0x13f   : > { %v831_v24 = vpop.f32.mrf.mxu0 }
 0x140   : > { %v832_v25 = vadd.f32 %v831_v24, %v725_v23  ;;  %v844_v26 = vpop.f32.mrf.mxu1  ;;  %v3698_v23 = vor.u32 %v4479_v21, %v3697_v20  ;;  %v3677_v24 = vld [vmem:[#allocation8 + $0x30] sm:$0xf] }
 0x142   : > { %v5476_v27 = vadd.f32 %v844_v26, %v832_v25  ;;  %1088 = vmatpush.bf16.msrb.mxu0 %v3698_v23  ;;  %v4475_v25 = vld [vmem:[#allocation8 + $0x38] sm:$0xf0]  ;;  %v4474_v26 = vld [vmem:[#allocation8 + $0x34] sm:$0xf] }
 0x144   : > { %854 = vadd.xlane.f32.xlu0 %v5476_v27 }
 0x146   : > { %1089 = vmatpush.bf16.msrb.mxu0 %v3686_v33 }
 0x147   : > { %v833_v28 = vpop.f32.mrf.mxu0 }
 0x148   : > { %v846_v29 = vpop.f32.mrf.mxu1  ;;  %v3678_v28 = vor.u32 %v4475_v25, %v3677_v24 }
 0x149   : > { %v3679_v29 = vld [vmem:[#allocation8 + $0x3c] sm:$0xf0] }
 0x14a   : > { %v3682_v32 = vor.u32 %v4474_v26, %v3679_v29  ;;  %1063 = vmatpush.bf16.msra.mxu2 %v3678_v28  ;;  %1090 = vmatpush.bf16.msrb.mxu0 %v3674_v42 }
 0x14c   : > { %1076 = vmatpush.bf16.msra.mxu3 %v3682_v32  ;;  %v5229_v32 = vmov -1e+09  }
 0x14d   : > { %v5504_v33 = vsel %vm850_vm10, 0.0, %v5229_v32 }
 0x14e   : > { %1064 = vmatpush.bf16.msra.mxu2 %v3666_v37  ;;  %1091 = vmatpush.bf16.msrb.mxu0 %v3662_v53 }
 0x150   : > { %1077 = vmatpush.bf16.msra.mxu3 %v3670_v41 }
 0x1b7   : > { %v855_v46 = vpop.xlane.xlu0 %854 }
 0x1b8   : > { %v863_v47 = vmul.f32 %v5479_v45, %v855_v46  ;;  %v4468_v46 = vld [vmem:[#allocation8 + $0x4] sm:$0xf] }
 0x1ba   : > { %v5483_v48 = vsub.f32 %v5476_v27, %v863_v47  ;;  %v3654_v47 = vor.u32 %v4469_v44, %v3653_v43 }
 0x1bc   : > { %v865_v49 = vmul.f32 %v5483_v48, %v5483_v48  ;;  %1065 = vmatpush.bf16.msra.mxu2 %v3654_v47 }
 0x1be   : > { %866 = vadd.xlane.f32.xlu1 %v865_v49  ;;  %v3655_v49 = vld [vmem:[#allocation8 + $0xc] sm:$0xf0] }
 0x1bf   : > { %v3658_v52 = vor.u32 %v4468_v46, %v3655_v49 }
 0x1c1   : > { %1078 = vmatpush.bf16.msra.mxu3 %v3658_v52 }
 0x231   : > { %v867_v54 = vpop.xlane.xlu1 %866 }
 0x232   : > { %v868_v55 = vmul.f32 %v867_v54, %v5479_v45 }
 0x234   : > { %v869_v56 = vadd.f32 1e-05, %v868_v55 }
 0x236   : > { %4811 = vrsqrt.f32 %v869_v56  ;;  %vm876_vm6 = vweird.f32 %v869_v56 }
 0x23c   : > { %v4812_v57 = vpop.eup %4811 }
 0x23d   : > { %v871_v58 = vmul.f32 %v4812_v57, %v869_v56  ;;  %vm877_vm5 = vweird.f32 %v4812_v57 }
 0x23e   : > { %vm878_vm7 = vmor %vm876_vm6, %vm877_vm5 }
 0x23f   : > { %v872_v59 = vmul.f32 %v4812_v57, %v871_v58 }
 0x241   : > { %v873_v60 = vmul.f32 0.5, %v872_v59 }
 0x243   : > { %v874_v61 = vsub.f32 1.5, %v873_v60 }
 0x245   : > { %v875_v62 = vmul.f32 %v4812_v57, %v874_v61 }
 0x247   : > { %v879_v0 = vsel %vm878_vm7, %v4812_v57, %v875_v62 }
 0x248   : > { %v880_v1 = vmul.f32 %v879_v0, %v5483_v48 }
 0x24a   : > { %v884_v3 = vmul.f32 %v4795_v63, %v880_v1 }
 0x24c   : > { %v888_v4 = vadd.f32 %v4796_v2, %v884_v3 }
 0x24e   : > { %v889_v5 = vpack.c.bf16 %v888_v4, %v888_v4 }
 0x250   : > { %1066 = vmatmul.bf16.vlgmr.msra.gmra.mxu2 %v889_v5  ;;  %1079 = vmatmul.bf16.vlgmr.msra.gmra.mxu3 %v889_v5 }
 0x251   : > { %1092 = vmatmul.bf16.vlgmr.msrb.gmra.mxu0 %v889_v5 }
 0x2ce   : > { %v1093_v8 = vpop.f32.mrf.mxu0 }
 0x2cf   : > { %v1094_v9 = vadd.f32 %v1093_v8, %v926_v7 }
 0x2d1   : > { %v5492_v11 = vpack.c.bf16 %v1094_v9, %v1094_v9 }
 0x2d3   : > { %v1067_v48 = vpop.f32.mrf.mxu2  ;;  %v1080_v13 = vpop.f32.mrf.mxu3  ;;  %v1139_v14 = vsel %vm1137_vm8, %v5492_v11, 0 }
 0x2d4   : > { %v1081_v15 = vadd.f32 %v1080_v13, %v925_v10  ;;  %1148 = vmatpush.bf16.msrb.mxu3 %v1139_v14  ;;  %v1068_v16 = vadd.f32 %v1067_v48, %v924_v12 }
 0x2d6   : > { %v1099_v17 = vpack.c.bf16 %v1081_v15, %v1081_v15  ;;  %v1095_v20 = vpop.f32.mrf.mxu0  ;;  %v1097_v22 = vmul.f32 0.17677669, %v1068_v16 }
 0x2d8   : > { %1158 = vrot.lane.b32.xlu2 %v1099_v17, %s5227_s24  ;;  %v1106_v21 = vsel %vm1101_vm9, %v1099_v17, 0  ;;  %v1098_v25 = vpack.c.bf16 %v1097_v22, %v1097_v22 }
 0x2d9   : > { %1115 = vmatpush.bf16.xpose.msrb.mxu1 %v1106_v21 }
 0x2db   : > { %v1069_v23 = vpop.f32.mrf.mxu2  ;;  %v1082_v24 = vpop.f32.mrf.mxu3 }
 0x2e0   : > { %1215 = vrot.lane.b32.xlu2 %v1099_v17, %s5228_s15  ;;  %3747 = vmatmul.msk.bf16.vlgmr.msrb.gmra.mxu1 %vm1101_vm9, %v1098_v25 }
 0x332   : > { %v1159_v26 = vpop.permute.xlu2 %1158 }
 0x333   : > { %v1164_v28 = vsel %vm1101_vm9, %v1159_v26, 0 }
 0x334   : > { %1173 = vmatpush.bf16.xpose.msra.mxu3 %v1164_v28 }
 0x33a   : > { %v1216_v29 = vpop.permute.xlu2 %1215 }
 0x33b   : > { %v1221_v30 = vsel %vm1101_vm9, %v1216_v29, 0 }
 0x33c   : > { %1230 = vmatpush.bf16.xpose.msrb.mxu2 %v1221_v30 }
 0x35d   : > { %v1117_v34 = vpop.f32.mrf.mxu1 }
 0x35e   : > { %v1118_v35 = vadd.f32 %v1117_v34, %v5504_v33 }
 0x360   : > { %v1122_v36 = vsel %vm1121_vm11, %v1118_v35, -inf }
 0x361   : > { %1123 = vmax.xlane.f32.xlu1 %v1122_v36 }
 0x365   : > { %v1119_v37 = vpop.f32.mrf.mxu1 }
 0x37a   : > { %1155 = vrot.lane.b32.xlu1 %v1098_v25, %s5227_s24 }
 0x382   : > { %1271 = vrot.lane.b32.xlu1 %v1099_v17, %s5230_s16 }
 0x3d4   : > { %v1124_v38 = vpop.xlane.xlu1 %1123 }
 0x3d5   : > { %v1125_v18 = vsub.f32 %v1118_v35, %v1124_v38 }
 0x3d7   : > { %v1126_v39 = vmul.f32 1.442695, %v1125_v18 }
 0x3d9   : > { %4813 = vpow2.f32 %v1126_v39 }
 0x3df   : > { %v4814_v19 = vpop.eup %4813 }
 0x3e0   : > { %v1128_v40 = vsel %vm1121_vm11, %v4814_v19, 0.0 }
 0x3e1   : > { %1129 = vadd.xlane.f32.xlu2 %v1128_v40 }
 0x3ec   : > { %v1156_v41 = vpop.permute.xlu1 %1155 }
 0x3f4   : > { %v1272_v42 = vpop.permute.xlu1 %1271 }
 0x3f5   : > { %v1277_v43 = vsel %vm1101_vm9, %v1272_v42, 0  ;;  %v4499_v42 = vld [vmem:[#allocation10 + $0x38] sm:$0xff] }
 0x3f6   : > { %1286 = vmatpush.bf16.xpose.msra.mxu0 %v1277_v43  ;;  %1407 = vmatpush.bf16.msra.mxu2 %v4499_v42  ;;  %v4498_v43 = vld [vmem:[#allocation10 + $0x30] sm:$0xff]  ;;  %v4516_v42 = vld [vmem:[#allocation13 + $0x84] sm:$0xf] }
 0x3f9   : > { %1213 = vrot.lane.b32.xlu2 %v1098_v25, %s5228_s15 }
 0x3fa   : > { %1408 = vmatpush.bf16.msra.mxu2 %v4498_v43 }
 0x401   : > { %1269 = vrot.lane.b32.xlu2 %v1098_v25, %s5230_s16 }
 0x454   : > { %v1130_v44 = vpop.xlane.xlu2 %1129 }
 0x455   : > { %4815 = vrcp.f32 %v1130_v44  ;;  %v4497_v44 = vld [vmem:[#allocation10 + $0x28] sm:$0xff] }
 0x456   : > { %1409 = vmatpush.bf16.msra.mxu2 %v4497_v44  ;;  %v3855_v44 = vld [vmem:[#allocation13 + $0x90] sm:$0xf0] }
 0x45b   : > { %v4816_v46 = vpop.eup %4815 }
 0x45c   : > { %v1132_v47 = vmul.f32 %v4816_v46, %v4814_v19  ;;  %v1214_v49 = vpop.permute.xlu2 %1213  ;;  %v4496_v46 = vld [vmem:[#allocation10 + $0x20] sm:$0xff] }
 0x45d   : > { %3751 = vmatmul.msk.bf16.vlgmr.msrb.gmra.mxu2 %vm1101_vm9, %v1214_v49  ;;  %v4494_v49 = vld [vmem:[#allocation10 + $0x10] sm:$0xff] }
 0x45e   : > { %v1133_v50 = vpack.c.bf16 %v1132_v47, %v1132_v47  ;;  %1410 = vmatpush.bf16.msra.mxu2 %v4496_v46  ;;  %v4495_v47 = vld [vmem:[#allocation10 + $0x18] sm:$0xff]  ;;  %v3861_v46 = vld [vmem:[#allocation13 + $0x88] sm:$0xf] }
 0x460   : > { %3748 = vmatmul.msk.bf16.vlgmr.msrb.gmra.mxu3 %vm1121_vm11, %v1133_v50  ;;  %v4493_v50 = vld [vmem:[#allocation10 + $0x8] sm:$0xff] }
 0x462   : > { %1411 = vmatpush.bf16.msra.mxu2 %v4495_v47  ;;  %v4519_v47 = vld [vmem:[#allocation13 + $0x94] sm:$0xf0] }
 0x464   : > { %v1270_v51 = vpop.permute.xlu2 %1269 }
 0x465   : > { %3753 = vmatmul.msk.bf16.vlgmr.msra.gmra.mxu0 %vm1101_vm9, %v1270_v51  ;;  %v4492_v51 = vld [vmem:[#allocation10] sm:$0xff] }
 0x466   : > { %1412 = vmatpush.bf16.msra.mxu2 %v4494_v49  ;;  %v3858_v49 = vor.u32 %v4516_v42, %v3855_v44 }
 0x46a   : > { %1413 = vmatpush.bf16.msra.mxu2 %v4493_v50  ;;  %v3862_v50 = vor.u32 %v4519_v47, %v3861_v46 }
 0x46e   : > { %1414 = vmatpush.bf16.msra.mxu2 %v4492_v51  ;;  %v4517_v51 = vld [vmem:[#allocation13 + $0x8c] sm:$0xf] }
 0x470   : > { %3749 = vmatmul.msk.bf16.vlgmr.msra.gmra.mxu3 %vm1101_vm9, %v1156_v41 }
 0x4e0   : > { %v1232_v52 = vpop.f32.mrf.mxu2 }
 0x4e1   : > { %v1233_v53 = vadd.f32 %v1232_v52, %v5504_v33 }
 0x4e2   : > { %v1288_v54 = vpop.f32.mrf.mxu0 }
 0x4e3   : > { %v1289_v55 = vadd.f32 %v1288_v54, %v5504_v33  ;;  %v5520_v56 = vpop.f32.mrf.mxu3  ;;  %v1236_v57 = vsel %vm1121_vm11, %v1233_v53, -inf }
 0x4e4   : > { %1237 = vmax.xlane.f32.xlu0 %v1236_v57 }
 0x4e5   : > { %v1292_v58 = vsel %vm1121_vm11, %v1289_v55, -inf }
 0x4e6   : > { %1293 = vmax.xlane.f32.xlu2 %v1292_v58 }
 0x4e8   : > { %v1234_v59 = vpop.f32.mrf.mxu2 }
 0x4ea   : > { %v1290_v60 = vpop.f32.mrf.mxu0 }
 0x4eb   : > { %v1152_v61 = vpop.f32.mrf.mxu3  ;;  %v4797_v60 = vld [vmem:[%s5755_s8] ss:$0 sm:$0xff] }
 0x4f3   : > { %v1175_v62 = vpop.f32.mrf.mxu3 }
 0x4f4   : > { %v1176_v63 = vadd.f32 %v1175_v62, %v5504_v33 }
 0x4f6   : > { %v1179_v0 = vsel %vm1121_vm11, %v1176_v63, -inf }
 0x4f7   : > { %1180 = vmax.xlane.f32.xlu1 %v1179_v0  ;;  %v3901_v0 = vld [vmem:[#allocation13 + $0xe0] sm:$0xf] }
 0x4fb   : > { %v1177_v1 = vpop.f32.mrf.mxu3 }
 0x4fc   : > { %v4530_v1 = vld [vmem:[#allocation13 + $0xec] sm:$0xf0] }
 0x4fe   : > { %1248 = vrot.lane.b32.xlu2 %v5492_v11, %s5228_s15 }
 0x557   : > { %v1238_v14 = vpop.xlane.xlu0 %1237 }
 0x558   : > { %v1239_v15 = vsub.f32 %v1233_v53, %v1238_v14 }
 0x559   : > { %v1294_v2 = vpop.xlane.xlu2 %1293 }
 0x55a   : > { %v1295_v3 = vsub.f32 %v1289_v55, %v1294_v2  ;;  %v1240_v16 = vmul.f32 1.442695, %v1239_v15  ;;  %v4528_v2 = vld [vmem:[#allocation13 + $0xe4] sm:$0xf]  ;;  %v3885_v15 = vld [vmem:[#allocation13 + $0xc0] sm:$0xf] }
 0x55c   : > { %v1296_v4 = vmul.f32 1.442695, %v1295_v3  ;;  %v3902_v3 = vor.u32 %v4530_v1, %v3901_v0  ;;  %v4513_v0 = vld [vmem:[#allocation13 + $0x6c] sm:$0xf]  ;;  %v3847_v1 = vld [vmem:[#allocation13 + $0x78] sm:$0xf0] }
 0x55e   : > { %4817 = vpow2.f32 %v1296_v4  ;;  %v3903_v4 = vld [vmem:[#allocation13 + $0xf0] sm:$0xf0] }
 0x561   : > { %v1249_v5 = vpop.permute.xlu2 %1248 }
 0x562   : > { %v1254_v6 = vsel %vm1137_vm8, %v1249_v5, 0  ;;  %v3909_v5 = vld [vmem:[#allocation13 + $0xe8] sm:$0xf] }
 0x563   : > { %1263 = vmatpush.bf16.msrb.mxu3 %v1254_v6  ;;  %v4531_v6 = vld [vmem:[#allocation13 + $0xf4] sm:$0xf0] }
 0x564   : > { %v4818_v7 = vpop.eup %4817 }
 0x565   : > { %v1298_v8 = vsel %vm1121_vm11, %v4818_v7, 0.0 }
 0x566   : > { %1299 = vadd.xlane.f32.xlu1 %v1298_v8  ;;  %v3910_v8 = vor.u32 %v4531_v6, %v3909_v5  ;;  %v4508_v5 = vld [vmem:[#allocation13 + $0x44] sm:$0xf] }
 0x567   : > { %1659 = vmatpush.bf16.msra.mxu3 %v3902_v3  ;;  %v3821_v3 = vld [vmem:[#allocation13 + $0x40] sm:$0xf] }
 0x56a   : > { %v1181_v9 = vpop.xlane.xlu1 %1180 }
 0x56b   : > { %v1182_v10 = vsub.f32 %v1176_v63, %v1181_v9  ;;  %v4529_v9 = vld [vmem:[#allocation13 + $0xec] sm:$0xf] }
 0x56d   : > { %v1183_v12 = vmul.f32 1.442695, %v1182_v10  ;;  %v3911_v10 = vld [vmem:[#allocation13 + $0xf8] sm:$0xf0] }
 0x56f   : > { %4819 = vpow2.f32 %v1183_v12  ;;  %v3914_v12 = vor.u32 %v4529_v9, %v3911_v10  ;;  %v4511_v9 = vld [vmem:[#allocation13 + $0x54] sm:$0xf0] }
 0x570   : > { %4821 = vpow2.f32 %v1240_v16  ;;  %v4526_v16 = vld [vmem:[#allocation13 + $0xcc] sm:$0xf0] }
 0x571   : > { %1698 = vmatpush.bf16.msrb.mxu2 %v3914_v12 }
 0x575   : > { %v4820_v48 = vpop.eup %4819 }
 0x576   : > { %v1185_v13 = vsel %vm1121_vm11, %v4820_v48, 0.0  ;;  %v4822_v17 = vpop.eup %4821 }
 0x577   : > { %1186 = vadd.xlane.f32.xlu0 %v1185_v13  ;;  %v1242_v20 = vsel %vm1121_vm11, %v4822_v17, 0.0 }
 0x57f   : > { %1304 = vrot.lane.b32.xlu1 %v5492_v11, %s5230_s16 }
 0x58b   : > { %1192 = vrot.lane.b32.xlu0 %v5492_v11, %s5227_s24 }
 0x5b5   : > { %1243 = vadd.xlane.f32.xlu0 %v1242_v20  ;;  %v3886_v20 = vor.u32 %v4526_v16, %v3885_v15  ;;  %v3805_v15 = vld [vmem:[#allocation13 + $0x20] sm:$0xf]  ;;  %v4506_v16 = vld [vmem:[#allocation13 + $0x2c] sm:$0xf0] }
 0x5b7   : > { %1660 = vmatpush.bf16.msra.mxu3 %v3886_v20  ;;  %v3806_v20 = vor.u32 %v4506_v16, %v3805_v15  ;;  %v4535_v16 = vld [vmem:[#allocation14 + $0x18] sm:$0xff] }
 0x5d9   : > { %v1300_v22 = vpop.xlane.xlu1 %1299 }
 0x5ea   : > { %v1187_v21 = vpop.xlane.xlu0 %1186 }
 0x5eb   : > { %4823 = vrcp.f32 %v1187_v21  ;;  %v3887_v21 = vld [vmem:[#allocation13 + $0xd0] sm:$0xf0] }
 0x5ec   : > { %4825 = vrcp.f32 %v1300_v22  ;;  %v3893_v22 = vld [vmem:[#allocation13 + $0xc8] sm:$0xf] }
 0x5f1   : > { %v4824_v23 = vpop.eup %4823  ;;  %v1305_v25 = vpop.permute.xlu1 %1304 }
 0x5f2   : > { %v1189_v24 = vmul.f32 %v4824_v23, %v4820_v48  ;;  %v1310_v29 = vsel %vm1137_vm8, %v1305_v25, 0  ;;  %v4826_v30 = vpop.eup %4825  ;;  %v4527_v23 = vld [vmem:[#allocation13 + $0xd4] sm:$0xf0] }
 0x5f3   : > { %v1302_v31 = vmul.f32 %v4826_v30, %v4818_v7  ;;  %v3906_v7 = vor.u32 %v4528_v2, %v3903_v4  ;;  %v3894_v25 = vor.u32 %v4527_v23, %v3893_v22  ;;  %v4522_v30 = vld [vmem:[#allocation13 + $0xac] sm:$0xf0]  ;;  %v3850_v2 = vor.u32 %v4513_v0, %v3847_v1  ;;  %v3813_v22 = vld [vmem:[#allocation13 + $0x28] sm:$0xf]  ;;  %v4507_v23 = vld [vmem:[#allocation13 + $0x34] sm:$0xf0] }
 0x5f4   : > { %v1190_v11 = vpack.c.bf16 %v1189_v24, %v1189_v24  ;;  %v4510_v4 = vld [vmem:[#allocation13 + $0x4c] sm:$0xf0]  ;;  %v4563_v0 = vld [vmem:[#allocation14 + $0xf8] sm:$0xff]  ;;  %v4553_v1 = vld [vmem:[#allocation14 + $0xa8] sm:$0xff] }
 0x5f5   : > { %v1303_v32 = vpack.c.bf16 %v1302_v31, %v1302_v31  ;;  %1672 = vmatpush.bf16.msrb.mxu0 %v3906_v7  ;;  %v4520_v31 = vld [vmem:[#allocation13 + $0xa4] sm:$0xf]  ;;  %v3822_v6 = vor.u32 %v4510_v4, %v3821_v3  ;;  %v3823_v7 = vld [vmem:[#allocation13 + $0x50] sm:$0xf0] }
 0x5f6   : > { %v3826_v10 = vor.u32 %v4508_v5, %v3823_v7  ;;  %v4562_v3 = vld [vmem:[#allocation14 + $0xf0] sm:$0xff]  ;;  %v4544_v4 = vld [vmem:[#allocation14 + $0x60] sm:$0xff]  ;;  %v4561_v7 = vld [vmem:[#allocation14 + $0xe8] sm:$0xff] }
 0x5f7   : > { %v4552_v5 = vld [vmem:[#allocation14 + $0xa0] sm:$0xff] }
 0x5fd   : > { %v1193_v26 = vpop.permute.xlu0 %1192 }
 0x5fe   : > { %v1198_v28 = vsel %vm1137_vm8, %v1193_v26, 0  ;;  %v4525_v26 = vld [vmem:[#allocation13 + $0xcc] sm:$0xf] }
 0x5ff   : > { %1207 = vmatpush.bf16.msra.mxu1 %v1198_v28  ;;  %v3895_v28 = vld [vmem:[#allocation13 + $0xd8] sm:$0xf0] }
 0x602   : > { %3750 = vmatmul.msk.bf16.vlgmr.msra.gmra.mxu1 %vm1121_vm11, %v1190_v11  ;;  %v3869_v11 = vld [vmem:[#allocation13 + $0xa0] sm:$0xf] }
 0x603   : > { %1319 = vmatpush.bf16.msrb.mxu1 %v1310_v29  ;;  %v3898_v29 = vor.u32 %v4525_v26, %v3895_v28  ;;  %v4505_v26 = vld [vmem:[#allocation13 + $0x2c] sm:$0xf]  ;;  %v3815_v28 = vld [vmem:[#allocation13 + $0x38] sm:$0xf0] }
 0x605   : > { %1699 = vmatpush.bf16.msrb.mxu2 %v3898_v29  ;;  %v3789_v29 = vld [vmem:[#allocation13] sm:$0xf] }
 0x607   : > { %1685 = vmatpush.bf16.msra.mxu1 %v3910_v8  ;;  %v3829_v8 = vld [vmem:[#allocation13 + $0x48] sm:$0xf] }
 0x608   : > { %v3830_v12 = vor.u32 %v4511_v9, %v3829_v8  ;;  %v4543_v8 = vld [vmem:[#allocation14 + $0x58] sm:$0xff] }
 0x609   : > { %v4551_v9 = vld [vmem:[#allocation14 + $0x98] sm:$0xff] }
 0x60b   : > { %1686 = vmatpush.bf16.msra.mxu1 %v3894_v25  ;;  %v3814_v25 = vor.u32 %v4507_v23, %v3813_v22  ;;  %v4549_v22 = vld [vmem:[#allocation14 + $0x88] sm:$0xff] }
 0x612   : > { %3754 = vmatmul.msk.bf16.vlgmr.msrb.gmra.mxu1 %vm1121_vm11, %v1303_v32  ;;  %v3870_v32 = vor.u32 %v4522_v30, %v3869_v11  ;;  %v3818_v11 = vor.u32 %v4505_v26, %v3815_v28  ;;  %v4502_v30 = vld [vmem:[#allocation13 + $0xc] sm:$0xf0] }
 0x613   : > { %v4534_v26 = vld [vmem:[#allocation14 + $0x10] sm:$0xff] }
 0x614   : > { %1661 = vmatpush.bf16.msra.mxu3 %v3870_v32  ;;  %v3791_v32 = vld [vmem:[#allocation13 + $0x10] sm:$0xf0] }
 0x615   : > { %v4558_v28 = vld [vmem:[#allocation14 + $0xd0] sm:$0xff] }
 0x628   : > { %v1244_v34 = vpop.xlane.xlu0 %1243 }
 0x629   : > { %4827 = vrcp.f32 %v1244_v34  ;;  %v3871_v34 = vld [vmem:[#allocation13 + $0xb0] sm:$0xf0] }
 0x62f   : > { %v4828_v35 = vpop.eup %4827 }
 0x630   : > { %v1246_v36 = vmul.f32 %v4828_v35, %v4822_v17  ;;  %v4524_v17 = vld [vmem:[#allocation13 + $0xc4] sm:$0xf]  ;;  %v3877_v35 = vld [vmem:[#allocation13 + $0xa8] sm:$0xf] }
 0x631   : > { %v3890_v24 = vor.u32 %v4524_v17, %v3887_v21  ;;  %v4504_v17 = vld [vmem:[#allocation13 + $0x24] sm:$0xf]  ;;  %v3807_v21 = vld [vmem:[#allocation13 + $0x30] sm:$0xf0] }
 0x632   : > { %v1247_v37 = vpack.c.bf16 %v1246_v36, %v1246_v36  ;;  %v4523_v36 = vld [vmem:[#allocation13 + $0xb4] sm:$0xf0] }
 0x633   : > { %1673 = vmatpush.bf16.msrb.mxu0 %v3890_v24  ;;  %v3810_v24 = vor.u32 %v4504_v17, %v3807_v21  ;;  %v4559_v17 = vld [vmem:[#allocation14 + $0xd8] sm:$0xff]  ;;  %v4541_v21 = vld [vmem:[#allocation14 + $0x48] sm:$0xff] }
 0x634   : > { %3752 = vmatmul.msk.bf16.vlgmr.msrb.gmra.mxu3 %vm1121_vm11, %v1247_v37  ;;  %v3874_v37 = vor.u32 %v4520_v31, %v3871_v34  ;;  %v4500_v31 = vld [vmem:[#allocation13 + $0x4] sm:$0xf]  ;;  %v3790_v34 = vor.u32 %v4502_v30, %v3789_v29 }
 0x637   : > { %1674 = vmatpush.bf16.msrb.mxu0 %v3874_v37  ;;  %v4503_v37 = vld [vmem:[#allocation13 + $0x14] sm:$0xf0] }
 0x63b   : > { %1675 = vmatpush.bf16.msrb.mxu0 %v3858_v49 }
 0x67f   : > { %v1209_v38 = vpop.f32.mrf.mxu1 }
 0x680   : > { %1326 = vrot.lane.b32.xlu2 %v1209_v38, %s5230_s16  ;;  %v3878_v38 = vor.u32 %v4523_v36, %v3877_v35  ;;  %v3794_v35 = vor.u32 %v4500_v31, %v3791_v32  ;;  %v3797_v36 = vld [vmem:[#allocation13 + $0x8] sm:$0xf]  ;;  %v4540_v31 = vld [vmem:[#allocation14 + $0x40] sm:$0xff] }
 0x681   : > { %v4548_v32 = vld [vmem:[#allocation14 + $0x80] sm:$0xff] }
 0x682   : > { %1687 = vmatpush.bf16.msra.mxu1 %v3878_v38  ;;  %v4501_v38 = vld [vmem:[#allocation13 + $0xc] sm:$0xf] }
 0x686   : > { %1688 = vmatpush.bf16.msra.mxu1 %v3862_v50 }
 0x687   : > { %v1211_v18 = vpop.f32.mrf.mxu1 }
 0x688   : > { %v4521_v18 = vld [vmem:[#allocation13 + $0xac] sm:$0xf] }
 0x68f   : > { %v1321_v39 = vpop.f32.mrf.mxu1 }
 0x690   : > { %1334 = vrot.lane.b32.xlu0 %v1321_v39, %s5227_s24  ;;  %v3879_v39 = vld [vmem:[#allocation13 + $0xb8] sm:$0xf0] }
 0x697   : > { %v1323_v19 = vpop.f32.mrf.mxu1 }
 0x698   : > { %v3882_v19 = vor.u32 %v4521_v18, %v3879_v39  ;;  %v3798_v18 = vor.u32 %v4503_v37, %v3797_v36  ;;  %v3799_v39 = vld [vmem:[#allocation13 + $0x18] sm:$0xf0]  ;;  %v4533_v37 = vld [vmem:[#allocation14 + $0x8] sm:$0xff] }
 0x69a   : > { %1700 = vmatpush.bf16.msrb.mxu2 %v3882_v19  ;;  %v3802_v19 = vor.u32 %v4501_v38, %v3799_v39  ;;  %v4557_v38 = vld [vmem:[#allocation14 + $0xc8] sm:$0xff] }
 0x6b7   : > { %v1265_v40 = vpop.f32.mrf.mxu3 }
 0x6b8   : > { %1330 = vrot.lane.b32.xlu1 %v1265_v40, %s5228_s15  ;;  %v3853_v40 = vld [vmem:[#allocation13 + $0x80] sm:$0xf] }
 0x6bf   : > { %v1267_v41 = vpop.f32.mrf.mxu3 }
 0x6c0   : > { %v4518_v41 = vld [vmem:[#allocation13 + $0x8c] sm:$0xf0] }
 0x6c1   : > { %v3854_v43 = vor.u32 %v4518_v41, %v3853_v40 }
 0x6c3   : > { %1662 = vmatpush.bf16.msra.mxu3 %v3854_v43 }
 0x6da   : > { %v1327_v52 = vpop.permute.xlu2 %1326 }
 0x6db   : > { %v1337_v53 = vsel %vm1101_vm9, %v5520_v56, %v1327_v52  ;;  %v3863_v52 = vld [vmem:[#allocation13 + $0x98] sm:$0xf0] }
 0x702   : > { %v1335_v55 = vpop.permute.xlu0 %1334 }
 0x72a   : > { %v1331_v54 = vpop.permute.xlu1 %1330 }
 0x72b   : > { %v1339_v57 = vsel %vm1338_vm12, %v1337_v53, %v1331_v54  ;;  %v3866_v53 = vor.u32 %v4517_v51, %v3863_v52  ;;  %v3837_v54 = vld [vmem:[#allocation13 + $0x60] sm:$0xf]  ;;  %v4798_v51 = vld [vmem:[%s5756_s9] ss:$0 sm:$0xff] }
 0x72c   : > { %v1341_v58 = vsel %vm1340_vm13, %v1339_v57, %v1335_v55  ;;  %v4514_v55 = vld [vmem:[#allocation13 + $0x6c] sm:$0xf0]  ;;  %v4512_v57 = vld [vmem:[#allocation13 + $0x64] sm:$0xf] }
 0x72d   : > { %v1342_v59 = vpack.c.bf16 %v1341_v58, %v1341_v58  ;;  %1701 = vmatpush.bf16.msrb.mxu2 %v3866_v53  ;;  %v3838_v58 = vor.u32 %v4514_v55, %v3837_v54  ;;  %v4799_v54 = vld [vmem:[#allocation11] ss:$0 sm:$0xff] }
 0x72f   : > { %1415 = vmatmul.bf16.vlgmr.msra.gmra.mxu2 %v1342_v59  ;;  %v3839_v59 = vld [vmem:[#allocation13 + $0x70] sm:$0xf0]  ;;  %1663 = vmatpush.bf16.msra.mxu3 %v3838_v58 }
 0x731   : > { %1702 = vmatpush.bf16.msrb.mxu2 %v3850_v2  ;;  %v4538_v2 = vld [vmem:[#allocation14 + $0x30] sm:$0xff] }
 0x733   : > { %1664 = vmatpush.bf16.msra.mxu3 %v3822_v6  ;;  %v4537_v6 = vld [vmem:[#allocation14 + $0x28] sm:$0xff] }
 0x737   : > { %1665 = vmatpush.bf16.msra.mxu3 %v3806_v20 }
 0x73b   : > { %1666 = vmatpush.bf16.msra.mxu3 %v3790_v34 }
 0x7b2   : > { %v1416_v61 = vpop.f32.mrf.mxu2 }
 0x7b3   : > { %v1420_v62 = vadd.f32 %v1416_v61, %v5476_v27  ;;  %v4515_v61 = vld [vmem:[#allocation13 + $0x74] sm:$0xf0] }
 0x7b5   : > { %v5552_v63 = vadd.f32 %v4797_v60, %v1420_v62  ;;  %v3845_v60 = vld [vmem:[#allocation13 + $0x68] sm:$0xf]  ;;  %v3842_v62 = vor.u32 %v4512_v57, %v3839_v59  ;;  %v4547_v59 = vld [vmem:[#allocation14 + $0x78] sm:$0xff] }
 0x7b7   : > { %1428 = vadd.xlane.f32.xlu2 %v5552_v63  ;;  %1676 = vmatpush.bf16.msrb.mxu0 %v3842_v62  ;;  %v4554_v62 = vld [vmem:[#allocation14 + $0xb0] sm:$0xff] }
 0x7ba   : > { %v1418_v56 = vpop.f32.mrf.mxu2 }
 0x7bb   : > { %v3846_v56 = vor.u32 %v4515_v61, %v3845_v60  ;;  %1677 = vmatpush.bf16.msrb.mxu0 %v3826_v10  ;;  %v4555_v60 = vld [vmem:[#allocation14 + $0xb8] sm:$0xff]  ;;  %v4546_v61 = vld [vmem:[#allocation14 + $0x70] sm:$0xff]  ;;  %v4536_v10 = vld [vmem:[#allocation14 + $0x20] sm:$0xff] }
 0x7bd   : > { %1689 = vmatpush.bf16.msra.mxu1 %v3846_v56  ;;  %v4539_v56 = vld [vmem:[#allocation14 + $0x38] sm:$0xff] }
 0x7be   : > { %2055 = vmatpush.bf16.msrb.mxu3 %v4539_v56 }
 0x7bf   : > { %1678 = vmatpush.bf16.msrb.mxu0 %v3810_v24 }
 0x7c1   : > { %1690 = vmatpush.bf16.msra.mxu1 %v3830_v12  ;;  %v4560_v12 = vld [vmem:[#allocation14 + $0xe0] sm:$0xff] }
 0x7c2   : > { %2056 = vmatpush.bf16.msrb.mxu3 %v4538_v2 }
 0x7c3   : > { %1679 = vmatpush.bf16.msrb.mxu0 %v3794_v35 }
 0x7c5   : > { %1691 = vmatpush.bf16.msra.mxu1 %v3814_v25 }
 0x7c6   : > { %2057 = vmatpush.bf16.msrb.mxu3 %v4537_v6 }
 0x7c7   : > { %2068 = vmatpush.bf16.msra.mxu0 %v4547_v59 }
 0x7c9   : > { %1692 = vmatpush.bf16.msra.mxu1 %v3798_v18 }
 0x7ca   : > { %2058 = vmatpush.bf16.msrb.mxu3 %v4536_v10 }
 0x7cb   : > { %2069 = vmatpush.bf16.msra.mxu0 %v4546_v61 }
 0x7cd   : > { %2081 = vmatpush.bf16.msrb.mxu1 %v4555_v60 }
 0x7ce   : > { %2059 = vmatpush.bf16.msrb.mxu3 %v4535_v16 }
 0x7d1   : > { %2082 = vmatpush.bf16.msrb.mxu1 %v4554_v62 }
 0x7d2   : > { %2060 = vmatpush.bf16.msrb.mxu3 %v4534_v26 }
 0x7d5   : > { %2083 = vmatpush.bf16.msrb.mxu1 %v4553_v1 }
 0x7d6   : > { %2061 = vmatpush.bf16.msrb.mxu3 %v4533_v37 }
 0x7d9   : > { %2084 = vmatpush.bf16.msrb.mxu1 %v4552_v5 }
 0x7dd   : > { %2085 = vmatpush.bf16.msrb.mxu1 %v4551_v9 }
 0x82a   : > { %v1429_v27 = vpop.xlane.xlu2 %1428 }
 0x82b   : > { %v1430_v48 = vmul.f32 %v1429_v27, %v5479_v45  ;;  %v4509_v27 = vld [vmem:[#allocation13 + $0x4c] sm:$0xf] }
 0x82d   : > { %v5557_v13 = vsub.f32 %v5552_v63, %v1430_v48  ;;  %v3831_v48 = vld [vmem:[#allocation13 + $0x58] sm:$0xf0] }
 0x82f   : > { %v1432_v14 = vmul.f32 %v5557_v13, %v5557_v13 }
 0x831   : > { %1433 = vadd.xlane.f32.xlu1 %v1432_v14  ;;  %v3834_v14 = vor.u32 %v4509_v27, %v3831_v48  ;;  %v1489_v27 = vld [vmem:[%s5759_s12] sm:$0xf]  ;;  %v4542_v48 = vld [vmem:[#allocation14 + $0x50] sm:$0xff] }
 0x832   : > { %v1492_v15 = vperm.slane %v1489_v27, 1  ;;  %v1493_v20 = vperm.slane %v1489_v27, 2  ;;  %v1491_v30 = vperm.slane %v1489_v27, 0  ;;  %v1494_v35 = vperm.slane %v1489_v27, 3 }
 0x833   : > { %1703 = vmatpush.bf16.msrb.mxu2 %v3834_v14  ;;  %v4550_v14 = vld [vmem:[#allocation14 + $0x90] sm:$0xff] }
 0x834   : > { %2086 = vmatpush.bf16.msrb.mxu1 %v4550_v14 }
 0x837   : > { %1704 = vmatpush.bf16.msrb.mxu2 %v3818_v11 }
 0x838   : > { %2087 = vmatpush.bf16.msrb.mxu1 %v4549_v22 }
 0x83b   : > { %1705 = vmatpush.bf16.msrb.mxu2 %v3802_v19 }
 0x83c   : > { %2088 = vmatpush.bf16.msrb.mxu1 %v4548_v32 }
 0x83f   : > { %2094 = vmatpush.bf16.msra.mxu2 %v4563_v0 }
 0x843   : > { %2095 = vmatpush.bf16.msra.mxu2 %v4562_v3 }
 0x847   : > { %2096 = vmatpush.bf16.msra.mxu2 %v4561_v7 }
 0x84b   : > { %2097 = vmatpush.bf16.msra.mxu2 %v4560_v12 }
 0x84f   : > { %2098 = vmatpush.bf16.msra.mxu2 %v4559_v17 }
 0x853   : > { %2099 = vmatpush.bf16.msra.mxu2 %v4558_v28 }
 0x857   : > { %2100 = vmatpush.bf16.msra.mxu2 %v4557_v38 }
 0x8a4   : > { %v1434_v40 = vpop.xlane.xlu1 %1433 }
 0x8a5   : > { %v1435_v41 = vmul.f32 %v1434_v40, %v5479_v45 }
 0x8a7   : > { %v1436_v42 = vadd.f32 1e-05, %v1435_v41 }
 0x8a9   : > { %4829 = vrsqrt.f32 %v1436_v42  ;;  %vm1443_vm15 = vweird.f32 %v1436_v42 }
 0x8af   : > { %v4830_v43 = vpop.eup %4829 }
 0x8b0   : > { %v1438_v44 = vmul.f32 %v4830_v43, %v1436_v42  ;;  %vm1444_vm14 = vweird.f32 %v4830_v43 }
 0x8b1   : > { %vm1445_vm0 = vmor %vm1443_vm15, %vm1444_vm14 }
 0x8b2   : > { %v1439_v46 = vmul.f32 %v4830_v43, %v1438_v44 }
 0x8b4   : > { %v1440_v47 = vmul.f32 0.5, %v1439_v46  ;;  %v4532_v46 = vld [vmem:[#allocation14] sm:$0xff] }
 0x8b5   : > { %2062 = vmatpush.bf16.msrb.mxu3 %v4532_v46 }
 0x8b6   : > { %v1441_v49 = vsub.f32 1.5, %v1440_v47  ;;  %v4556_v47 = vld [vmem:[#allocation14 + $0xc0] sm:$0xff] }
 0x8b7   : > { %2101 = vmatpush.bf16.msra.mxu2 %v4556_v47 }
 0x8b8   : > { %v1442_v50 = vmul.f32 %v4830_v43, %v1441_v49 }
 0x8ba   : > { %v1446_v52 = vsel %vm1445_vm0, %v4830_v43, %v1442_v50 }
 0x8bb   : > { %v1447_v53 = vmul.f32 %v1446_v52, %v5557_v13  ;;  %v4545_v13 = vld [vmem:[#allocation14 + $0x68] sm:$0xff] }
 0x8bc   : > { %2070 = vmatpush.bf16.msra.mxu0 %v4545_v13 }
 0x8bd   : > { %v1451_v55 = vmul.f32 %v4798_v51, %v1447_v53 }
 0x8bf   : > { %v1455_v57 = vadd.f32 %v4799_v54, %v1451_v55 }
 0x8c0   : > { %2071 = vmatpush.bf16.msra.mxu0 %v4544_v4 }
 0x8c1   : > { %v1456_v58 = vpack.c.bf16 %v1455_v57, %v1455_v57 }
 0x8c3   : > { %1667 = vmatmul.bf16.vlgmr.msra.gmra.mxu3 %v1456_v58  ;;  %1680 = vmatmul.bf16.vlgmr.msrb.gmra.mxu0 %v1456_v58 }
 0x8c4   : > { %1693 = vmatmul.bf16.vlgmr.msra.gmra.mxu1 %v1456_v58  ;;  %1706 = vmatmul.bf16.vlgmr.msrb.gmra.mxu2 %v1456_v58 }
 0x8c5   : > { %2072 = vmatpush.bf16.msra.mxu0 %v4543_v8 }
 0x8c9   : > { %2073 = vmatpush.bf16.msra.mxu0 %v4542_v48 }
 0x8cd   : > { %2074 = vmatpush.bf16.msra.mxu0 %v4541_v21 }
 0x8d1   : > { %2075 = vmatpush.bf16.msra.mxu0 %v4540_v31 }
 0x940   : > { %v1681_v23 = vpop.f32.mrf.mxu0 }
 0x941   : > { %v5569_v24 = vadd.f32 %v1681_v23, %v1492_v15  ;;  %v1694_v25 = vpop.f32.mrf.mxu1 }
 0x942   : > { %v5571_v29 = vadd.f32 %v1694_v25, %v1493_v20 }
 0x943   : > { %v3916_v11 = vmul.f32 -1.702, %v5569_v24 }
 0x944   : > { %v3917_v34 = vmul.f32 -1.702, %v5571_v29 }
 0x945   : > { %v1721_v36 = vmul.f32 1.442695, %v3916_v11 }
 0x946   : > { %v1723_v18 = vmul.f32 1.442695, %v3917_v34  ;;  %v1668_v39 = vpop.f32.mrf.mxu3 }
 0x947   : > { %4831 = vpow2.f32 %v1721_v36  ;;  %v5575_v19 = vadd.f32 %v1668_v39, %v1491_v30  ;;  %v1707_v40 = vpop.f32.mrf.mxu2 }
 0x948   : > { %4833 = vpow2.f32 %v1723_v18  ;;  %v5577_v41 = vadd.f32 %v1707_v40, %v1494_v35  ;;  %v1683_v42 = vpop.f32.mrf.mxu0 }
 0x949   : > { %v3915_v43 = vmul.f32 -1.702, %v5575_v19  ;;  %v1696_v44 = vpop.f32.mrf.mxu1 }
 0x94a   : > { %v3918_v49 = vmul.f32 -1.702, %v5577_v41 }
 0x94b   : > { %v1719_v50 = vmul.f32 1.442695, %v3915_v43 }
 0x94c   : > { %v1725_v51 = vmul.f32 1.442695, %v3918_v49 }
 0x94d   : > { %v4832_v52 = vpop.eup %4831  ;;  %4835 = vpow2.f32 %v1719_v50 }
 0x94e   : > { %v4834_v53 = vpop.eup %4833  ;;  %v1728_v54 = vadd.f32 1.0, %v4832_v52  ;;  %4837 = vpow2.f32 %v1725_v51  ;;  %v1670_v55 = vpop.f32.mrf.mxu3 }
 0x94f   : > { %v1729_v57 = vadd.f32 1.0, %v4834_v53  ;;  %v1709_v58 = vpop.f32.mrf.mxu2 }
 0x950   : > { %4839 = vrcp.f32 %v1728_v54  ;;  %v1755_v3 = vand.u32 2147483647, %v1728_v54  ;;  %v1757_v4 = vand.u32 2147483648, %v1728_v54  ;;  %vm1751_vm2 = vweird.f32 %v1728_v54 }
 0x951   : > { %4841 = vrcp.f32 %v1729_v57  ;;  %v1770_v6 = vand.u32 2147483647, %v1729_v57  ;;  %v1772_v7 = vand.u32 2147483648, %v1729_v57  ;;  %vm1766_vm3 = vweird.f32 %v1729_v57 }
 0x952   : > { %vm1756_vm5 = vcmp.eq.f32.partialorder %v1755_v3, 8.507059e+37  ;;  %v1758_v48 = vor.u32 1.1754944e-38, %v1757_v4  ;;  %v4136_v3 = vld [vmem:[#allocation8 + $0x174] sm:$0xf0]  ;;  %v4142_v4 = vld [vmem:[#allocation8 + $0x170] sm:$0xf] }
 0x953   : > { %v4836_v59 = vpop.eup %4835  ;;  %vm1771_vm7 = vcmp.eq.f32.partialorder %v1770_v6, 8.507059e+37  ;;  %v1773_v16 = vor.u32 1.1754944e-38, %v1772_v7 }
 0x954   : > { %v4838_v60 = vpop.eup %4837  ;;  %v1727_v61 = vadd.f32 1.0, %v4836_v59 }
 0x955   : > { %v5581_v62 = vadd.f32 1.0, %v4838_v60 }
 0x956   : > { %v4840_v56 = vpop.eup %4839  ;;  %4843 = vrcp.f32 %v1727_v61  ;;  %v1740_v22 = vand.u32 2147483647, %v1727_v61  ;;  %v1742_v23 = vand.u32 2147483648, %v1727_v61  ;;  %vm1736_vm0 = vweird.f32 %v1727_v61 }
 0x957   : > { %v4842_v0 = vpop.eup %4841  ;;  %v1747_v13 = vmul.f32 %v4840_v56, %v1728_v54  ;;  %4845 = vrcp.f32 %v5581_v62  ;;  %vm1752_vm1 = vweird.f32 %v4840_v56  ;;  %v1787_v11 = vand.u32 2147483648, %v5581_v62 }
 0x958   : > { %v1762_v1 = vmul.f32 %v4842_v0, %v1729_v57  ;;  %vm1767_vm4 = vweird.f32 %v4842_v0  ;;  %vm1753_vm6 = vmor %vm1751_vm2, %vm1752_vm1  ;;  %v1785_v36 = vand.u32 2147483647, %v5581_v62  ;;  %v1743_v39 = vor.u32 1.1754944e-38, %v1742_v23  ;;  %v4580_v23 = vld [vmem:[#allocation8 + $0x140] sm:$0xf0] }
 0x959   : > { %v1748_v2 = vsub.f32 1.0, %v1747_v13  ;;  %vm1768_vm10 = vmor %vm1766_vm3, %vm1767_vm4  ;;  %vm1781_vm2 = vweird.f32 %v5581_v62  ;;  %vm1741_vm3 = vcmp.eq.f32.partialorder %v1740_v22, 8.507059e+37  ;;  %v4586_v13 = vld [vmem:[#allocation8 + $0x170] sm:$0xf0]  ;;  %v4110_v22 = vld [vmem:[#allocation8 + $0x138] sm:$0xf] }
 0x95a   : > { %v1763_v5 = vsub.f32 1.0, %v1762_v1  ;;  %v4585_v1 = vld [vmem:[#allocation8 + $0x16c] sm:$0xf] }
 0x95b   : > { %v1749_v8 = vmul.f32 %v4840_v56, %v1748_v2  ;;  %v4139_v6 = vor.u32 %v4585_v1, %v4136_v3  ;;  %v4070_v1 = vld [vmem:[#allocation8 + $0xe0] sm:$0xf] }
 0x95c   : > { %v4844_v9 = vpop.eup %4843  ;;  %v1764_v10 = vmul.f32 %v4842_v0, %v1763_v5  ;;  %v4587_v5 = vld [vmem:[#allocation8 + $0x178] sm:$0xf0] }
 0x95d   : > { %v4846_v12 = vpop.eup %4845  ;;  %v1750_v27 = vadd.f32 %v4840_v56, %v1749_v8  ;;  %v1732_v14 = vmul.f32 %v4844_v9, %v1727_v61  ;;  %vm1737_vm14 = vweird.f32 %v4844_v9  ;;  %v4143_v7 = vor.u32 %v4587_v5, %v4142_v4  ;;  %2329 = vmatpush.bf16.msrb.mxu0 %v4139_v6  ;;  %v4050_v5 = vld [vmem:[#allocation8 + $0xc0] sm:$0xf]  ;;  %v4565_v6 = vld [vmem:[#allocation8 + $0xc8] sm:$0xf0] }
 0x95e   : > { %v1765_v15 = vadd.f32 %v4842_v0, %v1764_v10  ;;  %v1777_v17 = vmul.f32 %v4846_v12, %v5581_v62  ;;  %vm1782_vm15 = vweird.f32 %v4846_v12  ;;  %vm1738_vm1 = vmor %vm1736_vm0, %vm1737_vm14 }
 0x95f   : > { %v1754_v20 = vsel %vm1753_vm6, %v4840_v56, %v1750_v27  ;;  %v1733_v21 = vsub.f32 1.0, %v1732_v14  ;;  %vm1783_vm4 = vmor %vm1781_vm2, %vm1782_vm15  ;;  %2342 = vmatpush.bf16.msra.mxu1 %v4143_v7  ;;  %v4583_v27 = vld [vmem:[#allocation8 + $0x158] sm:$0xf0]  ;;  %v4564_v7 = vld [vmem:[#allocation8 + $0xc4] sm:$0xf] }
 0x960   : > { %v1759_v25 = vsel %vm1756_vm5, %v1758_v48, %v1754_v20  ;;  %v1769_v26 = vsel %vm1768_vm10, %v4842_v0, %v1765_v15  ;;  %v1778_v28 = vsub.f32 1.0, %v1777_v17  ;;  %vm1786_vm5 = vcmp.eq.f32.partialorder %v1785_v36, 8.507059e+37  ;;  %v4134_v0 = vld [vmem:[#allocation8 + $0x168] sm:$0xf]  ;;  %v4582_v48 = vld [vmem:[#allocation8 + $0x154] sm:$0xf] }
 0x961   : > { %v1792_v30 = vmul.f32 %v1759_v25, %v5569_v24  ;;  %v1774_v31 = vsel %vm1771_vm7, %v1773_v16, %v1769_v26  ;;  %v1734_v32 = vmul.f32 %v4844_v9, %v1733_v21  ;;  %v1788_v24 = vor.u32 1.1754944e-38, %v1787_v11  ;;  %v4124_v15 = vld [vmem:[#allocation8 + $0x15c] sm:$0xf0]  ;;  %v4130_v16 = vld [vmem:[#allocation8 + $0x158] sm:$0xf] }
 0x962   : > { %v1793_v34 = vmul.f32 %v1774_v31, %v5571_v29  ;;  %v1779_v35 = vmul.f32 %v4846_v12, %v1778_v28  ;;  %v4135_v2 = vor.u32 %v4586_v13, %v4134_v0  ;;  %v4584_v17 = vld [vmem:[#allocation8 + $0x160] sm:$0xf0]  ;;  %v4127_v20 = vor.u32 %v4582_v48, %v4124_v15  ;;  %v4579_v25 = vld [vmem:[#allocation8 + $0x13c] sm:$0xf]  ;;  %v4112_v28 = vld [vmem:[#allocation8 + $0x144] sm:$0xf0] }
 0x963   : > { %v1796_v37 = vpack.c.bf16 %v1792_v30, %v1792_v30  ;;  %v1735_v38 = vadd.f32 %v4844_v9, %v1734_v32  ;;  %v4131_v21 = vor.u32 %v4584_v17, %v4130_v16  ;;  %v4111_v26 = vor.u32 %v4580_v23, %v4110_v22  ;;  %v4118_v11 = vld [vmem:[#allocation8 + $0x140] sm:$0xf]  ;;  %v4581_v30 = vld [vmem:[#allocation8 + $0x148] sm:$0xf0]  ;;  %v4576_v36 = vld [vmem:[#allocation8 + $0x124] sm:$0xf] }
 0x964   : > { %v1797_v18 = vpack.c.bf16 %v1793_v34, %v1793_v34  ;;  %v1780_v40 = vadd.f32 %v4846_v12, %v1779_v35  ;;  %2316 = vmatpush.bf16.msra.mxu3 %v4135_v2  ;;  %2330 = vmatpush.bf16.msrb.mxu0 %v4127_v20  ;;  %v4115_v31 = vor.u32 %v4579_v25, %v4112_v28  ;;  %v4098_v34 = vld [vmem:[#allocation8 + $0x120] sm:$0xf]  ;;  %v4577_v35 = vld [vmem:[#allocation8 + $0x128] sm:$0xf0]  ;;  %v4064_v13 = vld [vmem:[#allocation8 + $0xe4] sm:$0xf0] }
 0x965   : > { %v1739_v42 = vsel %vm1738_vm1, %v4844_v9, %v1735_v38  ;;  %2076 = vmatmul.bf16.vlgmr.msra.gmra.mxu0 %v1796_v37  ;;  %2343 = vmatpush.bf16.msra.mxu1 %v4131_v21  ;;  %v4119_v32 = vor.u32 %v4581_v30, %v4118_v11  ;;  %v4099_v37 = vor.u32 %v4577_v35, %v4098_v34  ;;  %v4100_v38 = vld [vmem:[#allocation8 + $0x12c] sm:$0xf0]  ;;  %v4569_v2 = vld [vmem:[#allocation8 + $0xe8] sm:$0xf0]  ;;  %v4802_v30 = vld [vmem:[#allocation7 + $0x1] ss:$0 sm:$0xff] }
 0x966   : > { %v1744_v43 = vsel %vm1741_vm3, %v1743_v39, %v1739_v42  ;;  %v1784_v29 = vsel %vm1783_vm4, %v4846_v12, %v1780_v40  ;;  %2089 = vmatmul.bf16.vlgmr.msrb.gmra.mxu1 %v1797_v18  ;;  %v4122_v12 = vld [vmem:[#allocation8 + $0x150] sm:$0xf]  ;;  %v4106_v18 = vld [vmem:[#allocation8 + $0x128] sm:$0xf]  ;;  %v4578_v39 = vld [vmem:[#allocation8 + $0x130] sm:$0xf0]  ;;  %v4103_v40 = vor.u32 %v4576_v36, %v4100_v38  ;;  %v4071_v4 = vor.u32 %v4569_v2, %v4070_v1 }
 0x967   : > { %v1791_v44 = vmul.f32 %v1744_v43, %v5575_v19  ;;  %v1789_v46 = vsel %vm1786_vm5, %v1788_v24, %v1784_v29  ;;  %v4800_v19 = vld [vmem:[%s5761_s14] ss:$0 sm:$0xff]  ;;  %v4123_v14 = vor.u32 %v4583_v27, %v4122_v12  ;;  %v4107_v42 = vor.u32 %v4578_v39, %v4106_v18  ;;  %v4086_v24 = vld [vmem:[#allocation8 + $0x108] sm:$0xf]  ;;  %v4574_v43 = vld [vmem:[#allocation8 + $0x110] sm:$0xf0] }
 0x968   : > { %v1794_v47 = vmul.f32 %v1789_v46, %v5577_v41  ;;  %2331 = vmatpush.bf16.msrb.mxu0 %v4115_v31  ;;  %v4573_v29 = vld [vmem:[#allocation8 + $0x10c] sm:$0xf]  ;;  %v4088_v46 = vld [vmem:[#allocation8 + $0x114] sm:$0xf0]  ;;  %v4051_v12 = vor.u32 %v4565_v6, %v4050_v5  ;;  %v4047_v35 = vld [vmem:[%s5753_s6 + $0x3] sm:$0x7] }
 0x969   : > { %v1795_v49 = vpack.c.bf16 %v1791_v44, %v1791_v44  ;;  %2317 = vmatpush.bf16.msra.mxu3 %v4123_v14  ;;  %2344 = vmatpush.bf16.msra.mxu1 %v4119_v32  ;;  %v4087_v44 = vor.u32 %v4574_v43, %v4086_v24  ;;  %v2183_v36 = vperm.slane %v4047_v35, 1  ;;  %v2182_v24 = vperm.slane %v4047_v35, 0 }
 0x96a   : > { %v1798_v50 = vpack.c.bf16 %v1794_v47, %v1794_v47  ;;  %v4094_v47 = vld [vmem:[#allocation8 + $0x110] sm:$0xf] }
 0x96b   : > { %2063 = vmatmul.bf16.vlgmr.msrb.gmra.mxu3 %v1795_v49  ;;  %v4575_v49 = vld [vmem:[#allocation8 + $0x118] sm:$0xf0] }
 0x96c   : > { %2102 = vmatmul.bf16.vlgmr.msra.gmra.mxu2 %v1798_v50  ;;  %2332 = vmatpush.bf16.msrb.mxu0 %v4103_v40  ;;  %v4091_v50 = vor.u32 %v4573_v29, %v4088_v46 }
 0x96d   : > { %2318 = vmatpush.bf16.msra.mxu3 %v4111_v26  ;;  %2345 = vmatpush.bf16.msra.mxu1 %v4107_v42  ;;  %v4801_v26 = vld [vmem:[#allocation5 + $0x1] ss:$0 sm:$0xff] }
 0x970   : > { %2333 = vmatpush.bf16.msrb.mxu0 %v4091_v50 }
 0x971   : > { %2319 = vmatpush.bf16.msra.mxu3 %v4099_v37  ;;  %v2184_v37 = vperm.slane %v4047_v35, 2 }
 0x975   : > { %2320 = vmatpush.bf16.msra.mxu3 %v4087_v44 }
 0x9e2   : > { %v2077_v51 = vpop.f32.mrf.mxu0 }
 0x9e3   : > { %v2090_v52 = vpop.f32.mrf.mxu1 }
 0x9ea   : > { %v2079_v53 = vpop.f32.mrf.mxu0 }
 0x9eb   : > { %v2092_v54 = vpop.f32.mrf.mxu1  ;;  %v4571_v53 = vld [vmem:[#allocation8 + $0xf8] sm:$0xf0] }
 0x9ec   : > { %v4570_v54 = vld [vmem:[#allocation8 + $0xf4] sm:$0xf] }
 0x9ee   : > { %v2064_v55 = vpop.f32.mrf.mxu3 }
 0x9ef   : > { %v2078_v57 = vadd.f32 %v2077_v51, %v2064_v55  ;;  %v2103_v58 = vpop.f32.mrf.mxu2  ;;  %v4095_v51 = vor.u32 %v4575_v49, %v4094_v47 }
 0x9f1   : > { %v2091_v59 = vadd.f32 %v2090_v52, %v2078_v57  ;;  %2346 = vmatpush.bf16.msra.mxu1 %v4095_v51  ;;  %v4074_v52 = vld [vmem:[#allocation8 + $0xf0] sm:$0xf]  ;;  %v4076_v57 = vld [vmem:[#allocation8 + $0xfc] sm:$0xf0] }
 0x9f2   : > { %v4075_v55 = vor.u32 %v4571_v53, %v4074_v52 }
 0x9f3   : > { %v2104_v60 = vadd.f32 %v2103_v58, %v2091_v59  ;;  %v4082_v58 = vld [vmem:[#allocation8 + $0xf8] sm:$0xf]  ;;  %v4572_v59 = vld [vmem:[#allocation8 + $0x100] sm:$0xf0] }
 0x9f4   : > { %2321 = vmatpush.bf16.msra.mxu3 %v4075_v55 }
 0x9f5   : > { %v2107_v61 = vadd.f32 %v2104_v60, %v5552_v63  ;;  %v4079_v60 = vor.u32 %v4570_v54, %v4076_v57 }
 0x9f6   : > { %v2066_v41 = vpop.f32.mrf.mxu3 }
 0x9f7   : > { %v2105_v62 = vpop.f32.mrf.mxu2  ;;  %v5596_v56 = vadd.f32 %v4800_v19, %v2107_v61  ;;  %v4083_v19 = vor.u32 %v4572_v59, %v4082_v58  ;;  %v4062_v61 = vld [vmem:[#allocation8 + $0xd8] sm:$0xf]  ;;  %v4568_v41 = vld [vmem:[#allocation8 + $0xe0] sm:$0xf0]  ;;  %2334 = vmatpush.bf16.msrb.mxu0 %v4079_v60 }
 0x9f8   : > { %v4567_v62 = vld [vmem:[#allocation8 + $0xdc] sm:$0xf]  ;;  %v4063_v0 = vor.u32 %v4568_v41, %v4062_v61 }
 0x9f9   : > { %2117 = vadd.xlane.f32.xlu0 %v5596_v56  ;;  %2347 = vmatpush.bf16.msra.mxu1 %v4083_v19  ;;  %v4067_v3 = vor.u32 %v4567_v62, %v4064_v13 }
 0x9fa   : > { %2322 = vmatpush.bf16.msra.mxu3 %v4063_v0 }
 0x9fb   : > { %2335 = vmatpush.bf16.msrb.mxu0 %v4067_v3 }
 0x9fd   : > { %2348 = vmatpush.bf16.msra.mxu1 %v4071_v4 }
 0x9fe   : > { %2323 = vmatpush.bf16.msra.mxu3 %v4051_v12 }
 0xa6c   : > { %v2118_v8 = vpop.xlane.xlu0 %2117 }
 0xa6d   : > { %v2119_v63 = vmul.f32 %v2118_v8, %v5479_v45  ;;  %v4052_v8 = vld [vmem:[#allocation8 + $0xcc] sm:$0xf0] }
 0xa6e   : > { %v4055_v27 = vor.u32 %v4564_v7, %v4052_v8 }
 0xa6f   : > { %v5601_v9 = vsub.f32 %v5596_v56, %v2119_v63  ;;  %v4058_v63 = vld [vmem:[#allocation8 + $0xc8] sm:$0xf] }
 0xa70   : > { %2336 = vmatpush.bf16.msrb.mxu0 %v4055_v27 }
 0xa71   : > { %v2121_v10 = vmul.f32 %v5601_v9, %v5601_v9 }
 0xa73   : > { %2122 = vadd.xlane.f32.xlu2 %v2121_v10  ;;  %v4566_v10 = vld [vmem:[#allocation8 + $0xd0] sm:$0xf0] }
 0xa74   : > { %v4059_v48 = vor.u32 %v4566_v10, %v4058_v63 }
 0xa76   : > { %2349 = vmatpush.bf16.msra.mxu1 %v4059_v48 }
 0xae6   : > { %v2123_v14 = vpop.xlane.xlu2 %2122 }
 0xae7   : > { %v2124_v15 = vmul.f32 %v2123_v14, %v5479_v45 }
 0xae9   : > { %v2125_v16 = vadd.f32 1e-05, %v2124_v15 }
 0xaeb   : > { %4847 = vrsqrt.f32 %v2125_v16  ;;  %vm2132_vm7 = vweird.f32 %v2125_v16 }
 0xaf1   : > { %v4848_v17 = vpop.eup %4847 }
 0xaf2   : > { %v2127_v20 = vmul.f32 %v4848_v17, %v2125_v16  ;;  %vm2133_vm6 = vweird.f32 %v4848_v17 }
 0xaf3   : > { %vm2134_vm10 = vmor %vm2132_vm7, %vm2133_vm6 }
 0xaf4   : > { %v2128_v21 = vmul.f32 %v4848_v17, %v2127_v20 }
 0xaf6   : > { %v2129_v22 = vmul.f32 0.5, %v2128_v21 }
 0xaf8   : > { %v2130_v23 = vsub.f32 1.5, %v2129_v22 }
 0xafa   : > { %v2131_v25 = vmul.f32 %v4848_v17, %v2130_v23 }
 0xafc   : > { %v2135_v28 = vsel %vm2134_vm10, %v4848_v17, %v2131_v25 }
 0xafd   : > { %v2136_v11 = vmul.f32 %v2135_v28, %v5601_v9 }
 0xaff   : > { %v2140_v31 = vmul.f32 %v4801_v26, %v2136_v11 }
 0xb01   : > { %v2144_v32 = vadd.f32 %v4802_v30, %v2140_v31 }
 0xb03   : > { %v2145_v34 = vpack.c.bf16 %v2144_v32, %v2144_v32 }
 0xb05   : > { %2324 = vmatmul.bf16.vlgmr.msra.gmra.mxu3 %v2145_v34  ;;  %2337 = vmatmul.bf16.vlgmr.msrb.gmra.mxu0 %v2145_v34 }
 0xb06   : > { %2350 = vmatmul.bf16.vlgmr.msra.gmra.mxu1 %v2145_v34 }
 0xb82   : > { %v2338_v38 = vpop.f32.mrf.mxu0 }
 0xb83   : > { %v2339_v18 = vadd.f32 %v2338_v38, %v2183_v36  ;;  %v2351_v39 = vpop.f32.mrf.mxu1 }
 0xb84   : > { %v2352_v40 = vadd.f32 %v2351_v39, %v2184_v37 }
 0xb85   : > { %v2357_v42 = vpack.c.bf16 %v2339_v18, %v2339_v18 }
 0xb86   : > { %v5610_v9 = vpack.c.bf16 %v2352_v40, %v2352_v40 }
 0xb87   : > { %2470 = vrot.lane.b32.xlu2 %v2357_v42, %s5228_s15  ;;  %2413 = vrot.lane.b32.xlu1 %v2357_v42, %s5227_s24  ;;  %v2363_v43 = vsel %vm1101_vm9, %v2357_v42, 0 }
 0xb88   : > { %v2325_v29 = vpop.f32.mrf.mxu3  ;;  %2372 = vmatpush.bf16.xpose.msrb.mxu2 %v2363_v43  ;;  %v2394_v44 = vsel %vm1137_vm8, %v5610_v9, 0 }
 0xb89   : > { %v2326_v46 = vadd.f32 %v2325_v29, %v2182_v24  ;;  %2403 = vmatpush.bf16.msrb.mxu3 %v2394_v44 }
 0xb8a   : > { %v2340_v47 = vpop.f32.mrf.mxu0 }
 0xb8b   : > { %v2355_v49 = vmul.f32 0.17677669, %v2326_v46  ;;  %v2353_v50 = vpop.f32.mrf.mxu1 }
 0xb8d   : > { %v2356_v51 = vpack.c.bf16 %v2355_v49, %v2355_v49 }
 0xb8f   : > { %2526 = vrot.lane.b32.xlu2 %v2357_v42, %s5230_s16  ;;  %2468 = vrot.lane.b32.xlu1 %v2356_v51, %s5228_s15 }
 0xb90   : > { %2410 = vrot.lane.b32.xlu0 %v2356_v51, %s5227_s24  ;;  %4144 = vmatmul.msk.bf16.vlgmr.msrb.gmra.mxu2 %vm1101_vm9, %v2356_v51  ;;  %v2327_v52 = vpop.f32.mrf.mxu3 }
 0xb97   : > { %2524 = vrot.lane.b32.xlu1 %v2356_v51, %s5230_s16 }
 0xbe1   : > { %v2471_v53 = vpop.permute.xlu2 %2470 }
 0xbe2   : > { %v2476_v54 = vsel %vm1101_vm9, %v2471_v53, 0 }
 0xbe3   : > { %2485 = vmatpush.bf16.xpose.msra.mxu2 %v2476_v54 }
 0xbe9   : > { %v2527_v55 = vpop.permute.xlu2 %2526 }
 0xbea   : > { %v2532_v59 = vsel %vm1101_vm9, %v2527_v55, 0 }
 0xbf9   : > { %v2414_v57 = vpop.permute.xlu1 %2413 }
 0xbfa   : > { %v2419_v58 = vsel %vm1101_vm9, %v2414_v57, 0 }
 0xbfb   : > { %2428 = vmatpush.bf16.xpose.msra.mxu0 %v2419_v58 }
 0xc01   : > { %v2469_v60 = vpop.permute.xlu1 %2468 }
 0xc02   : > { %v2411_v19 = vpop.permute.xlu0 %2410  ;;  %4148 = vmatmul.msk.bf16.vlgmr.msra.gmra.mxu2 %vm1101_vm9, %v2469_v60 }
 0xc03   : > { %2541 = vmatpush.bf16.xpose.msrb.mxu0 %v2532_v59 }
 0xc04   : > { %4146 = vmatmul.msk.bf16.vlgmr.msra.gmra.mxu0 %vm1101_vm9, %v2411_v19 }
 0xc09   : > { %v2525_v61 = vpop.permute.xlu1 %2524 }
 0xc13   : > { %v2374_v41 = vpop.f32.mrf.mxu2 }
 0xc14   : > { %4150 = vmatmul.msk.bf16.vlgmr.msrb.gmra.mxu0 %vm1101_vm9, %v2525_v61  ;;  %v2375_v62 = vadd.f32 %v2374_v41, %v5504_v33 }
 0xc16   : > { %v2378_v0 = vsel %vm1121_vm11, %v2375_v62, -inf }
 0xc17   : > { %2379 = vmax.xlane.f32.xlu0 %v2378_v0 }
 0xc1b   : > { %v2376_v13 = vpop.f32.mrf.mxu2 }
 0xc81   : > { %v2430_v1 = vpop.f32.mrf.mxu0 }
 0xc82   : > { %v2431_v2 = vadd.f32 %v2430_v1, %v5504_v33  ;;  %v4595_v1 = vld [vmem:[#allocation10 + $0x78] sm:$0xff] }
 0xc83   : > { %2661 = vmatpush.bf16.msrb.mxu2 %v4595_v1 }
 0xc84   : > { %v2434_v3 = vsel %vm1121_vm11, %v2431_v2, -inf }
 0xc85   : > { %2435 = vmax.xlane.f32.xlu2 %v2434_v3  ;;  %v2487_v4 = vpop.f32.mrf.mxu2  ;;  %v4593_v3 = vld [vmem:[#allocation10 + $0x68] sm:$0xff] }
 0xc86   : > { %v2488_v5 = vadd.f32 %v2487_v4, %v5504_v33  ;;  %v4592_v4 = vld [vmem:[#allocation10 + $0x60] sm:$0xff] }
 0xc88   : > { %v2491_v7 = vsel %vm1121_vm11, %v2488_v5, -inf }
 0xc89   : > { %v2432_v6 = vpop.f32.mrf.mxu0  ;;  %2492 = vmax.xlane.f32.xlu1 %v2491_v7  ;;  %v4589_v7 = vld [vmem:[#allocation10 + $0x48] sm:$0xff] }
 0xc8a   : > { %v2380_v8 = vpop.xlane.xlu0 %2379  ;;  %v4590_v6 = vld [vmem:[#allocation10 + $0x50] sm:$0xff] }
 0xc8b   : > { %v2381_v63 = vsub.f32 %v2375_v62, %v2380_v8  ;;  %v4588_v8 = vld [vmem:[#allocation10 + $0x40] sm:$0xff] }
 0xc8d   : > { %v2382_v10 = vmul.f32 1.442695, %v2381_v63  ;;  %v2489_v12 = vpop.f32.mrf.mxu2 }
 0xc8f   : > { %4849 = vpow2.f32 %v2382_v10 }
 0xc91   : > { %v2543_v27 = vpop.f32.mrf.mxu0 }
 0xc92   : > { %v2544_v48 = vadd.f32 %v2543_v27, %v5504_v33 }
 0xc94   : > { %v2547_v14 = vsel %vm1121_vm11, %v2544_v48, -inf }
 0xc95   : > { %2548 = vmax.xlane.f32.xlu2 %v2547_v14  ;;  %v4850_v15 = vpop.eup %4849 }
 0xc96   : > { %v2384_v16 = vsel %vm1121_vm11, %v4850_v15, 0.0 }
 0xc97   : > { %2385 = vadd.xlane.f32.xlu0 %v2384_v16  ;;  %v4803_v16 = vld [vmem:[%s5755_s8 + $0x1] ss:$0 sm:$0xff] }
 0xc99   : > { %v2545_v17 = vpop.f32.mrf.mxu0 }
 0xcad   : > { %2447 = vrot.lane.b32.xlu2 %v5610_v9, %s5227_s24 }
 0xcf8   : > { %v2436_v20 = vpop.xlane.xlu2 %2435 }
 0xcf9   : > { %v2437_v21 = vsub.f32 %v2431_v2, %v2436_v20  ;;  %v4594_v2 = vld [vmem:[#allocation10 + $0x70] sm:$0xff] }
 0xcfa   : > { %2662 = vmatpush.bf16.msrb.mxu2 %v4594_v2  ;;  %v4255_v2 = vld [vmem:[#allocation13 + $0x190] sm:$0xf0] }
 0xcfb   : > { %v2438_v22 = vmul.f32 1.442695, %v2437_v21 }
 0xcfc   : > { %v2493_v23 = vpop.xlane.xlu1 %2492 }
 0xcfd   : > { %4851 = vpow2.f32 %v2438_v22  ;;  %v2494_v25 = vsub.f32 %v2488_v5, %v2493_v23  ;;  %v4591_v5 = vld [vmem:[#allocation10 + $0x58] sm:$0xff]  ;;  %v4301_v23 = vld [vmem:[#allocation13 + $0x1e0] sm:$0xf] }
 0xcfe   : > { %2663 = vmatpush.bf16.msrb.mxu2 %v4593_v3  ;;  %v4261_v3 = vld [vmem:[#allocation13 + $0x188] sm:$0xf] }
 0xcff   : > { %v2495_v26 = vmul.f32 1.442695, %v2494_v25  ;;  %v4626_v25 = vld [vmem:[#allocation13 + $0x1ec] sm:$0xf0] }
 0xd01   : > { %4853 = vpow2.f32 %v2495_v26  ;;  %v4624_v26 = vld [vmem:[#allocation13 + $0x1e4] sm:$0xf] }
 0xd02   : > { %2664 = vmatpush.bf16.msrb.mxu2 %v4592_v4  ;;  %v4615_v4 = vld [vmem:[#allocation13 + $0x194] sm:$0xf0] }
 0xd03   : > { %v4852_v33 = vpop.eup %4851 }
 0xd04   : > { %v2440_v28 = vsel %vm1121_vm11, %v4852_v33, 0.0 }
 0xd05   : > { %2441 = vadd.xlane.f32.xlu1 %v2440_v28  ;;  %v4303_v28 = vld [vmem:[#allocation13 + $0x1f0] sm:$0xf0] }
 0xd06   : > { %2665 = vmatpush.bf16.msrb.mxu2 %v4591_v5 }
 0xd07   : > { %v4854_v11 = vpop.eup %4853 }
 0xd08   : > { %v2549_v30 = vpop.xlane.xlu2 %2548  ;;  %v2497_v32 = vsel %vm1121_vm11, %v4854_v11, 0.0 }
 0xd09   : > { %v2550_v31 = vsub.f32 %v2544_v48, %v2549_v30  ;;  %2498 = vadd.xlane.f32.xlu0 %v2497_v32  ;;  %v4627_v30 = vld [vmem:[#allocation13 + $0x1f4] sm:$0xf0] }
 0xd0a   : > { %v2386_v35 = vpop.xlane.xlu0 %2385  ;;  %2666 = vmatpush.bf16.msrb.mxu2 %v4590_v6  ;;  %v4262_v6 = vor.u32 %v4615_v4, %v4261_v3 }
 0xd0b   : > { %v2551_v34 = vmul.f32 1.442695, %v2550_v31  ;;  %4855 = vrcp.f32 %v2386_v35  ;;  %v4306_v31 = vor.u32 %v4624_v26, %v4303_v28  ;;  %v4311_v35 = vld [vmem:[#allocation13 + $0x1f8] sm:$0xf0]  ;;  %v4221_v26 = vld [vmem:[#allocation13 + $0x140] sm:$0xf] }
 0xd0c   : > { %v4604_v28 = vld [vmem:[#allocation13 + $0x144] sm:$0xf] }
 0xd0d   : > { %4857 = vpow2.f32 %v2551_v34  ;;  %v4625_v34 = vld [vmem:[#allocation13 + $0x1ec] sm:$0xf]  ;;  %2931 = vmatpush.bf16.msra.mxu0 %v4306_v31  ;;  %v4229_v31 = vld [vmem:[#allocation13 + $0x148] sm:$0xf] }
 0xd0e   : > { %2667 = vmatpush.bf16.msrb.mxu2 %v4589_v7  ;;  %v4613_v7 = vld [vmem:[#allocation13 + $0x18c] sm:$0xf] }
 0xd10   : > { %v2448_v36 = vpop.permute.xlu2 %2447 }
 0xd11   : > { %v2453_v37 = vsel %vm1137_vm8, %v2448_v36, 0  ;;  %v4856_v38 = vpop.eup %4855  ;;  %v4314_v36 = vor.u32 %v4625_v34, %v4311_v35 }
 0xd12   : > { %2462 = vmatpush.bf16.msrb.mxu1 %v2453_v37  ;;  %v2388_v39 = vmul.f32 %v4856_v38, %v4850_v15  ;;  %2668 = vmatpush.bf16.msrb.mxu2 %v4588_v8  ;;  %v4263_v8 = vld [vmem:[#allocation13 + $0x198] sm:$0xf0] }
 0xd13   : > { %v4858_v18 = vpop.eup %4857 }
 0xd14   : > { %v2553_v40 = vsel %vm1121_vm11, %v4858_v18, 0.0  ;;  %v2389_v42 = vpack.c.bf16 %v2388_v39, %v2388_v39  ;;  %v4285_v39 = vld [vmem:[#allocation13 + $0x1c0] sm:$0xf] }
 0xd15   : > { %2554 = vadd.xlane.f32.xlu1 %v2553_v40  ;;  %v4622_v40 = vld [vmem:[#allocation13 + $0x1cc] sm:$0xf0] }
 0xd16   : > { %4145 = vmatmul.msk.bf16.vlgmr.msrb.gmra.mxu3 %vm1121_vm11, %v2389_v42  ;;  %2957 = vmatpush.bf16.msra.mxu2 %v4314_v36  ;;  %v4620_v42 = vld [vmem:[#allocation13 + $0x1c4] sm:$0xf]  ;;  %v4605_v36 = vld [vmem:[#allocation13 + $0x14c] sm:$0xf] }
 0xd1d   : > { %2503 = vrot.lane.b32.xlu0 %v5610_v9, %s5228_s15 }
 0xd2e   : > { %2559 = vrot.lane.b32.xlu1 %v5610_v9, %s5230_s16 }
 0xd78   : > { %v2442_v24 = vpop.xlane.xlu1 %2441 }
 0xd79   : > { %4859 = vrcp.f32 %v2442_v24  ;;  %v4286_v24 = vor.u32 %v4622_v40, %v4285_v39  ;;  %v4602_v39 = vld [vmem:[#allocation13 + $0x12c] sm:$0xf0]  ;;  %v4600_v40 = vld [vmem:[#allocation13 + $0x124] sm:$0xf] }
 0xd7c   : > { %v2499_v46 = vpop.xlane.xlu0 %2498 }
 0xd7d   : > { %4861 = vrcp.f32 %v2499_v46 }
 0xd7f   : > { %v4860_v43 = vpop.eup %4859 }
 0xd80   : > { %v2444_v29 = vmul.f32 %v4860_v43, %v4852_v33  ;;  %v4302_v33 = vor.u32 %v4626_v25, %v4301_v23  ;;  %v4287_v43 = vld [vmem:[#allocation13 + $0x1d0] sm:$0xf0]  ;;  %v4247_v23 = vld [vmem:[#allocation13 + $0x178] sm:$0xf0] }
 0xd81   : > { %v4290_v46 = vor.u32 %v4620_v42, %v4287_v43  ;;  %v4213_v43 = vld [vmem:[#allocation13 + $0x128] sm:$0xf] }
 0xd82   : > { %v2445_v44 = vpack.c.bf16 %v2444_v29, %v2444_v29  ;;  %v4293_v29 = vld [vmem:[#allocation13 + $0x1c8] sm:$0xf] }
 0xd83   : > { %v4862_v47 = vpop.eup %4861  ;;  %2932 = vmatpush.bf16.msra.mxu0 %v4290_v46 }
 0xd84   : > { %4147 = vmatmul.msk.bf16.vlgmr.msrb.gmra.mxu1 %vm1121_vm11, %v2445_v44  ;;  %v2501_v49 = vmul.f32 %v4862_v47, %v4854_v11  ;;  %v4309_v11 = vld [vmem:[#allocation13 + $0x1e8] sm:$0xf]  ;;  %v4623_v44 = vld [vmem:[#allocation13 + $0x1d4] sm:$0xf0] }
 0xd85   : > { %v4310_v32 = vor.u32 %v4627_v30, %v4309_v11  ;;  %v4294_v47 = vor.u32 %v4623_v44, %v4293_v29  ;;  %v4223_v30 = vld [vmem:[#allocation13 + $0x150] sm:$0xf0]  ;;  %v4603_v29 = vld [vmem:[#allocation13 + $0x134] sm:$0xf0] }
 0xd86   : > { %v2502_v52 = vpack.c.bf16 %v2501_v49, %v2501_v49  ;;  %v4621_v49 = vld [vmem:[#allocation13 + $0x1cc] sm:$0xf]  ;;  %v4226_v34 = vor.u32 %v4604_v28, %v4223_v30  ;;  %v4214_v46 = vor.u32 %v4603_v29, %v4213_v43  ;;  %v4639_v30 = vld [vmem:[#allocation14 + $0x158] sm:$0xff] }
 0xd87   : > { %v4633_v28 = vld [vmem:[#allocation14 + $0x128] sm:$0xff] }
 0xd88   : > { %v2555_v53 = vpop.xlane.xlu1 %2554 }
 0xd89   : > { %4863 = vrcp.f32 %v2555_v53  ;;  %v4618_v53 = vld [vmem:[#allocation13 + $0x1ac] sm:$0xf0] }
 0xd8f   : > { %v2504_v50 = vpop.permute.xlu0 %2503  ;;  %v4864_v54 = vpop.eup %4863 }
 0xd90   : > { %v2509_v51 = vsel %vm1137_vm8, %v2504_v50, 0  ;;  %v2557_v55 = vmul.f32 %v4864_v54, %v4858_v18  ;;  %v4295_v50 = vld [vmem:[#allocation13 + $0x1d8] sm:$0xf0] }
 0xd91   : > { %2518 = vmatpush.bf16.msra.mxu3 %v2509_v51  ;;  %v4298_v51 = vor.u32 %v4621_v49, %v4295_v50  ;;  %v4215_v49 = vld [vmem:[#allocation13 + $0x138] sm:$0xf0]  ;;  %v4189_v50 = vld [vmem:[#allocation13 + $0x100] sm:$0xf] }
 0xd92   : > { %v2558_v60 = vpack.c.bf16 %v2557_v55, %v2557_v55  ;;  %v4271_v55 = vld [vmem:[#allocation13 + $0x1b0] sm:$0xf0] }
 0xd93   : > { %2958 = vmatpush.bf16.msra.mxu2 %v4298_v51 }
 0xd94   : > { %4149 = vmatmul.msk.bf16.vlgmr.msra.gmra.mxu3 %vm1121_vm11, %v2502_v52  ;;  %v4269_v52 = vld [vmem:[#allocation13 + $0x1a0] sm:$0xf] }
 0xd95   : > { %2918 = vmatpush.bf16.msrb.mxu3 %v4302_v33  ;;  %v4270_v54 = vor.u32 %v4618_v53, %v4269_v52  ;;  %v4606_v33 = vld [vmem:[#allocation13 + $0x14c] sm:$0xf0]  ;;  %v4596_v53 = vld [vmem:[#allocation13 + $0x104] sm:$0xf] }
 0xd96   : > { %v4222_v11 = vor.u32 %v4606_v33, %v4221_v26  ;;  %v4598_v52 = vld [vmem:[#allocation13 + $0x10c] sm:$0xf0]  ;;  %v4640_v26 = vld [vmem:[#allocation14 + $0x160] sm:$0xff] }
 0xd97   : > { %v4648_v33 = vld [vmem:[#allocation14 + $0x1a0] sm:$0xff] }
 0xd99   : > { %v2405_v9 = vpop.f32.mrf.mxu3  ;;  %2919 = vmatpush.bf16.msrb.mxu3 %v4286_v24  ;;  %v4207_v24 = vld [vmem:[#allocation13 + $0x130] sm:$0xf0] }
 0xd9a   : > { %v4210_v44 = vor.u32 %v4600_v40, %v4207_v24  ;;  %v4645_v24 = vld [vmem:[#allocation14 + $0x188] sm:$0xff] }
 0xd9d   : > { %2920 = vmatpush.bf16.msrb.mxu3 %v4270_v54  ;;  %v4190_v54 = vor.u32 %v4598_v52, %v4189_v50  ;;  %v4636_v52 = vld [vmem:[#allocation14 + $0x140] sm:$0xff] }
 0xda0   : > { %v2560_v57 = vpop.permute.xlu1 %2559 }
 0xda1   : > { %v2565_v58 = vsel %vm1137_vm8, %v2560_v57, 0  ;;  %v2407_v59 = vpop.f32.mrf.mxu3  ;;  %v4277_v57 = vld [vmem:[#allocation13 + $0x1a8] sm:$0xf] }
 0xda2   : > { %2574 = vmatpush.bf16.msra.mxu1 %v2565_v58  ;;  %v4619_v58 = vld [vmem:[#allocation13 + $0x1b4] sm:$0xf0] }
 0xda5   : > { %4151 = vmatmul.msk.bf16.vlgmr.msra.gmra.mxu1 %vm1121_vm11, %v2558_v60  ;;  %v4278_v60 = vor.u32 %v4619_v58, %v4277_v57  ;;  %v4599_v57 = vld [vmem:[#allocation13 + $0x114] sm:$0xf0]  ;;  %v4597_v58 = vld [vmem:[#allocation13 + $0x10c] sm:$0xf] }
 0xda6   : > { %2944 = vmatpush.bf16.msrb.mxu1 %v4310_v32  ;;  %v4607_v32 = vld [vmem:[#allocation13 + $0x154] sm:$0xf0] }
 0xda7   : > { %v4230_v35 = vor.u32 %v4607_v32, %v4229_v31  ;;  %v4647_v31 = vld [vmem:[#allocation14 + $0x198] sm:$0xff]  ;;  %v4632_v32 = vld [vmem:[#allocation14 + $0x120] sm:$0xff] }
 0xdaa   : > { %2945 = vmatpush.bf16.msrb.mxu1 %v4294_v47  ;;  %v4601_v47 = vld [vmem:[#allocation13 + $0x12c] sm:$0xf] }
 0xdab   : > { %v4218_v51 = vor.u32 %v4601_v47, %v4215_v49  ;;  %v4654_v47 = vld [vmem:[#allocation14 + $0x1d0] sm:$0xff] }
 0xdae   : > { %2946 = vmatpush.bf16.msrb.mxu1 %v4278_v60 }
 0xdb2   : > { %2947 = vmatpush.bf16.msrb.mxu1 %v4262_v6  ;;  %v4804_v6 = vld [vmem:[%s5756_s9 + $0x1] ss:$0 sm:$0xff] }
 0xe01   : > { %v2464_v19 = vpop.f32.mrf.mxu1 }
 0xe02   : > { %2581 = vrot.lane.b32.xlu2 %v2464_v19, %s5230_s16  ;;  %v4617_v19 = vld [vmem:[#allocation13 + $0x1ac] sm:$0xf]  ;;  %s5798_s16 = sld [smem:[#allocation24_spill]] }
 0xe08   : > { %s670_s25 = sand.u32 1, %s5798_s16  }
 0xe09   : > { %v2466_v61 = vpop.f32.mrf.mxu1  ;;  %s3579_s5 = sshll.u32 %s670_s25, 3 }
 0xe0a   : > { %v4279_v61 = vld [vmem:[#allocation13 + $0x1b8] sm:$0xf0]  ;;  %s672_s29 = scalar_lea.vmem [#allocation16], %s3579_s5 }
 0xe0b   : > { %s3418_s28 = sshll.u32 %s672_s29, 4  ;;  %s3419_s28 = int_to_ptr.vmem [resolvable:$true] %s3418_s28 }
 0xe17   : > { %v2520_v41 = vpop.f32.mrf.mxu3 }
 0xe18   : > { %2585 = vrot.lane.b32.xlu0 %v2520_v41, %s5228_s15  ;;  %v4282_v41 = vor.u32 %v4617_v19, %v4279_v61  ;;  %v4199_v19 = vld [vmem:[#allocation13 + $0x118] sm:$0xf0]  ;;  %s5139_s15 = sshra.s32 %s3421_s3, 4  ;;  %s5140_s15 = int_to_ptr.hbm [resolvable:$true] %s5139_s15 }
 0xe19   : > { %v4202_v61 = vor.u32 %v4597_v58, %v4199_v19  ;;  %v4653_v58 = vld [vmem:[#allocation14 + $0x1c8] sm:$0xff]  ;;  %s5141_s16 = scalar_lea.hbm %s5140_s15, 8  ;;  %p5146_p3 = scmp.lt.s32.totalorder %s5140_s15, %s5800_s22 }
 0xe1a   : > { %2959 = vmatpush.bf16.msra.mxu2 %v4282_v41  ;;  %p5142_p0 = scmp.ne.s32.totalorder %s5140_s15, %s5141_s16  ;;  %p5147_p4 = scmp.lt.s32.totalorder %s5145_s18, %s5141_s16 }
 0xe1c   : > { %p5143_p1 = pnand %p5142_p0, %p5359_p5  ;;  %p5148_p7 = por %p5147_p4, %p5146_p3 }
 0xe1e   : > { %p5144_p2 = pneg %p5143_p1 }
 0xe1f   : > { %v2522_v62 = vpop.f32.mrf.mxu3 }
 0xe20   : > { %v4253_v62 = vld [vmem:[#allocation13 + $0x180] sm:$0xf]  ;;  %p5149_p8 = pnand %p5148_p7, %p5144_p2 }
 0xe22   : > { %v2576_v0 = vpop.f32.mrf.mxu1 }
 0xe23   : > { %2589 = vrot.lane.b32.xlu2 %v2576_v0, %s5227_s24  ;;  %v4614_v0 = vld [vmem:[#allocation13 + $0x18c] sm:$0xf0]  ;;  %s3406_s24 = scalar_lea.sflag [#allocation4], %s670_s25 }
 0xe24   : > { %v4254_v1 = vor.u32 %v4614_v0, %v4253_v62 }
 0xe26   : > { %2921 = vmatpush.bf16.msrb.mxu3 %v4254_v1 }
 0xe2a   : > { %v2578_v13 = vpop.f32.mrf.mxu1 }
 0xe2b   : > { %v4612_v13 = vld [vmem:[#allocation13 + $0x184] sm:$0xf] }
 0xe2c   : > { %v4258_v5 = vor.u32 %v4612_v13, %v4255_v2 }
 0xe5c   : > { %v2582_v63 = vpop.permute.xlu2 %2581 }
 0xe5d   : > { %v2592_v10 = vsel %vm1101_vm9, %v2405_v9, %v2582_v63  ;;  %v4616_v9 = vld [vmem:[#allocation13 + $0x1a4] sm:$0xf]  ;;  %v4266_v63 = vor.u32 %v4613_v7, %v4263_v8 }
 0xe5e   : > { %v4274_v59 = vor.u32 %v4616_v9, %v4271_v55  ;;  %v4191_v9 = vld [vmem:[#allocation13 + $0x110] sm:$0xf0]  ;;  %v4197_v55 = vld [vmem:[#allocation13 + $0x108] sm:$0xf] }
 0xe5f   : > { %2960 = vmatpush.bf16.msra.mxu2 %v4266_v63  ;;  %v4198_v60 = vor.u32 %v4599_v57, %v4197_v55  ;;  %v4805_v63 = vld [vmem:[#allocation11 + $0x1] ss:$0 sm:$0xff]  ;;  %v4629_v57 = vld [vmem:[#allocation14 + $0x108] sm:$0xff] }
 0xe60   : > { %2933 = vmatpush.bf16.msra.mxu0 %v4274_v59  ;;  %v4194_v59 = vor.u32 %v4596_v53, %v4191_v9  ;;  %v4644_v53 = vld [vmem:[#allocation14 + $0x180] sm:$0xff] }
 0xe64   : > { %2934 = vmatpush.bf16.msra.mxu0 %v4258_v5 }
 0xe7d   : > { %v2590_v27 = vpop.permute.xlu2 %2589 }
 0xe8a   : > { %v2586_v12 = vpop.permute.xlu0 %2585 }
 0xe8b   : > { %v2593_v48 = vsel %vm1338_vm12, %v2592_v10, %v2586_v12  ;;  %v4237_v10 = vld [vmem:[#allocation13 + $0x160] sm:$0xf]  ;;  %v4610_v12 = vld [vmem:[#allocation13 + $0x16c] sm:$0xf0] }
 0xe8c   : > { %v2594_v14 = vsel %vm1340_vm13, %v2593_v48, %v2590_v27  ;;  %v4608_v27 = vld [vmem:[#allocation13 + $0x164] sm:$0xf]  ;;  %v4238_v48 = vor.u32 %v4610_v12, %v4237_v10 }
 0xe8d   : > { %v2595_v15 = vpack.c.bf16 %v2594_v14, %v2594_v14  ;;  %v4239_v14 = vld [vmem:[#allocation13 + $0x170] sm:$0xf0] }
 0xe8e   : > { %2922 = vmatpush.bf16.msrb.mxu3 %v4238_v48  ;;  %v4643_v48 = vld [vmem:[#allocation14 + $0x178] sm:$0xff] }
 0xe8f   : > { %2669 = vmatmul.bf16.vlgmr.msrb.gmra.mxu2 %v2595_v15  ;;  %v4245_v15 = vld [vmem:[#allocation13 + $0x168] sm:$0xf] }
 0xe92   : > { %2923 = vmatpush.bf16.msrb.mxu3 %v4222_v11  ;;  %v4657_v11 = vld [vmem:[#allocation14 + $0x1e8] sm:$0xff] }
 0xf12   : > { %v2670_v17 = vpop.f32.mrf.mxu2 }
 0xf13   : > { %v2674_v20 = vadd.f32 %v2670_v17, %v5596_v56  ;;  %v4242_v17 = vor.u32 %v4608_v27, %v4239_v14  ;;  %v4651_v14 = vld [vmem:[#allocation14 + $0x1b8] sm:$0xff] }
 0xf15   : > { %v5663_v21 = vadd.f32 %v4803_v16, %v2674_v20  ;;  %v4611_v16 = vld [vmem:[#allocation13 + $0x174] sm:$0xf0]  ;;  %2935 = vmatpush.bf16.msra.mxu0 %v4242_v17 }
 0xf16   : > { %v4246_v20 = vor.u32 %v4611_v16, %v4245_v15  ;;  %v4642_v15 = vld [vmem:[#allocation14 + $0x170] sm:$0xff]  ;;  %v4635_v17 = vld [vmem:[#allocation14 + $0x138] sm:$0xff] }
 0xf17   : > { %2685 = vadd.xlane.f32.xlu0 %v5663_v21  ;;  %v4650_v16 = vld [vmem:[#allocation14 + $0x1b0] sm:$0xff] }
 0xf18   : > { %2948 = vmatpush.bf16.msrb.mxu1 %v4246_v20  ;;  %v4659_v20 = vld [vmem:[#allocation14 + $0x1f8] sm:$0xff] }
 0xf19   : > { %2936 = vmatpush.bf16.msra.mxu0 %v4226_v34  ;;  %v4656_v34 = vld [vmem:[#allocation14 + $0x1e0] sm:$0xff] }
 0xf1a   : > { %v2672_v22 = vpop.f32.mrf.mxu2 }
 0xf1b   : > { %v4609_v22 = vld [vmem:[#allocation13 + $0x16c] sm:$0xf] }
 0xf1c   : > { %v4250_v25 = vor.u32 %v4609_v22, %v4247_v23  ;;  %2949 = vmatpush.bf16.msrb.mxu1 %v4230_v35  ;;  %v4649_v22 = vld [vmem:[#allocation14 + $0x1a8] sm:$0xff]  ;;  %v4634_v23 = vld [vmem:[#allocation14 + $0x130] sm:$0xff]  ;;  %v4186_v35 = vld [vmem:[%s5759_s12 + $0x4] sm:$0xf] }
 0xf1d   : > { %2937 = vmatpush.bf16.msra.mxu0 %v4210_v44  ;;  %v2752_v40 = vperm.slane %v4186_v35, 2 }
 0xf1e   : > { %2961 = vmatpush.bf16.msra.mxu2 %v4250_v25  ;;  %v4658_v25 = vld [vmem:[#allocation14 + $0x1f0] sm:$0xff] }
 0xf20   : > { %2950 = vmatpush.bf16.msrb.mxu1 %v4214_v46  ;;  %v4630_v46 = vld [vmem:[#allocation14 + $0x110] sm:$0xff] }
 0xf21   : > { %2938 = vmatpush.bf16.msra.mxu0 %v4194_v59 }
 0xf24   : > { %2951 = vmatpush.bf16.msrb.mxu1 %v4198_v60 }
 0xf25   : > { %3328 = vmatpush.bf16.msrb.mxu0 %v4643_v48 }
 0xf28   : > { %3341 = vmatpush.bf16.msra.mxu1 %v4651_v14 }
 0xf29   : > { %3329 = vmatpush.bf16.msrb.mxu0 %v4642_v15 }
 0xf2c   : > { %3342 = vmatpush.bf16.msra.mxu1 %v4650_v16 }
 0xf30   : > { %3343 = vmatpush.bf16.msra.mxu1 %v4649_v22 }
 0xf34   : > { %3344 = vmatpush.bf16.msra.mxu1 %v4648_v33 }
 0xf38   : > { %3345 = vmatpush.bf16.msra.mxu1 %v4647_v31 }
 0xf8a   : > { %v2686_v56 = vpop.xlane.xlu0 %2685 }
 0xf8b   : > { %v2687_v37 = vmul.f32 %v2686_v56, %v5479_v45  ;;  %v4231_v56 = vld [vmem:[#allocation13 + $0x158] sm:$0xf0] }
 0xf8d   : > { %v5668_v38 = vsub.f32 %v5663_v21, %v2687_v37  ;;  %v4234_v37 = vor.u32 %v4605_v36, %v4231_v56  ;;  %v4638_v36 = vld [vmem:[#allocation14 + $0x150] sm:$0xff] }
 0xf8e   : > { %v4646_v56 = vld [vmem:[#allocation14 + $0x190] sm:$0xff] }
 0xf8f   : > { %v2689_v18 = vmul.f32 %v5668_v38, %v5668_v38  ;;  %2962 = vmatpush.bf16.msra.mxu2 %v4234_v37  ;;  %v2751_v37 = vperm.slane %v4186_v35, 1  ;;  %3346 = vmatpush.bf16.msra.mxu1 %v4646_v56 }
 0xf91   : > { %2690 = vadd.xlane.f32.xlu1 %v2689_v18  ;;  %v4205_v18 = vld [vmem:[#allocation13 + $0x120] sm:$0xf] }
 0xf92   : > { %v4206_v42 = vor.u32 %v4602_v39, %v4205_v18  ;;  %v4631_v18 = vld [vmem:[#allocation14 + $0x118] sm:$0xff] }
 0xf93   : > { %2963 = vmatpush.bf16.msra.mxu2 %v4218_v51  ;;  %v4655_v39 = vld [vmem:[#allocation14 + $0x1d8] sm:$0xff]  ;;  %3347 = vmatpush.bf16.msra.mxu1 %v4645_v24  ;;  %v2750_v51 = vperm.slane %v4186_v35, 0 }
 0xf94   : > { %2924 = vmatpush.bf16.msrb.mxu3 %v4206_v42  ;;  %v4637_v42 = vld [vmem:[#allocation14 + $0x148] sm:$0xff] }
 0xf97   : > { %2964 = vmatpush.bf16.msra.mxu2 %v4202_v61  ;;  %3348 = vmatpush.bf16.msra.mxu1 %v4644_v53 }
 0xf98   : > { %2925 = vmatpush.bf16.msrb.mxu3 %v4190_v54  ;;  %v2753_v54 = vperm.slane %v4186_v35, 3 }
 0xf9b   : > { %3354 = vmatpush.bf16.msrb.mxu2 %v4659_v20 }
 0xf9c   : > { %3315 = vmatpush.bf16.msra.mxu3 %v4635_v17 }
 0xf9f   : > { %3355 = vmatpush.bf16.msrb.mxu2 %v4658_v25 }
 0xfa0   : > { %3316 = vmatpush.bf16.msra.mxu3 %v4634_v23 }
 0xfa3   : > { %3356 = vmatpush.bf16.msrb.mxu2 %v4657_v11 }
 0xfa4   : > { %3317 = vmatpush.bf16.msra.mxu3 %v4633_v28 }
 0xfa7   : > { %3357 = vmatpush.bf16.msrb.mxu2 %v4656_v34 }
 0xfa8   : > { %3318 = vmatpush.bf16.msra.mxu3 %v4632_v32 }
 0xfab   : > { %3358 = vmatpush.bf16.msrb.mxu2 %v4655_v39 }
 0xfac   : > { %3319 = vmatpush.bf16.msra.mxu3 %v4631_v18 }
 0xfaf   : > { %3359 = vmatpush.bf16.msrb.mxu2 %v4654_v47 }
 0xfb0   : > { %3320 = vmatpush.bf16.msra.mxu3 %v4630_v46 }
 0xfb3   : > { %3360 = vmatpush.bf16.msrb.mxu2 %v4653_v58 }
 0xfb4   : > { %3321 = vmatpush.bf16.msra.mxu3 %v4629_v57 }
0x1004   : > { %v2691_v41 = vpop.xlane.xlu1 %2690 }
0x1005   : > { %v2692_v62 = vmul.f32 %v2691_v41, %v5479_v45 }
0x1007   : > { %v2693_v0 = vadd.f32 1e-05, %v2692_v62 }
0x1009   : > { %4865 = vrsqrt.f32 %v2693_v0  ;;  %vm2700_vm9 = vweird.f32 %v2693_v0 }
0x100f   : > { %v4866_v13 = vpop.eup %4865 }
0x1010   : > { %v2695_v1 = vmul.f32 %v4866_v13, %v2693_v0  ;;  %vm2701_vm8 = vweird.f32 %v4866_v13 }
0x1011   : > { %vm2702_vm11 = vmor %vm2700_vm9, %vm2701_vm8 }
0x1012   : > { %v2696_v2 = vmul.f32 %v4866_v13, %v2695_v1  ;;  %v4628_v1 = vld [vmem:[#allocation14 + $0x100] sm:$0xff] }
0x1013   : > { %3322 = vmatpush.bf16.msra.mxu3 %v4628_v1 }
0x1014   : > { %v2697_v3 = vmul.f32 0.5, %v2696_v2  ;;  %v4652_v2 = vld [vmem:[#allocation14 + $0x1c0] sm:$0xff] }
0x1015   : > { %3361 = vmatpush.bf16.msrb.mxu2 %v4652_v2 }
0x1016   : > { %v2698_v4 = vsub.f32 1.5, %v2697_v3 }
0x1018   : > { %v2699_v5 = vmul.f32 %v4866_v13, %v2698_v4 }
0x101a   : > { %v2703_v7 = vsel %vm2702_vm11, %v4866_v13, %v2699_v5 }
0x101b   : > { %v2704_v8 = vmul.f32 %v2703_v7, %v5668_v38  ;;  %v4641_v38 = vld [vmem:[#allocation14 + $0x168] sm:$0xff] }
0x101c   : > { %3330 = vmatpush.bf16.msrb.mxu0 %v4641_v38 }
0x101d   : > { %v2708_v10 = vmul.f32 %v4804_v6, %v2704_v8 }
0x101f   : > { %v2712_v12 = vadd.f32 %v4805_v63, %v2708_v10 }
0x1020   : > { %3331 = vmatpush.bf16.msrb.mxu0 %v4640_v26 }
0x1021   : > { %v2713_v27 = vpack.c.bf16 %v2712_v12, %v2712_v12 }
0x1023   : > { %2926 = vmatmul.bf16.vlgmr.msrb.gmra.mxu3 %v2713_v27  ;;  %2939 = vmatmul.bf16.vlgmr.msra.gmra.mxu0 %v2713_v27 }
0x1024   : > { %2952 = vmatmul.bf16.vlgmr.msrb.gmra.mxu1 %v2713_v27  ;;  %2965 = vmatmul.bf16.vlgmr.msra.gmra.mxu2 %v2713_v27 }
0x1025   : > { %3332 = vmatpush.bf16.msrb.mxu0 %v4639_v30 }
0x1029   : > { %3333 = vmatpush.bf16.msrb.mxu0 %v4638_v36 }
0x102d   : > { %3334 = vmatpush.bf16.msrb.mxu0 %v4637_v42 }
0x1031   : > { %3335 = vmatpush.bf16.msrb.mxu0 %v4636_v52 }
0x10a0   : > { %v2940_v43 = vpop.f32.mrf.mxu0 }
0x10a1   : > { %v5680_v29 = vadd.f32 %v2940_v43, %v2751_v37  ;;  %v2953_v44 = vpop.f32.mrf.mxu1 }
0x10a2   : > { %v5682_v49 = vadd.f32 %v2953_v44, %v2752_v40 }
0x10a3   : > { %v4316_v50 = vmul.f32 -1.702, %v5680_v29 }
0x10a4   : > { %v4317_v9 = vmul.f32 -1.702, %v5682_v49 }
0x10a5   : > { %v2980_v55 = vmul.f32 1.442695, %v4316_v50 }
0x10a6   : > { %v2982_v59 = vmul.f32 1.442695, %v4317_v9  ;;  %v2927_v60 = vpop.f32.mrf.mxu3 }
0x10a7   : > { %4867 = vpow2.f32 %v2980_v55  ;;  %v5686_v19 = vadd.f32 %v2927_v60, %v2750_v51  ;;  %v2966_v61 = vpop.f32.mrf.mxu2 }
0x10a8   : > { %4869 = vpow2.f32 %v2982_v59  ;;  %v5688_v41 = vadd.f32 %v2966_v61, %v2753_v54  ;;  %v2942_v62 = vpop.f32.mrf.mxu0 }
0x10a9   : > { %v4315_v0 = vmul.f32 -1.702, %v5686_v19  ;;  %v2955_v13 = vpop.f32.mrf.mxu1 }
0x10aa   : > { %v4318_v3 = vmul.f32 -1.702, %v5688_v41 }
0x10ab   : > { %v2978_v4 = vmul.f32 1.442695, %v4315_v0 }
0x10ac   : > { %v2984_v5 = vmul.f32 1.442695, %v4318_v3 }
0x10ad   : > { %v4868_v6 = vpop.eup %4867  ;;  %4871 = vpow2.f32 %v2978_v4 }
0x10ae   : > { %v4870_v7 = vpop.eup %4869  ;;  %v2987_v8 = vadd.f32 1.0, %v4868_v6  ;;  %4873 = vpow2.f32 %v2984_v5  ;;  %v2929_v63 = vpop.f32.mrf.mxu3 }
0x10af   : > { %v2988_v10 = vadd.f32 1.0, %v4870_v7  ;;  %v2968_v12 = vpop.f32.mrf.mxu2 }
0x10b0   : > { %4875 = vrcp.f32 %v2987_v8  ;;  %v3014_v23 = vand.u32 2147483647, %v2987_v8  ;;  %v3016_v25 = vand.u32 2147483648, %v2987_v8  ;;  %vm3010_vm13 = vweird.f32 %v2987_v8 }
0x10b1   : > { %4877 = vrcp.f32 %v2988_v10  ;;  %v3029_v33 = vand.u32 2147483647, %v2988_v10  ;;  %v3031_v28 = vand.u32 2147483648, %v2988_v10  ;;  %vm3025_vm14 = vweird.f32 %v2988_v10 }
0x10b2   : > { %vm3015_vm0 = vcmp.eq.f32.partialorder %v3014_v23, 8.507059e+37  ;;  %v3017_v35 = vor.u32 1.1754944e-38, %v3016_v25 }
0x10b3   : > { %v4872_v27 = vpop.eup %4871  ;;  %vm3030_vm2 = vcmp.eq.f32.partialorder %v3029_v33, 8.507059e+37  ;;  %v3032_v37 = vor.u32 1.1754944e-38, %v3031_v28 }
0x10b4   : > { %v4874_v48 = vpop.eup %4873  ;;  %v2986_v14 = vadd.f32 1.0, %v4872_v27 }
0x10b5   : > { %v5692_v15 = vadd.f32 1.0, %v4874_v48 }
0x10b6   : > { %v4876_v16 = vpop.eup %4875  ;;  %4879 = vrcp.f32 %v2986_v14  ;;  %v2999_v42 = vand.u32 2147483647, %v2986_v14  ;;  %v3001_v24 = vand.u32 2147483648, %v2986_v14  ;;  %vm2995_vm6 = vweird.f32 %v2986_v14 }
0x10b7   : > { %v4878_v17 = vpop.eup %4877  ;;  %v3006_v20 = vmul.f32 %v4876_v16, %v2987_v8  ;;  %4881 = vrcp.f32 %v5692_v15  ;;  %vm3011_vm12 = vweird.f32 %v4876_v16  ;;  %v3046_v47 = vand.u32 2147483648, %v5692_v15 }
0x10b8   : > { %v3021_v38 = vmul.f32 %v4878_v17, %v2988_v10  ;;  %vm3026_vm15 = vweird.f32 %v4878_v17  ;;  %vm3012_vm1 = vmor %vm3010_vm13, %vm3011_vm12  ;;  %v3044_v54 = vand.u32 2147483647, %v5692_v15  ;;  %v3002_v59 = vor.u32 1.1754944e-38, %v3001_v24 }
0x10b9   : > { %v3007_v22 = vsub.f32 1.0, %v3006_v20  ;;  %vm3027_vm3 = vmor %vm3025_vm14, %vm3026_vm15  ;;  %vm3040_vm10 = vweird.f32 %v5692_v15  ;;  %vm3000_vm8 = vcmp.eq.f32.partialorder %v2999_v42, 8.507059e+37 }
0x10ba   : > { %v3022_v26 = vsub.f32 1.0, %v3021_v38  ;;  %vm3045_vm11 = vcmp.eq.f32.partialorder %v3044_v54, 8.507059e+37 }
0x10bb   : > { %v3008_v11 = vmul.f32 %v4876_v16, %v3007_v22 }
0x10bc   : > { %v4880_v30 = vpop.eup %4879  ;;  %v3023_v31 = vmul.f32 %v4878_v17, %v3022_v26 }
0x10bd   : > { %v4882_v32 = vpop.eup %4881  ;;  %v3009_v34 = vadd.f32 %v4876_v16, %v3008_v11  ;;  %v2991_v36 = vmul.f32 %v4880_v30, %v2986_v14  ;;  %vm2996_vm4 = vweird.f32 %v4880_v30 }
0x10be   : > { %v3024_v56 = vadd.f32 %v4878_v17, %v3023_v31  ;;  %v3036_v18 = vmul.f32 %v4882_v32, %v5692_v15  ;;  %vm3041_vm5 = vweird.f32 %v4882_v32  ;;  %vm2997_vm7 = vmor %vm2995_vm6, %vm2996_vm4  ;;  %v4807_v31 = vld [vmem:[%s5799_s1] ss:$0 sm:$0xff] }
0x10bf   : > { %v3013_v39 = vsel %vm3012_vm1, %v4876_v16, %v3009_v34  ;;  %v2992_v40 = vsub.f32 1.0, %v2991_v36  ;;  %vm3042_vm9 = vmor %vm3040_vm10, %vm3041_vm5  ;;  %v4808_v34 = vld [vmem:[%s5802_s0] ss:$0 sm:$0xff] }
0x10c0   : > { %v3018_v43 = vsel %vm3015_vm0, %v3017_v35, %v3013_v39  ;;  %v3028_v44 = vsel %vm3027_vm3, %v4878_v17, %v3024_v56  ;;  %v3037_v46 = vsub.f32 1.0, %v3036_v18 }
0x10c1   : > { %v3051_v50 = vmul.f32 %v3018_v43, %v5680_v29  ;;  %v3033_v51 = vsel %vm3030_vm2, %v3032_v37, %v3028_v44  ;;  %v2993_v52 = vmul.f32 %v4880_v30, %v2992_v40  ;;  %v3047_v29 = vor.u32 1.1754944e-38, %v3046_v47 }
0x10c2   : > { %v3052_v53 = vmul.f32 %v3033_v51, %v5682_v49  ;;  %v3038_v9 = vmul.f32 %v4882_v32, %v3037_v46 }
0x10c3   : > { %v3055_v55 = vpack.c.bf16 %v3051_v50, %v3051_v50  ;;  %v2994_v57 = vadd.f32 %v4880_v30, %v2993_v52 }
0x10c4   : > { %v3056_v58 = vpack.c.bf16 %v3052_v53, %v3052_v53  ;;  %v3039_v60 = vadd.f32 %v4882_v32, %v3038_v9 }
0x10c5   : > { %v2998_v61 = vsel %vm2997_vm7, %v4880_v30, %v2994_v57  ;;  %3336 = vmatmul.bf16.vlgmr.msrb.gmra.mxu0 %v3055_v55 }
0x10c6   : > { %v3003_v62 = vsel %vm3000_vm8, %v3002_v59, %v2998_v61  ;;  %v3043_v49 = vsel %vm3042_vm9, %v4882_v32, %v3039_v60  ;;  %3349 = vmatmul.bf16.vlgmr.msra.gmra.mxu1 %v3056_v58 }
0x10c7   : > { %v3050_v0 = vmul.f32 %v3003_v62, %v5686_v19  ;;  %v3048_v13 = vsel %vm3045_vm11, %v3047_v29, %v3043_v49  ;;  %v4806_v19 = vld [vmem:[%s5761_s14 + $0x1] ss:$0 sm:$0xff] }
0x10c8   : > { %v3053_v1 = vmul.f32 %v3048_v13, %v5688_v41 }
0x10c9   : > { %v3054_v2 = vpack.c.bf16 %v3050_v0, %v3050_v0 }
0x10ca   : > { %v3057_v3 = vpack.c.bf16 %v3053_v1, %v3053_v1 }
0x10cb   : > { %3323 = vmatmul.bf16.vlgmr.msra.gmra.mxu3 %v3054_v2 }
0x10cc   : > { %3362 = vmatmul.bf16.vlgmr.msrb.gmra.mxu2 %v3057_v3 }
0x1142   : > { %v3337_v4 = vpop.f32.mrf.mxu0 }
0x1143   : > { %v3350_v5 = vpop.f32.mrf.mxu1 }
0x114a   : > { %v3339_v6 = vpop.f32.mrf.mxu0 }
0x114b   : > { %v3352_v7 = vpop.f32.mrf.mxu1 }
0x114e   : > { %v3324_v8 = vpop.f32.mrf.mxu3 }
0x114f   : > { %v3338_v63 = vadd.f32 %v3337_v4, %v3324_v8  ;;  %v3363_v10 = vpop.f32.mrf.mxu2 }
0x1151   : > { %v3351_v12 = vadd.f32 %v3350_v5, %v3338_v63 }
0x1153   : > { %v3364_v27 = vadd.f32 %v3363_v10, %v3351_v12 }
0x1155   : > { %v3367_v48 = vadd.f32 %v3364_v27, %v5663_v21 }
0x1156   : > { %v3326_v41 = vpop.f32.mrf.mxu3 }
0x1157   : > { %v3365_v14 = vpop.f32.mrf.mxu2  ;;  %v3373_v15 = vadd.f32 %v4806_v19, %v3367_v48 }
0x1159   : > { %3376 = vadd.xlane.f32.xlu2 %v3373_v15 }
0x11cc   : > { %v3377_v16 = vpop.xlane.xlu2 %3376 }
0x11cd   : > { %v3378_v17 = vmul.f32 %v3377_v16, %v5479_v45 }
0x11cf   : > { %v3379_v20 = vsub.f32 %v3373_v15, %v3378_v17 }
0x11d1   : > { %v3380_v38 = vmul.f32 %v3379_v20, %v3379_v20 }
0x11d3   : > { %3381 = vadd.xlane.f32.xlu0 %v3380_v38 }
0x1246   : > { %v3382_v22 = vpop.xlane.xlu0 %3381 }
0x1247   : > { %v3383_v23 = vmul.f32 %v3382_v22, %v5479_v45 }
0x1249   : > { %v3384_v25 = vadd.f32 1e-05, %v3383_v23 }
0x124b   : > { %4883 = vrsqrt.f32 %v3384_v25  ;;  %vm3391_vm13 = vweird.f32 %v3384_v25 }
0x1251   : > { %v4884_v26 = vpop.eup %4883 }
0x1252   : > { %v3386_v33 = vmul.f32 %v4884_v26, %v3384_v25  ;;  %vm3392_vm12 = vweird.f32 %v4884_v26 }
0x1253   : > { %vm3393_vm14 = vmor %vm3391_vm13, %vm3392_vm12 }
0x1254   : > { %v3387_v21 = vmul.f32 %v4884_v26, %v3386_v33 }
0x1256   : > { %v3388_v28 = vmul.f32 0.5, %v3387_v21 }
0x1258   : > { %v3389_v11 = vsub.f32 1.5, %v3388_v28 }
0x125a   : > { %v3390_v30 = vmul.f32 %v4884_v26, %v3389_v11 }
0x125c   : > { %v3394_v45 = vsel %vm3393_vm14, %v4884_v26, %v3390_v30 }
0x125d   : > { %v3395_v32 = vmul.f32 %v3394_v45, %v3379_v20 }
0x125f   : > { %v3399_v35 = vmul.f32 %v4807_v31, %v3395_v32 }
0x1261   : > { %v3403_v36 = vadd.f32 %v4808_v34, %v3399_v35 }
0x1263   : > { %3404 = vst [vmem:[%s672_s29] sm:$0xff] %v3403_v36 }
0x1264   : > { %5152 = shalt.err (!%p5149_p8)
}
0x1265   : > { %4692 = dma.vmem_to_hbm [thread:$0]  (%p5359_p5), %s3419_s28, 128, %s3421_s3, %s3406_s24  }
0x1266 PF: > { %s5803_s25 = sld [smem:[#allocation26_spill]] }
0x1267   : > { %s5804_s19 = sld [smem:[#allocation23_spill]] }
0x126c   : > { %p4739_p9 = scmp.ge.s32.totalorder %s5803_s25, 2 }
0x126d   : > { %s3432_s27 = sand.u32 1, %s5804_s19  }
0x126e   : > { %p4720_p10 = pnand %p4739_p9, %p5363_p6  ;;  %s3433_s30 = scalar_lea.sflag [#allocation4], %s3432_s27 }
0x1270   : > { %p4721_p11 = pneg %p4720_p10 }
0x1272   : > { %5190 = dma.done.wait (%p4721_p11), %s3433_s30, 128  }
0x1273   : > { %5192 = vsyncadd (%p4721_p11), %s3433_s30, 4294967168  ;;  %s5806_s27 = sld [smem:[#allocation27_spill]] }
0x1274   : > { %s5807_s24 = sld [smem:[#allocation24_spill]] }
0x1275   : > { %s5808_s25 = sld [smem:[#allocation25_spill]] }
0x1276   : > { %s5809_s26 = sld [smem:[#allocation28_spill]] }
0x1279   : > { %p32_p12 = scmp.ge.s32.totalorder %s5806_s27, 4  }
0x127b   :  { %34 = sbr.rel (!%p32_p12) target bundleno = 16 (0x10), region = 168 }
0x1280   :  { %3439 = vsyncpa [#allocation3], 1 }
0x1281   :  { %3441 = vsyncpa [#allocation3 + $0x1], 1 }
0x1282   :  { %3442 = vsyncpa [#allocation6], 1 }
0x1283   :  { %3443 = vsyncpa [#allocation9], 1 }
0x1284   :  { %3444 = vsyncpa [#allocation12], 1 }
0x1285   :  { %3445 = vsyncpa [#allocation15], 1 }
0x1286   :  { %3446 = vsyncpa [#allocation4], 1 }
0x1287   :  { %3448 = vsyncpa [#allocation4 + $0x1], 1 }

</bundles_post_ra>
